<compile_context>
chip_gen: v7x
topology: tpu7x:2x2x1
jax: 0.10.0
libtpu: 0.0.40
codegen_flags: <defaults>
</compile_context>

<pallas_src>
import functools

import jax
import jax.numpy as jnp
from jax import lax
from jax.experimental import pallas as pl
from jax.experimental.pallas import tpu as pltpu


def _round_up(x, m):
    return ((x + m - 1) // m) * m


def _ffn_kernel(x_ref, w1_ref, b1_ref, w2_ref, b2_ref, gamma_ref, beta_ref,
                o_ref, acc_ref, *, eps, mxu_dtype, precision):
    k = pl.program_id(1)
    nk = pl.num_programs(1)

    @pl.when(k == 0)
    def _init():
        acc_ref[...] = jnp.zeros_like(acc_ref)

    x = x_ref[...]                                          # (TM, d_model)

    # conv1 chunk (1x1 conv == per-position matmul) + bias + ReLU  -> MXU + VPU.
    h = jnp.dot(x.astype(mxu_dtype), w1_ref[...],
                preferred_element_type=jnp.float32,
                precision=precision)                        # (TM, TK) f32 acc
    h = jnp.maximum(h + b1_ref[...], 0.0)

    # conv2 chunk, accumulated across d_ff chunks in f32 VMEM scratch.
    acc_ref[...] += jnp.dot(h.astype(mxu_dtype), w2_ref[...],
                            preferred_element_type=jnp.float32,
                            precision=precision)            # (TM, d_model)

    @pl.when(k == nk - 1)
    def _finalize():
        y = acc_ref[...] + b2_ref[...] + x.astype(jnp.float32)
        # Centered LayerNorm over d_model (avoids one-pass E[y^2]-E[y]^2
        # cancellation when |mean| >> std after the residual add).
        mean = jnp.mean(y, axis=-1, keepdims=True)
        c = y - mean
        var = jnp.mean(c * c, axis=-1, keepdims=True)
        normed = c * lax.rsqrt(var + eps)
        o_ref[...] = (normed * gamma_ref[...] + beta_ref[...]).astype(o_ref.dtype)


def _pick_tk(d_ff, tk_target):
    """Largest multiple-of-128 divisor of d_ff that is <= tk_target, or d_ff."""
    if d_ff <= tk_target or d_ff % 128 != 0:
        return d_ff
    tk = 128
    for cand in range(128, min(tk_target, d_ff) + 1, 128):
        if d_ff % cand == 0:
            tk = cand
    return tk


def _pick_tm(M, tm_cap):
    """Row-tile size: multiple of 16, prefers an exact divisor of M (so no HBM
    pad/slice round-trip) and leaves >= 2 row tiles when M allows (megacore)."""
    if M <= 16:
        return M, False                 # single tiny tile == full dim (legal)
    tm_cap = max(16, (tm_cap // 16) * 16)
    if M >= 32:
        tm_cap = min(tm_cap, _round_up((M + 1) // 2, 16))   # >= 2 row tiles
    tm_cap = min(tm_cap, _round_up(M, 16))
    for tm in range(tm_cap, 15, -16):
        if M % tm == 0:
            return tm, False
    return tm_cap, True


def poswise_ffn(x, w1, b1, w2, b2, gamma, beta, *, eps=1e-5,
                mxu_dtype=jnp.bfloat16, block_rows=None, block_ff=None):
    """x: [B, S, d_model] -> [B, S, d_model].

    w1: [d_model, d_ff], w2: [d_ff, d_model] (matmul form of the 1x1 convs).
    mxu_dtype: dtype of the matmul operands (default bf16 for ~2x MXU
    throughput; accumulation is always f32).  Pass jnp.float32 for a strict
    f32 (Precision.HIGHEST) path.
    """
    B, S, d_model = x.shape
    d_ff = w1.shape[1]
    M = B * S

    mxu_dtype = jnp.dtype(mxu_dtype)
    precision = lax.Precision.HIGHEST if mxu_dtype == jnp.float32 else None

    # Cast matmul operands / small params once in the wrapper (no per-step casts).
    w1c = w1.astype(mxu_dtype)
    w2c = w2.astype(mxu_dtype)
    b1_2d = b1.reshape(1, d_ff).astype(jnp.float32)
    b2_2d = b2.reshape(1, d_model).astype(jnp.float32)
    gamma_2d = gamma.reshape(1, d_model).astype(jnp.float32)
    beta_2d = beta.reshape(1, d_model).astype(jnp.float32)

    # ---- per-generation VMEM capacity (v5e/v6e: 128 MiB, v7x: 64 MiB) ----
    try:
        info = pltpu.get_tpu_info()
        vmem_cap = int(getattr(info, "vmem_capacity_bytes", 64 * 1024 * 1024))
    except Exception:  # not on TPU / query unavailable -> conservative default
        vmem_cap = 64 * 1024 * 1024
    vmem_budget = int(vmem_cap * 0.85)   # ~108 MiB on v5e/v6e, ~54 MiB on v7x

    # ---- d_ff chunk size (TK) ----
    tk_target = block_ff if block_ff is not None else (
        1024 if vmem_cap <= 64 * 1024 * 1024 else 2048)
    TK = _pick_tk(d_ff, tk_target)
    num_k = d_ff // TK
    w_bufs = 1 if num_k == 1 else 2      # constant weight blocks -> 1 buffer

    # ---- row-tile size (TM) from the real VMEM budget ----
    itemsize_x = x.dtype.itemsize
    param_bytes = (w_bufs * 2 * d_model * TK * mxu_dtype.itemsize   # W1 + W2 chunk
                   + w_bufs * TK * 4                                # b1 chunk
                   + 3 * d_model * 4)                               # b2/gamma/beta
    per_row_bytes = (2 * 2 * d_model * itemsize_x          # x + out, 2-deep pipeline
                     + d_model * 4                          # acc scratch
                     + TK * 4 + TK * mxu_dtype.itemsize     # h f32 + mxu-cast copy
                     + 3 * d_model * 4)                     # y / centered / normed
    if block_rows is None:
        block_rows = (vmem_budget - param_bytes - (8 << 20)) // max(1, per_row_bytes)
        block_rows = max(16, min(1024, block_rows))

    TM, needs_pad = _pick_tm(M, int(block_rows))
    num_m = pl.cdiv(M, TM)
    M_pad = num_m * TM

    x2d = x.reshape(M, d_model)
    if needs_pad and M_pad != M:
        # TODO(synk): handle the ragged last row tile with a masked final store
        # instead of this HBM pad/slice round-trip (only hit when no
        # multiple-of-16 tile divides M).
        x2d = jnp.pad(x2d, ((0, M_pad - M), (0, 0)))

    est = param_bytes + TM * per_row_bytes + (2 << 20)
    vmem_limit = int(min(max(int(est * 1.25), 32 * 1024 * 1024), vmem_budget))

    flops = 4 * M_pad * d_model * d_ff + 10 * M_pad * d_model
    bytes_accessed = (2 * M_pad * d_model * itemsize_x
                      + w1c.size * w1c.dtype.itemsize
                      + w2c.size * w2c.dtype.itemsize
                      + (d_ff + 3 * d_model) * 4)
    cost = pl.CostEstimate(flops=flops, transcendentals=M_pad,
                           bytes_accessed=bytes_accessed)

    single = pl.Buffered(1)

    def wspec(shape, index_map):
        # Weight/bias chunks: single-buffered when their index is constant
        # (num_k == 1 -> DMA'd once, half the resident parameter VMEM),
        # default double-buffering when they stream over d_ff chunks.
        if num_k == 1:
            return pl.BlockSpec(shape, index_map, pipeline_mode=single)
        return pl.BlockSpec(shape, index_map)

    def cspec(shape):
        return pl.BlockSpec(shape, lambda i, k: (0, 0), pipeline_mode=single)

    row_spec = pl.BlockSpec((TM, d_model), lambda i, k: (i, 0))

    out2d = pl.pallas_call(
        functools.partial(_ffn_kernel, eps=eps, mxu_dtype=mxu_dtype,
                          precision=precision),
        out_shape=jax.ShapeDtypeStruct((M_pad, d_model), x.dtype),
        grid=(num_m, num_k),
        in_specs=[
            row_spec,                                            # x tile
            wspec((d_model, TK), lambda i, k: (0, k)),           # W1 chunk
            wspec((1, TK), lambda i, k: (0, k)),                 # b1 chunk
            wspec((TK, d_model), lambda i, k: (k, 0)),           # W2 chunk
            cspec((1, d_model)),                                 # b2
            cspec((1, d_model)),                                 # gamma
            cspec((1, d_model)),                                 # beta
        ],
        out_specs=row_spec,
        scratch_shapes=[pltpu.VMEM((TM, d_model), jnp.float32)],
        compiler_params=pltpu.CompilerParams(
            dimension_semantics=("parallel", "arbitrary"),
            vmem_limit_bytes=vmem_limit,
        ),
        cost_estimate=cost,
    )(x2d, w1c, b1_2d, w2c, b2_2d, gamma_2d, beta_2d)

    if M_pad != M:
        out2d = out2d[:M]
    return out2d.reshape(B, S, d_model)


def reference_ffn(x, w1, b1, w2, b2, gamma, beta, eps=1e-5):
    """Pure-JAX f32 reference mirroring the PyTorch forward."""
    hp = lax.Precision.HIGHEST
    h = jnp.maximum(jnp.einsum('bsd,df->bsf', x, w1, precision=hp) + b1, 0.0)
    y = jnp.einsum('bsf,fd->bsd', h, w2, precision=hp) + b2 + x
    mean = jnp.mean(y, axis=-1, keepdims=True)
    var = jnp.mean((y - mean) ** 2, axis=-1, keepdims=True)
    return (y - mean) / jnp.sqrt(var + eps) * gamma + beta


if __name__ == "__main__":
    # Small, deterministic, lane-aligned config (d_model, d_ff multiples of 128).
    B, S = 2, 128
    d_model, d_ff = 128, 256

    key = jax.random.PRNGKey(0)
    kx, k1, kb1, k2, kb2 = jax.random.split(key, 5)

    x = jax.random.normal(kx, (B, S, d_model), dtype=jnp.float32)

    # conv1.weight is [d_ff, d_model, 1] in PyTorch; W1 = weight.squeeze(-1).T
    # has shape [d_model, d_ff] (same pattern for conv2).
    w1 = jax.random.normal(k1, (d_model, d_ff), dtype=jnp.float32) * 0.1
    b1 = jax.random.normal(kb1, (d_ff,), dtype=jnp.float32) * 0.1
    w2 = jax.random.normal(k2, (d_ff, d_model), dtype=jnp.float32) * 0.1
    b2 = jax.random.normal(kb2, (d_model,), dtype=jnp.float32) * 0.1
    gamma = jnp.ones((d_model,), dtype=jnp.float32)   # LayerNorm default init
    beta = jnp.zeros((d_model,), dtype=jnp.float32)

    ref = reference_ffn(x, w1, b1, w2, b2, gamma, beta)

    # Strict f32 MXU path (single d_ff chunk, M=256 -> 2 row tiles for megacore).
    out_f32 = poswise_ffn(x, w1, b1, w2, b2, gamma, beta, mxu_dtype=jnp.float32)
    out_f32 = jax.block_until_ready(out_f32)
    assert out_f32.shape == (B, S, d_model)
    assert jnp.allclose(out_f32, ref, atol=1e-3, rtol=1e-3), "f32 mismatch vs reference"

    # Default bf16-operand / f32-accumulate MXU path (2x MXU throughput).
    out_bf16 = jax.block_until_ready(poswise_ffn(x, w1, b1, w2, b2, gamma, beta))
    assert out_bf16.shape == (B, S, d_model)
    assert jnp.allclose(out_bf16, ref, atol=5e-2, rtol=5e-2), "bf16 mismatch vs reference"

    # Exercise the d_ff-chunked accumulation path (TK=128 -> 2 chunks).
    out_chunked = jax.block_until_ready(
        poswise_ffn(x, w1, b1, w2, b2, gamma, beta,
                    mxu_dtype=jnp.float32, block_ff=128))
    assert jnp.allclose(out_chunked, ref, atol=1e-3, rtol=1e-3), "chunked mismatch vs reference"

    print("KERNEL_OK")
</pallas_src>

<mosaic_0001>
module attributes {stable_mosaic.version = 11 : i64} {
  func.func @_ffn_kernel(%arg0: i32, %arg1: i32, %arg2: memref<128x128xf32, #tpu.memory_space<vmem>>, %arg3: memref<128x256xf32, #tpu.memory_space<vmem>>, %arg4: memref<1x256xf32, #tpu.memory_space<vmem>>, %arg5: memref<256x128xf32, #tpu.memory_space<vmem>>, %arg6: memref<1x128xf32, #tpu.memory_space<vmem>>, %arg7: memref<1x128xf32, #tpu.memory_space<vmem>>, %arg8: memref<1x128xf32, #tpu.memory_space<vmem>>, %arg9: memref<128x128xf32, #tpu.memory_space<vmem>>, %arg10: memref<128x128xf32, #tpu.memory_space<vmem>>) attributes {dimension_semantics = [#tpu.dimension_semantics<parallel>, #tpu.dimension_semantics<arbitrary>], iteration_bounds = array<i64: 2, 1>, scalar_prefetch = 0 : i64, scratch_operands = 1 : i64, tpu.core_type = #tpu.core_type<tc>, window_params = [{transform_indices = @transform_0, window_bounds = array<i64: 128, 128>}, {pipeline_mode = #tpu.pipeline_mode<synchronous>, transform_indices = @transform_1, window_bounds = array<i64: 128, 256>}, {pipeline_mode = #tpu.pipeline_mode<synchronous>, transform_indices = @transform_2, window_bounds = array<i64: 1, 256>}, {pipeline_mode = #tpu.pipeline_mode<synchronous>, transform_indices = @transform_3, window_bounds = array<i64: 256, 128>}, {pipeline_mode = #tpu.pipeline_mode<synchronous>, transform_indices = @transform_4, window_bounds = array<i64: 1, 128>}, {pipeline_mode = #tpu.pipeline_mode<synchronous>, transform_indices = @transform_5, window_bounds = array<i64: 1, 128>}, {pipeline_mode = #tpu.pipeline_mode<synchronous>, transform_indices = @transform_6, window_bounds = array<i64: 1, 128>}, {transform_indices = @transform_7, window_bounds = array<i64: 128, 128>}]} {
    %c0_i32 = arith.constant 0 : i32
    %0 = arith.cmpi eq, %arg1, %c0_i32 : i32
    %1 = arith.extui %0 : i1 to i32
    %c0_i32_0 = arith.constant 0 : i32
    %2 = arith.cmpi ne, %1, %c0_i32_0 : i32
    scf.if %2 {
      %cst_16 = arith.constant 0.000000e+00 : f32
      %19 = vector.broadcast %cst_16 : f32 to vector<128x128xf32>
      %c0_17 = arith.constant 0 : index
      %c0_18 = arith.constant 0 : index
      %20 = vector.load %arg10[%c0_17, %c0_18] : memref<128x128xf32, #tpu.memory_space<vmem>>, vector<128x128xf32>
      tpu.vector_store %arg10[%c0_17, %c0_18], %19 {strides = array<i32>} : memref<128x128xf32, #tpu.memory_space<vmem>>, vector<128x128xf32>,
    } else {
    }
    %c0 = arith.constant 0 : index
    %c0_1 = arith.constant 0 : index
    %3 = vector.load %arg2[%c0, %c0_1] : memref<128x128xf32, #tpu.memory_space<vmem>>, vector<128x128xf32>
    %c0_2 = arith.constant 0 : index
    %c0_3 = arith.constant 0 : index
    %4 = vector.load %arg3[%c0_2, %c0_3] : memref<128x256xf32, #tpu.memory_space<vmem>>, vector<128x256xf32>
    %cst = arith.constant dense<0.000000e+00> : vector<128x256xf32>
    %5 = tpu.matmul %3, %4, %cst {dimension_numbers = #tpu.dot_dimension_numbers<[1], [0], [0], [1], [0, 0, 1, 1], [], []>, precision = #tpu.contract_precision<fp32>} : vector<128x128xf32>, vector<128x256xf32>, vector<128x256xf32> -> vector<128x256xf32>
    %c0_4 = arith.constant 0 : index
    %c0_5 = arith.constant 0 : index
    %6 = vector.load %arg4[%c0_4, %c0_5] : memref<1x256xf32, #tpu.memory_space<vmem>>, vector<1x256xf32>
    %7 = vector.broadcast %6 : vector<1x256xf32> to vector<128x256xf32>
    %8 = arith.addf %5, %7 : vector<128x256xf32>
    %cst_6 = arith.constant 0.000000e+00 : f32
    %9 = vector.broadcast %cst_6 : f32 to vector<128x256xf32>
    %10 = arith.maximumf %8, %9 : vector<128x256xf32>
    %c0_7 = arith.constant 0 : index
    %c0_8 = arith.constant 0 : index
    %11 = vector.load %arg10[%c0_7, %c0_8] : memref<128x128xf32, #tpu.memory_space<vmem>>, vector<128x128xf32>
    %c0_9 = arith.constant 0 : index
    %c0_10 = arith.constant 0 : index
    %12 = vector.load %arg5[%c0_9, %c0_10] : memref<256x128xf32, #tpu.memory_space<vmem>>, vector<256x128xf32>
    %cst_11 = arith.constant dense<0.000000e+00> : vector<128x128xf32>
    %13 = tpu.matmul %10, %12, %cst_11 {dimension_numbers = #tpu.dot_dimension_numbers<[1], [0], [0], [1], [0, 0, 1, 1], [], []>, precision = #tpu.contract_precision<fp32>} : vector<128x256xf32>, vector<256x128xf32>, vector<128x128xf32> -> vector<128x128xf32>
    %14 = arith.addf %11, %13 : vector<128x128xf32>
    %c0_12 = arith.constant 0 : index
    %c0_13 = arith.constant 0 : index
    %15 = vector.load %arg10[%c0_12, %c0_13] : memref<128x128xf32, #tpu.memory_space<vmem>>, vector<128x128xf32>
    tpu.vector_store %arg10[%c0_12, %c0_13], %14 {strides = array<i32>} : memref<128x128xf32, #tpu.memory_space<vmem>>, vector<128x128xf32>,
    %c0_i32_14 = arith.constant 0 : i32
    %16 = arith.cmpi eq, %arg1, %c0_i32_14 : i32
    %17 = arith.extui %16 : i1 to i32
    %c0_i32_15 = arith.constant 0 : i32
    %18 = arith.cmpi ne, %17, %c0_i32_15 : i32
    scf.if %18 {
      %c0_16 = arith.constant 0 : index
      %c0_17 = arith.constant 0 : index
      %19 = vector.load %arg10[%c0_16, %c0_17] : memref<128x128xf32, #tpu.memory_space<vmem>>, vector<128x128xf32>
      %c0_18 = arith.constant 0 : index
      %c0_19 = arith.constant 0 : index
      %20 = vector.load %arg6[%c0_18, %c0_19] : memref<1x128xf32, #tpu.memory_space<vmem>>, vector<1x128xf32>
      %21 = vector.broadcast %20 : vector<1x128xf32> to vector<128x128xf32>
      %22 = arith.addf %19, %21 : vector<128x128xf32>
      %23 = arith.addf %22, %3 : vector<128x128xf32>
      %cst_20 = arith.constant dense<0.000000e+00> : vector<128xf32>
      %24 = vector.multi_reduction <add>, %23, %cst_20 [1] : vector<128x128xf32> to vector<128xf32>
      %25 = vector.shape_cast %24 : vector<128xf32> to vector<128x1xf32>
      %cst_21 = arith.constant 1.280000e+02 : f32
      %26 = vector.broadcast %cst_21 : f32 to vector<128x1xf32>
      %27 = arith.divf %25, %26 : vector<128x1xf32>
      %28 = vector.broadcast %27 : vector<128x1xf32> to vector<128x128xf32>
      %29 = arith.subf %23, %28 : vector<128x128xf32>
      %30 = arith.mulf %29, %29 : vector<128x128xf32>
      %cst_22 = arith.constant dense<0.000000e+00> : vector<128xf32>
      %31 = vector.multi_reduction <add>, %30, %cst_22 [1] : vector<128x128xf32> to vector<128xf32>
      %32 = vector.shape_cast %31 : vector<128xf32> to vector<128x1xf32>
      %cst_23 = arith.constant 1.280000e+02 : f32
      %33 = vector.broadcast %cst_23 : f32 to vector<128x1xf32>
      %34 = arith.divf %32, %33 : vector<128x1xf32>
      %cst_24 = arith.constant 9.99999974E-6 : f32
      %35 = vector.broadcast %cst_24 : f32 to vector<128x1xf32>
      %36 = arith.addf %34, %35 : vector<128x1xf32>
      %37 = math.rsqrt %36 : vector<128x1xf32>
      %38 = vector.broadcast %37 : vector<128x1xf32> to vector<128x128xf32>
      %39 = arith.mulf %29, %38 : vector<128x128xf32>
      %c0_25 = arith.constant 0 : index
      %c0_26 = arith.constant 0 : index
      %40 = vector.load %arg7[%c0_25, %c0_26] : memref<1x128xf32, #tpu.memory_space<vmem>>, vector<1x128xf32>
      %41 = vector.broadcast %40 : vector<1x128xf32> to vector<128x128xf32>
      %42 = arith.mulf %39, %41 : vector<128x128xf32>
      %c0_27 = arith.constant 0 : index
      %c0_28 = arith.constant 0 : index
      %43 = vector.load %arg8[%c0_27, %c0_28] : memref<1x128xf32, #tpu.memory_space<vmem>>, vector<1x128xf32>
      %44 = vector.broadcast %43 : vector<1x128xf32> to vector<128x128xf32>
      %45 = arith.addf %42, %44 : vector<128x128xf32>
      %c0_29 = arith.constant 0 : index
      %c0_30 = arith.constant 0 : index
      %46 = vector.load %arg9[%c0_29, %c0_30] : memref<128x128xf32, #tpu.memory_space<vmem>>, vector<128x128xf32>
      tpu.vector_store %arg9[%c0_29, %c0_30], %45 {strides = array<i32>} : memref<128x128xf32, #tpu.memory_space<vmem>>, vector<128x128xf32>,
    } else {
    }
    return
  }
  func.func @transform_0(%arg0: i32, %arg1: i32) -> (i32, i32) {
    %c0_i32 = arith.constant 0 : i32
    %c0_i32_0 = arith.constant 0 : i32
    return %arg0, %c0_i32 : i32, i32
  }
  func.func @transform_1(%arg0: i32, %arg1: i32) -> (i32, i32) {
    %c0_i32 = arith.constant 0 : i32
    %c0_i32_0 = arith.constant 0 : i32
    return %c0_i32, %arg1 : i32, i32
  }
  func.func @transform_2(%arg0: i32, %arg1: i32) -> (i32, i32) {
    %c0_i32 = arith.constant 0 : i32
    %c0_i32_0 = arith.constant 0 : i32
    return %c0_i32, %arg1 : i32, i32
  }
  func.func @transform_3(%arg0: i32, %arg1: i32) -> (i32, i32) {
    %c0_i32 = arith.constant 0 : i32
    %c0_i32_0 = arith.constant 0 : i32
    return %arg1, %c0_i32 : i32, i32
  }
  func.func @transform_4(%arg0: i32, %arg1: i32) -> (i32, i32) {
    %c0_i32 = arith.constant 0 : i32
    %c0_i32_0 = arith.constant 0 : i32
    %c0_i32_1 = arith.constant 0 : i32
    return %c0_i32, %c0_i32_0 : i32, i32
  }
  func.func @transform_5(%arg0: i32, %arg1: i32) -> (i32, i32) {
    %c0_i32 = arith.constant 0 : i32
    %c0_i32_0 = arith.constant 0 : i32
    %c0_i32_1 = arith.constant 0 : i32
    return %c0_i32, %c0_i32_0 : i32, i32
  }
  func.func @transform_6(%arg0: i32, %arg1: i32) -> (i32, i32) {
    %c0_i32 = arith.constant 0 : i32
    %c0_i32_0 = arith.constant 0 : i32
    %c0_i32_1 = arith.constant 0 : i32
    return %c0_i32, %c0_i32_0 : i32, i32
  }
  func.func @transform_7(%arg0: i32, %arg1: i32) -> (i32, i32) {
    %c0_i32 = arith.constant 0 : i32
    %c0_i32_0 = arith.constant 0 : i32
    return %arg0, %c0_i32 : i32, i32
  }
}

</mosaic_0001>

<bundles_post_ra>
// kernel: tpu_custom_call.1
= control target key start
LH: loop header
LB: loop body
LE: loop exit
PB: predicated region body
PF: predicated region fallthrough
CT: control target
= control target key end

     0   :  { %12 = vsyncpa [#allocation4], 0  ;;  %s8261_s0 = inlined_call_operand.hbm [shape: f32[256,128], index: 0, kind: input, shape index: {}]   ;;  %s8262_s1 = inlined_call_operand.hbm [shape: f32[128,256], index: 1, kind: input, shape index: {}]   ;;  %s8263_s2 = inlined_call_operand.vmem [shape: f32[1,256], index: 2, kind: input, shape index: {}]   ;;  %s8264_s3 = inlined_call_operand.hbm [shape: f32[256,128], index: 3, kind: input, shape index: {}]   ;;  %s8265_s4 = inlined_call_operand.vmem [shape: f32[1,128], index: 4, kind: input, shape index: {}]   ;;  %s8266_s5 = inlined_call_operand.vmem [shape: f32[1,128], index: 5, kind: input, shape index: {}]   ;;  %s8267_s6 = inlined_call_operand.vmem [shape: f32[1,128], index: 6, kind: input, shape index: {}]   ;;  %s8268_s7 = inlined_call_operand.hbm [shape: f32[256,128], index: 7, kind: output, shape index: {}]  }
   0x1   :  { %14 = vsyncpa [#allocation4 + $0x1], 0 }
   0x2   :  { %15 = vsyncpa [#allocation7], 0 }
   0x3   :  { %16 = vsyncpa [#allocation5], 0 }
   0x4   :  { %18 = vsyncpa [#allocation5 + $0x1], 0  ;;  %s5732_s24 = smov 0   ;;  %s5734_s25 = smov 0  }
   0x5   :  { %s5736_s26 = smov 0   ;;  %s5738_s27 = smov 0  }
   0x6   :  { %s5740_s28 = smov 0   ;;  %s5742_s29 = smov 0  }
   0x7 LB: > { %8648 = sst [smem:[#allocation13_spill]] %s5659_s24  ;;  %s4288_s30 = sadd.s32 4294967295, %s5679_s29   ;;  %s5679_s29 = sphi %s5742_s29, %s24_s29   ;;  %s5675_s28 = sphi %s5740_s28, %s9138_s28   ;;  %s5671_s27 = sphi %s5738_s27, %s9137_s27   ;;  %s5667_s26 = sphi %s5736_s26, %s9136_s26   ;;  %s5663_s25 = sphi %s5734_s25, %s9135_s25   ;;  %s5659_s24 = sphi %s5732_s24, %s9134_s24  }
   0x8   : > { %s4289_s8 = sadd.s32 4294967294, %s5679_s29   ;;  %p56_p0 = scmp.ne.s32.totalorder %s5663_s25, %s5659_s24 }
   0x9   : > { %p5766_p1 = scmp.eq.s32.totalorder %s4288_s30, 0  ;;  %p5770_p2 = scmp.eq.s32.totalorder %s4288_s30, 1 }
   0xa   : > { %p227_p3 = scmp.eq.s32.totalorder %s4289_s8, 1  ;;  %p4290_p5 = scmp.ge.s32.totalorder %s5679_s29, 1 }
   0xb   : > { %s8649_s9 = scalar_select %p5766_p1, 1, 0 }
   0xc   : > { %p5776_p4 = por %p5766_p1, %p56_p0  ;;  %p5781_p6 = por %p227_p3, %p56_p0 }
   0xd   : > { %p234_p7 = scmp.lt.s32.totalorder %s5679_s29, 3  ;;  %s5681_s14 = smov [#allocation6]  }
   0xe   : > { %s8651_s11 = scalar_select %p5776_p4, 1, 0 }
   0xf   : > { %s8652_s12 = scalar_select %p5781_p6, 1, 0 }
  0x10   : > { %p5786_p8 = pnand %p4290_p5, %p234_p7  ;;  %s249_s15 = sshll.u32 %s5681_s14, 4  ;;  %s5790_s15 = int_to_ptr.vmem [resolvable:$true] %s249_s15 }
  0x11   : > { %8653 = sst [smem:[#allocation14_spill]] %s8652_s12  ;;  %s5682_s17 = smov [#allocation8]  }
  0x12   : > { %p5381_p9 = pneg %p5786_p8  ;;  %s273_s18 = sshll.u32 %s5682_s17, 4  ;;  %s5801_s18 = int_to_ptr.vmem [resolvable:$true] %s273_s18 }
  0x13   : > { %s5507_s21 = scalar_lea.hbm %s8262_s1, 4096 }
  0x14   : > { %p5797_p11 = pnand %p5381_p9, %p5766_p1  ;;  %p5508_p12 = scmp.ne.s32.totalorder %s8262_s1, %s5507_s21 }
  0x15   : > { %p5514_p5 = scmp.lt.u32.totalorder %s5507_s21, %s8262_s1 }
  0x16   : > { %p5509_p13 = pneg %p5797_p11 }
  0x18   : > { %p5510_p0 = pnand %p5509_p13, %p5508_p12 }
  0x1a   : > { %p5511_p3 = pneg %p5510_p0 }
  0x1c   : > { %p5516_p7 = pnand %p5514_p5, %p5511_p3 }
  0x1e   : > { %5519 = shalt.err (!%p5516_p7)
}
  0x1f   : > { %s5520_s14 = scalar_lea.vmem %s5790_s15, 4096  ;;  %p5528_p1 = scmp.lt.s32.totalorder %s5790_s15, %s5790_s15 }
  0x20   : > { %p5521_p9 = scmp.ne.s32.totalorder %s5790_s15, %s5520_s14  ;;  %p5529_p12 = scmp.lt.s32.totalorder %s5520_s14, %s5520_s14 }
  0x22   : > { %p5523_p10 = pnand %p5521_p9, %p5509_p13  ;;  %p5530_p0 = por %p5529_p12, %p5528_p1 }
  0x24   : > { %p5524_p6 = pneg %p5523_p10 }
  0x26   : > { %p5531_p4 = pnand %p5530_p0, %p5524_p6 }
  0x28   : > { %5534 = shalt.err (!%p5531_p4)
}
  0x29   : > { %s5683_s17 = smov 256   ;;  %s5684_s19 = smov 16  }
  0x2a   : > { %5384 = dma.hbm_to_vmem [thread:$0]  (!%p5797_p11), %s8262_s1, 4096, %s5790_s15, [#allocation7], %s5683_s17, %s5683_s17, %s5684_s19  }
  0x2b   : > { %s5535_s30 = scalar_lea.hbm %s8264_s3, 4096 }
  0x2c   : > { %p5536_p1 = scmp.ne.s32.totalorder %s8264_s3, %s5535_s30  ;;  %p5542_p10 = scmp.lt.u32.totalorder %s5535_s30, %s8264_s3 }
  0x2e   : > { %p5538_p4 = pnand %p5536_p1, %p5509_p13 }
  0x30   : > { %p5539_p6 = pneg %p5538_p4 }
  0x32   : > { %p5544_p3 = pnand %p5542_p10, %p5539_p6 }
  0x34   : > { %5547 = shalt.err (!%p5544_p3)
}
  0x35   : > { %s5548_s15 = scalar_lea.vmem %s5801_s18, 4096  ;;  %p5556_p12 = scmp.lt.s32.totalorder %s5801_s18, %s5801_s18 }
  0x36   : > { %p5549_p5 = scmp.ne.s32.totalorder %s5801_s18, %s5548_s15  ;;  %p5557_p0 = scmp.lt.s32.totalorder %s5548_s15, %s5548_s15 }
  0x38   : > { %p5551_p7 = pnand %p5549_p5, %p5509_p13  ;;  %p5558_p1 = por %p5557_p0, %p5556_p12 }
  0x3a   : > { %p5552_p9 = pneg %p5551_p7 }
  0x3c   : > { %p5559_p4 = pnand %p5558_p1, %p5552_p9 }
  0x3e   : > { %5562 = shalt.err (!%p5559_p4)
}
  0x3f   : > { %s8274_s24 = smov 128   ;;  %s5686_s12 = smov 8  }
  0x40   : > { %5387 = dma.hbm_to_vmem [thread:$0]  (!%p5797_p11), %s8264_s3, 4096, %s5801_s18, [#allocation7], %s8274_s24, %s8274_s24, %s5686_s12  }
  0x41   : > { %s36_s20 = sadd.s32 1, %s5675_s28  ;;  %s43_s21 = sadd.s32 1, %s5667_s26 }
  0x42   : > { %p38_p13 = scmp.ge.s32.totalorder %s36_s20, 2  ;;  %p50_p6 = scmp.ne.s32.totalorder %s5667_s26, %s5663_s25 }
  0x43   : > { %p51_p10 = scmp.eq.s32.totalorder %s5679_s29, 0  ;;  %p5398_p3 = scmp.lt.s32.totalorder %s5679_s29, 2 }
  0x44   : > { %s9140_s20 = smov (%p38_p13, %s36_s20), 0  ;;  %p5868_p7 = por %p5770_p2, %p50_p6 }
  0x45   : > { %p52_p5 = por %p51_p10, %p50_p6  ;;  %s40_s22 = ssub.s32 %s5675_s28, %s9140_s20 }
  0x46   : > { %s8656_s16 = scalar_select %p5868_p7, 1, 0 }
  0x47   : > { %s296_s23 = sand.u32 1, %s5667_s26   ;;  %p41_p9 = scmp.eq.s32.totalorder %s40_s22, 0 }
  0x48   : > { %s4295_s18 = sshll.u32 %s296_s23, 7  ;;  %s4311_s30 = sshll.u32 %s5675_s28, 11 }
  0x49   : > { %s5877_s8 = scalar_select %p41_p9, %s5667_s26, %s43_s21  }
  0x4a   : > { %s5882_s17 = scalar_lea.hbm %s8261_s0, %s4311_s30  ;;  %s300_s10 = scalar_lea.vmem [#allocation3], %s4295_s18 }
  0x4b   : > { %s307_s19 = sshll.u32 %s300_s10, 4  ;;  %p5886_p2 = pnand %p5398_p3, %p52_p5  ;;  %s5890_s19 = int_to_ptr.vmem [resolvable:$true] %s307_s19 }
  0x4c   : > { %s5892_s21 = scalar_lea.sflag [#allocation4], %s296_s23  ;;  %s5563_s22 = scalar_lea.hbm %s5882_s17, 2048 }
  0x4d   : > { %p5564_p11 = scmp.ne.s32.totalorder %s5882_s17, %s5563_s22  ;;  %p5565_p12 = pneg %p5886_p2 }
  0x4e   : > { %s5568_s14 = scalar_lea.hbm %s8261_s0, 4096  ;;  %p5569_p4 = scmp.lt.u32.totalorder %s5882_s17, %s8261_s0 }
  0x4f   : > { %p5566_p0 = pnand %p5565_p12, %p5564_p11  ;;  %p5570_p13 = scmp.lt.u32.totalorder %s5568_s14, %s5563_s22 }
  0x50   : > { %p5572_p10 = scmp.lt.u32.totalorder %s5563_s22, %s5882_s17 }
  0x51   : > { %p5567_p1 = pneg %p5566_p0  ;;  %p5571_p6 = por %p5570_p13, %p5569_p4 }
  0x53   : > { %p5573_p3 = por %p5572_p10, %p5571_p6 }
  0x55   : > { %p5574_p5 = pnand %p5573_p3, %p5567_p1 }
  0x57   : > { %5577 = shalt.err (!%p5574_p5)
}
  0x58   : > { %s5578_s23 = scalar_lea.vmem %s5890_s19, 2048  ;;  %s5687_s18 = smov [#allocation3]  }
  0x59   : > { %p5579_p9 = scmp.ne.s32.totalorder %s5890_s19, %s5578_s23  ;;  %s5583_s30 = sshll.u32 %s5687_s18, 4  ;;  %s5584_s30 = int_to_ptr.vmem [resolvable:$false] %s5583_s30 }
  0x5a   : > { %s5585_s15 = scalar_lea.vmem %s5584_s30, 4096  ;;  %p5586_p7 = scmp.lt.s32.totalorder %s5890_s19, %s5584_s30 }
  0x5b   : > { %p5581_p11 = pnand %p5579_p9, %p5565_p12  ;;  %p5587_p4 = scmp.lt.s32.totalorder %s5585_s15, %s5578_s23 }
  0x5d   : > { %p5582_p0 = pneg %p5581_p11  ;;  %p5588_p13 = por %p5587_p4, %p5586_p7 }
  0x5f   : > { %p5589_p6 = pnand %p5588_p13, %p5582_p0 }
  0x61   : > { %5592 = shalt.err (!%p5589_p6)
}
  0x62   : > { %s8658_s22 = smov 128   ;;  %319 = sbr.rel (%p5786_p8) target bundleno = 1625 (0x659), region = 48 }
  0x63   : > { %5391 = dma.hbm_to_vmem [thread:$0]  (!%p5886_p2), %s5882_s17, 2048, %s5890_s19, %s5892_s21, %s8658_s22, %s8658_s22, %s5686_s12  }
  0x69   : > { %s5926_s14 = sand.u32 1, %s5663_s25   ;;  %p8659_p7 = scmp.ne.s32.totalorder %s8651_s11, 0 }
  0x6a   : > { %s4299_s10 = sshll.u32 %s5926_s14, 7  ;;  %s322_s23 = scalar_lea.sflag [#allocation4], %s5926_s14 }
  0x6b   : > { %s5932_s24 = scalar_lea.vmem [#allocation3], %s4299_s10 }
  0x6c   : > { %5646 = dma.done.wait (%p8659_p7), %s322_s23, 2048  }
  0x6d   : > { %5648 = vsyncadd (%p8659_p7), %s322_s23, 4294965248  ;;  %p8660_p2 = scmp.ne.s32.totalorder %s8649_s9, 0 }
  0x6f   : > { %5650 = dma.done.wait (%p8660_p2), [#allocation7], 8192  }
  0x70   : > { %5652 = vsyncadd (%p8660_p2), [#allocation7], 4294959104  ;;  %v8277_v0 = vmov 0.0   ;;  %v414_v1 = vld [vmem:[#allocation6 + $0x8] sm:$0xff]  ;;  %v416_v2 = vld [vmem:[#allocation6 + $0x18] sm:$0xff]  ;;  %s8143_s30 = scalar_lea.vmem [#allocation9], %s4299_s10 }
  0x71   : > { %553 = vmatprep.mubr.f32.mxu0 %v8277_v0  ;;  %v413_v3 = vld [vmem:[#allocation6] sm:$0xff]  ;;  %v457_v4 = vand.u32 4294901760, %v414_v1  ;;  %v461_v5 = vand.u32 4294901760, %v416_v2  ;;  %v415_v6 = vld [vmem:[#allocation6 + $0x10] sm:$0xff]  ;;  %v418_v8 = vld [vmem:[#allocation6 + $0x28] sm:$0xff]  ;;  %s4312_s15 = sshll.u32 %s5671_s27, 11 }
  0x72   : > { %v459_v7 = vand.u32 4294901760, %v413_v3  ;;  %v420_v9 = vld [vmem:[#allocation6 + $0x38] sm:$0xff]  ;;  %v463_v10 = vand.u32 4294901760, %v415_v6  ;;  %v465_v11 = vand.u32 4294901760, %v418_v8  ;;  %v417_v13 = vld [vmem:[#allocation6 + $0x20] sm:$0xff]  ;;  %v419_v14 = vld [vmem:[#allocation6 + $0x30] sm:$0xff] }
  0x73   : > { %v469_v12 = vand.u32 4294901760, %v420_v9  ;;  %v422_v15 = vld [vmem:[#allocation6 + $0x48] sm:$0xff]  ;;  %v5943_v16 = vpack.c.bf16 %v461_v5, %v457_v4  ;;  %v424_v17 = vld [vmem:[#allocation6 + $0x58] sm:$0xff]  ;;  %v421_v18 = vld [vmem:[#allocation6 + $0x40] sm:$0xff]  ;;  %v467_v23 = vand.u32 4294901760, %v417_v13  ;;  %v471_v24 = vand.u32 4294901760, %v419_v14 }
  0x74   : > { %v423_v19 = vld [vmem:[#allocation6 + $0x50] sm:$0xff]  ;;  %v5945_v20 = vpack.c.bf16 %v463_v10, %v459_v7  ;;  %v426_v22 = vld [vmem:[#allocation6 + $0x68] sm:$0xff]  ;;  %v473_v25 = vand.u32 4294901760, %v422_v15  ;;  %v477_v26 = vand.u32 4294901760, %v424_v17  ;;  %v475_v27 = vand.u32 4294901760, %v421_v18  ;;  %v428_v29 = vld [vmem:[#allocation6 + $0x78] sm:$0xff] }
  0x75   : > { %8661 = vst [vmem:[#allocation15_spill] sm:$0xff] %v5943_v16  ;;  %v5947_v21 = vpack.c.bf16 %v469_v12, %v465_v11  ;;  %4794 = vmatprep.subr.bf16.mxu0 %v5943_v16  ;;  %v479_v28 = vand.u32 4294901760, %v423_v19  ;;  %v5952_v30 = vpack.c.bf16 %v471_v24, %v467_v23  ;;  %v481_v31 = vand.u32 4294901760, %v426_v22  ;;  %v425_v32 = vld [vmem:[#allocation6 + $0x60] sm:$0xff]  ;;  %v427_v33 = vld [vmem:[#allocation6 + $0x70] sm:$0xff]  ;;  %v430_v35 = vld [vmem:[#allocation6 + $0x88] sm:$0xff] }
  0x76   : > { %8662 = vst [vmem:[#allocation16_spill] sm:$0xff] %v5945_v20  ;;  %4796 = vmatpush1.bf16.msra.mxu0 %v5945_v20  ;;  %v5954_v34 = vpack.c.bf16 %v477_v26, %v473_v25  ;;  %v432_v36 = vld [vmem:[#allocation6 + $0x98] sm:$0xff]  ;;  %v485_v37 = vand.u32 4294901760, %v428_v29  ;;  %v5956_v38 = vsub.f32 %v414_v1, %v457_v4  ;;  %v483_v40 = vand.u32 4294901760, %v425_v32  ;;  %v429_v46 = vld [vmem:[#allocation6 + $0x80] sm:$0xff]  ;;  %v431_v47 = vld [vmem:[#allocation6 + $0x90] sm:$0xff] }
  0x77   : > { %8663 = vst [vmem:[#allocation17_spill] sm:$0xff] %v5947_v21  ;;  %4798 = vmatprep.subr.bf16.mxu0 %v5947_v21  ;;  %8664 = vst [vmem:[#allocation18_spill] sm:$0xff] %v5952_v30  ;;  %v5959_v39 = vpack.c.bf16 %v479_v28, %v475_v27  ;;  %v487_v41 = vand.u32 4294901760, %v427_v33  ;;  %v5961_v42 = vsub.f32 %v416_v2, %v461_v5  ;;  %v489_v44 = vand.u32 4294901760, %v430_v35  ;;  %v434_v52 = vld [vmem:[#allocation6 + $0xa8] sm:$0xff]  ;;  %v436_v53 = vld [vmem:[#allocation6 + $0xb8] sm:$0xff] }
  0x78   : > { %8665 = vst [vmem:[#allocation19_spill] sm:$0xff] %v5954_v34  ;;  %v5964_v43 = vpack.c.bf16 %v485_v37, %v481_v31  ;;  %v493_v45 = vand.u32 4294901760, %v432_v36  ;;  %v5966_v48 = vsub.f32 %v413_v3, %v459_v7  ;;  %v5968_v49 = vsub.f32 %v415_v6, %v463_v10  ;;  %v5982_v58 = vld [vmem:[#allocation6 + $0xa0] sm:$0xff]  ;;  %v5989_v63 = vld [vmem:[#allocation6 + $0xb0] sm:$0xff]  ;;  %v5991_v1 = vld [vmem:[#allocation6 + $0xc8] sm:$0xff]  ;;  %s4172_s22 = sshll.u32 %s8143_s30, 4  ;;  %s8210_s22 = int_to_ptr.vmem [resolvable:$true] %s4172_s22 }
  0x79   : > { %8666 = vst [vmem:[#allocation20_spill] sm:$0xff] %v5959_v39  ;;  %v5970_v50 = vsub.f32 %v418_v8, %v465_v11  ;;  %v5972_v51 = vsub.f32 %v420_v9, %v469_v12  ;;  %v5974_v54 = vsub.f32 %v417_v13, %v467_v23  ;;  %v5976_v55 = vsub.f32 %v419_v14, %v471_v24  ;;  %v5993_v2 = vld [vmem:[#allocation6 + $0xd8] sm:$0xff]  ;;  %v6008_v11 = vld [vmem:[#allocation6 + $0xc0] sm:$0xff]  ;;  %v6010_v12 = vld [vmem:[#allocation6 + $0xd0] sm:$0xff]  ;;  %s4159_s9 = scalar_lea.sflag [#allocation5], %s5926_s14  ;;  %s5593_s11 = scalar_lea.vmem %s8210_s22, 2048 }
  0x7a   : > { %4800 = vmatpush1.bf16.msra.mxu0 %v5952_v30  ;;  %8667 = vst [vmem:[#allocation21_spill] sm:$0xff] %v5964_v43  ;;  %8668 = vst [vmem:[#allocation22_spill] sm:$0xff] %v5966_v48  ;;  %v5978_v56 = vsub.f32 %v422_v15, %v473_v25  ;;  %v5980_v57 = vsub.f32 %v424_v17, %v477_v26  ;;  %v5985_v59 = vsub.f32 %v421_v18, %v475_v27  ;;  %v397_v18 = vld [vmem:[%s5932_s24] sm:$0xff]  ;;  %v402_v21 = vld [vmem:[%s5932_s24 + $0x28] sm:$0xff]  ;;  %p5594_p8 = scmp.ne.s32.totalorder %s8210_s22, %s5593_s11  ;;  %p9129_p12 = scmp.ne.s32.totalorder %s8656_s16, 0 }
  0x7b   : > { %4802 = vmatprep.subr.bf16.mxu0 %v5954_v34  ;;  %8669 = vst [vmem:[#allocation23_spill] sm:$0xff] %v5968_v49  ;;  %v5987_v60 = vpack.c.bf16 %v487_v41, %v483_v40  ;;  %v491_v61 = vand.u32 4294901760, %v429_v46  ;;  %v495_v62 = vand.u32 4294901760, %v431_v47  ;;  %v5995_v3 = vsub.f32 %v423_v19, %v479_v28  ;;  %v403_v30 = vld [vmem:[%s5932_s24 + $0x30] sm:$0xff]  ;;  %s5689_s27 = smov [#allocation9]  }
  0x7c   : > { %v5998_v4 = vpack.c.bf16 %v493_v45, %v489_v44  ;;  %v497_v5 = vand.u32 4294901760, %v434_v52  ;;  %v501_v6 = vand.u32 4294901760, %v436_v53  ;;  %v6000_v7 = vsub.f32 %v426_v22, %v481_v31  ;;  %v6035_v31 = vld [vmem:[#allocation6 + $0xf8] sm:$0xff]  ;;  %p5595_p1 = pnand %p5594_p8, %p9129_p12  ;;  %s5597_s13 = sshll.u32 %s5689_s27, 4  ;;  %s5598_s13 = int_to_ptr.vmem [resolvable:$false] %s5597_s13 }
  0x7d   : > { %8670 = vst [vmem:[#allocation24_spill] sm:$0xff] %v5987_v60  ;;  %v6002_v8 = vsub.f32 %v428_v29, %v485_v37  ;;  %v6004_v9 = vsub.f32 %v425_v32, %v483_v40  ;;  %v6006_v10 = vsub.f32 %v427_v33, %v487_v41  ;;  %v8283_v13 = vand.u32 4294901760, %v5982_v58  ;;  %v6033_v29 = vld [vmem:[#allocation6 + $0xe8] sm:$0xff]  ;;  %s5599_s12 = scalar_lea.vmem %s5598_s13, 4096  ;;  %p5600_p3 = scmp.lt.s32.totalorder %s8210_s22, %s5598_s13 }
  0x7e   : > { %4804 = vmatpush1.bf16.msra.mxu0 %v5959_v39  ;;  %8671 = vst [vmem:[#allocation25_spill] sm:$0xff] %v5998_v4  ;;  %v8281_v14 = vand.u32 4294901760, %v5989_v63  ;;  %v8279_v15 = vand.u32 4294901760, %v5991_v1  ;;  %v8276_v17 = vand.u32 4294901760, %v5993_v2  ;;  %v6018_v19 = vsub.f32 %v430_v35, %v489_v44  ;;  %v398_v37 = vld [vmem:[%s5932_s24 + $0x8] sm:$0xff]  ;;  %p5596_p10 = pneg %p5595_p1  ;;  %p5601_p5 = scmp.lt.s32.totalorder %s5599_s12, %s5593_s11 }
  0x7f   : > { %4806 = vmatprep.subr.bf16.mxu0 %v5964_v43  ;;  %8672 = vst [vmem:[#allocation26_spill] sm:$0xff] %v6002_v8  ;;  %8673 = vst [vmem:[#allocation27_spill] sm:$0xff] %v6006_v10  ;;  %v6020_v22 = vsub.f32 %v432_v36, %v493_v45  ;;  %v6022_v23 = vpack.c.bf16 %v495_v62, %v491_v61  ;;  %v6024_v24 = vsub.f32 %v429_v46, %v491_v61  ;;  %v399_v46 = vld [vmem:[%s5932_s24 + $0x10] sm:$0xff] }
  0x80   : > { %8674 = vst [vmem:[#allocation28_spill] sm:$0xff] %v6018_v19  ;;  %v6027_v25 = vsub.f32 %v431_v47, %v495_v62  ;;  %v6029_v26 = vpack.c.bf16 %v501_v6, %v497_v5  ;;  %v8286_v27 = vand.u32 4294901760, %v6008_v11  ;;  %v8285_v28 = vand.u32 4294901760, %v6010_v12  ;;  %v6065_v61 = vld [vmem:[#allocation6 + $0xf0] sm:$0xff]  ;;  %p5602_p9 = por %p5601_p5, %p5600_p3 }
  0x81   : > { %8675 = vst [vmem:[#allocation29_spill] sm:$0xff] %v6020_v22  ;;  %8676 = vst [vmem:[#allocation30_spill] sm:$0xff] %v6022_v23  ;;  %v6037_v32 = vand.u32 4294901760, %v397_v18  ;;  %v8280_v33 = vand.u32 4294901760, %v5956_v38  ;;  %v8282_v35 = vand.u32 4294901760, %v5961_v42  ;;  %v8284_v36 = vand.u32 4294901760, %v5966_v48 }
  0x82   : > { %4808 = vmatpush1.bf16.msra.mxu0 %v5987_v60  ;;  %8677 = vst [vmem:[#allocation31_spill] sm:$0xff] %v6029_v26  ;;  %v6043_v40 = vsub.f32 %v434_v52, %v497_v5  ;;  %v6045_v41 = vsub.f32 %v436_v53, %v501_v6  ;;  %v6051_v44 = vpack.c.bf16 %v8281_v14, %v8283_v13  ;;  %v6063_v53 = vld [vmem:[#allocation6 + $0xe0] sm:$0xff]  ;;  %v8289_v0 = vand.u32 4294901760, %v5968_v49  ;;  %v400_v60 = vld [vmem:[%s5932_s24 + $0x18] sm:$0xff]  ;;  %p5603_p11 = pnand %p5602_p9, %p5596_p10 }
  0x83   : > { %4810 = vmatprep.subr.bf16.mxu0 %v5998_v4  ;;  %v6057_v45 = vpack.c.bf16 %v8276_v17, %v8279_v15  ;;  %v6068_v62 = vsub.f32 %v397_v18, %v6037_v32  ;;  %v733_v5 = vsub.f32 %v5956_v38, %v8280_v33  ;;  %v745_v6 = vsub.f32 %v5961_v42, %v8282_v35 }
  0x84   : > { %8678 = vst [vmem:[#allocation32_spill] sm:$0xff] %v6045_v41  ;;  %8679 = vst [vmem:[#allocation33_spill] sm:$0xff] %v6051_v44  ;;  %v739_v17 = vsub.f32 %v5966_v48, %v8284_v36  ;;  %v6081_v15 = vand.u32 4294901760, %v398_v37  ;;  %v6087_v18 = vpack.c.bf16 %v8285_v28, %v8286_v27  ;;  %v6090_v14 = vand.u32 4294901760, %v399_v46 }
  0x85   : > { %8680 = vst [vmem:[#allocation34_spill] sm:$0xff] %v6057_v45  ;;  %8681 = vst [vmem:[#allocation35_spill] sm:$0xff] %v6068_v62  ;;  %v751_v52 = vsub.f32 %v5968_v49, %v8289_v0  ;;  %v8684_v28 = vand.u32 4294901760, %v6033_v29  ;;  %v8685_v27 = vand.u32 4294901760, %v6035_v31  ;;  %v734_v35 = vand.u32 4294901760, %v733_v5 }
  0x86   : > { %4812 = vmatpush1.bf16.msra.mxu0 %v6022_v23  ;;  %8682 = vst [vmem:[#allocation36_spill] sm:$0xff] %v6087_v18  ;;  %v6099_v47 = vsub.f32 %v398_v37, %v6081_v15  ;;  %v8687_v13 = vand.u32 4294901760, %v5970_v50  ;;  %v8688_v37 = vand.u32 4294901760, %v6068_v62  ;;  %v740_v23 = vand.u32 4294901760, %v739_v17 }
  0x87   : > { %4814 = vmatprep.subr.bf16.mxu0 %v6029_v26  ;;  %v6106_v33 = vpack.c.bf16 %v8685_v27, %v8684_v28  ;;  %v8302_v26 = vand.u32 4294901760, %v5972_v51  ;;  %v752_v27 = vand.u32 4294901760, %v751_v52  ;;  %v6120_v5 = vsub.f32 %v399_v46, %v6090_v14 }
  0x88   : > { %8683 = vst [vmem:[#allocation37_spill] sm:$0xff] %v6099_v47  ;;  %v757_v36 = vsub.f32 %v5970_v50, %v8687_v13  ;;  %v557_v0 = vsub.f32 %v6068_v62, %v8688_v37  ;;  %v8690_v43 = vand.u32 4294901760, %v5982_v58  ;;  %v8691_v17 = vand.u32 4294901760, %v5989_v63 }
  0x89   : > { %8686 = vst [vmem:[#allocation38_spill] sm:$0xff] %v6106_v33  ;;  %8689 = vst [vmem:[#allocation39_spill] sm:$0xff] %v6120_v5  ;;  %v769_v13 = vsub.f32 %v5972_v51, %v8302_v26  ;;  %v8693_v52 = vand.u32 4294901760, %v6063_v53  ;;  %v8694_v46 = vand.u32 4294901760, %v6065_v61  ;;  %v8313_v4 = vand.u32 4294901760, %v5976_v55 }
  0x8a   : > { %4816 = vmatpush1.bf16.msra.mxu0 %v6051_v44  ;;  %v746_v44 = vand.u32 4294901760, %v745_v6  ;;  %v6129_v37 = vsub.f32 %v5982_v58, %v8690_v43  ;;  %v6134_v6 = vsub.f32 %v5989_v63, %v8691_v17  ;;  %v758_v26 = vand.u32 4294901760, %v757_v36 }
  0x8b   : > { %4818 = vmatprep.subr.bf16.mxu0 %v6057_v45  ;;  %v401_v45 = vld [vmem:[%s5932_s24 + $0x20] sm:$0xff]  ;;  %v6140_v28 = vpack.c.bf16 %v8694_v46, %v8693_v52  ;;  %v770_v39 = vand.u32 4294901760, %v769_v13  ;;  %v8696_v43 = vand.u32 4294901760, %v5974_v54  ;;  %v6147_v34 = vand.u32 4294901760, %v400_v60 }
  0x8c   : > { %8692 = vst [vmem:[#allocation40_spill] sm:$0xff] %v6134_v6  ;;  %v4825_v63 = vpack.c.bf16 %v746_v44, %v734_v35  ;;  %v775_v17 = vsub.f32 %v5976_v55, %v8313_v4  ;;  %v6153_v52 = vand.u32 4294901760, %v401_v45  ;;  %v8318_v36 = vand.u32 4294901760, %v5978_v56 }
  0x8d   : > { %8695 = vst [vmem:[#allocation41_spill] sm:$0xff] %v6140_v28  ;;  %v763_v58 = vsub.f32 %v5974_v54, %v8696_v43  ;;  %v558_v13 = vand.u32 4294901760, %v557_v0  ;;  %v4827_v46 = vpack.c.bf16 %v752_v27, %v740_v23  ;;  %v8323_v44 = vand.u32 4294901760, %v5980_v57 }
  0x8e   : > { %4820 = vmatpush1.bf16.msra.mxu0 %v6087_v18  ;;  %8697 = vst [vmem:[#allocation42_spill] sm:$0xff] %v6153_v52  ;;  %v8698_v18 = vand.u32 4294901760, %v6099_v47  ;;  %v781_v35 = vsub.f32 %v5978_v56, %v8318_v36  ;;  %v8324_v4 = vand.u32 4294901760, %v5985_v59  ;;  %v4829_v0 = vpack.c.bf16 %v770_v39, %v758_v26 }
  0x8f   : > { %4822 = vmatprep.subr.bf16.mxu0 %v6106_v33  ;;  %v6161_v33 = vsub.f32 %v400_v60, %v6147_v34  ;;  %v764_v23 = vand.u32 4294901760, %v763_v58  ;;  %v776_v27 = vand.u32 4294901760, %v775_v17  ;;  %v6173_v60 = vsub.f32 %v401_v45, %v6153_v52 }
  0x90   : > { %v568_v43 = vsub.f32 %v6099_v47, %v8698_v18  ;;  %v8327_v18 = vand.u32 4294901760, %v5995_v3  ;;  %v782_v47 = vand.u32 4294901760, %v781_v35  ;;  %v793_v36 = vsub.f32 %v5980_v57, %v8323_v44 }
  0x91   : > { %8699 = vst [vmem:[#allocation43_spill] sm:$0xff] %v6161_v33  ;;  %8700 = vst [vmem:[#allocation44_spill] sm:$0xff] %v6173_v60  ;;  %v787_v20 = vsub.f32 %v5985_v59, %v8324_v4  ;;  %v8701_v39 = vand.u32 4294901760, %v6120_v5  ;;  %v6187_v45 = vand.u32 4294901760, %v402_v21  ;;  %v6190_v35 = vand.u32 4294901760, %v403_v30 }
  0x92   : > { %4824 = vmatpush1.bf16.msra.mxu0 %v6140_v28  ;;  %v569_v28 = vand.u32 4294901760, %v568_v43  ;;  %v799_v58 = vsub.f32 %v5995_v3, %v8327_v18  ;;  %v794_v17 = vand.u32 4294901760, %v793_v36  ;;  %v8337_v44 = vand.u32 4294901760, %v6000_v7 }
  0x93   : > { %4826 = vmatprep.subr.bf16.mxu0 %v4825_v63  ;;  %v579_v26 = vsub.f32 %v6120_v5, %v8701_v39  ;;  %8702 = vst [vmem:[#allocation45_spill] sm:$0xff] %v6190_v35  ;;  %v8703_v43 = vand.u32 4294901760, %v5991_v1  ;;  %v8704_v39 = vmov 0.0   ;;  %v4831_v5 = vpack.c.bf16 %v776_v27, %v764_v23 }
  0x94   : > { %v788_v18 = vand.u32 4294901760, %v787_v20  ;;  %v800_v62 = vand.u32 4294901760, %v799_v58  ;;  %v4833_v63 = vpack.c.bf16 %v794_v17, %v782_v47  ;;  %v805_v36 = vsub.f32 %v6000_v7, %v8337_v44 }
  0x95   : > { %559 = vmatmul.mubr.f32.vlgmr.msra.gmra.mrb[0].mxu0 %v558_v13  ;;  %v6196_v4 = vsub.f32 %v5991_v1, %v8703_v43  ;;  %v8340_v13 = vand.u32 4294901760, %v6173_v60  ;;  %v8336_v16 = vand.u32 4294901760, %v6002_v8  ;;  %v580_v52 = vand.u32 4294901760, %v579_v26 }
  0x96   : > { %4828 = vmatpush1.bf16.msra.mxu0 %v4827_v46  ;;  %564 = vmatprep.mubr.f32.mxu0 %v8704_v39  ;;  %v6205_v1 = vsub.f32 %v402_v21, %v6187_v45  ;;  %v8334_v46 = vand.u32 4294901760, %v6004_v9  ;;  %v8335_v20 = vand.u32 4294901760, %v6006_v10  ;;  %v6213_v23 = vsub.f32 %v403_v30, %v6190_v35  ;;  %v404_v30 = vld [vmem:[%s5932_s24 + $0x38] sm:$0xff] }
  0x97   : > { %4830 = vmatprep.subr.bf16.mxu0 %v4829_v0  ;;  %v8706_v0 = vand.u32 4294901760, %v6161_v33  ;;  %v806_v27 = vand.u32 4294901760, %v805_v36  ;;  %v817_v26 = vsub.f32 %v6002_v8, %v8336_v16  ;;  %v4835_v21 = vpack.c.bf16 %v800_v62, %v788_v18 }
  0x98   : > { %8705 = vst [vmem:[#allocation46_spill] sm:$0xff] %v6205_v1  ;;  %8707 = vst [vmem:[#allocation47_spill] sm:$0xff] %v6213_v23  ;;  %v823_v58 = vsub.f32 %v6006_v10, %v8335_v20  ;;  %v8708_v17 = vand.u32 4294901760, %v5993_v2  ;;  %v8344_v18 = vand.u32 4294901760, %v6018_v19  ;;  %v8342_v36 = vand.u32 4294901760, %v6205_v1 }
  0x99   : > { %570 = vmatmul.mubr.f32.gmra.mrb[2].mxu0 %v569_v28  ;;  %v590_v47 = vsub.f32 %v6161_v33, %v8706_v0  ;;  %v811_v28 = vsub.f32 %v6004_v9, %v8334_v46  ;;  %v818_v62 = vand.u32 4294901760, %v817_v26  ;;  %v8341_v20 = vand.u32 4294901760, %v6020_v22 }
  0x9a   : > { %575 = vmatprep.mubr.f32.mxu0 %v8704_v39  ;;  %4832 = vmatpush1.bf16.msra.mxu0 %v4831_v5  ;;  %v6229_v43 = vsub.f32 %v5993_v2, %v8708_v17  ;;  %v601_v5 = vsub.f32 %v6173_v60, %v8340_v13  ;;  %v824_v46 = vand.u32 4294901760, %v823_v58  ;;  %v6237_v33 = vand.u32 4294901760, %v404_v30  ;;  %v405_v2 = vld [vmem:[%s5932_s24 + $0x40] sm:$0xff] }
  0x9b   : > { %4834 = vmatprep.subr.bf16.mxu0 %v4833_v63  ;;  %v812_v0 = vand.u32 4294901760, %v811_v28  ;;  %v591_v16 = vand.u32 4294901760, %v590_v47  ;;  %v4837_v44 = vpack.c.bf16 %v818_v62, %v806_v27  ;;  %v829_v17 = vsub.f32 %v6018_v19, %v8344_v18 }
  0x9c   : > { %8709 = vst [vmem:[#allocation48_spill] sm:$0xff] %v6229_v43  ;;  %8710 = vst [vmem:[#allocation49_spill] sm:$0xff] %v6237_v33  ;;  %v8350_v63 = vand.u32 4294901760, %v6213_v23  ;;  %v8343_v47 = vand.u32 4294901760, %v6024_v24  ;;  %v8711_v27 = vand.u32 4294901760, %v6008_v11  ;;  %v8713_v58 = vand.u32 4294901760, %v6010_v12 }
  0x9d   : > { %581 = vmatmul.mubr.f32.gmra.mrb[4].mxu0 %v580_v52  ;;  %v4839_v26 = vpack.c.bf16 %v824_v46, %v812_v0  ;;  %v841_v52 = vsub.f32 %v6020_v22, %v8341_v20  ;;  %v8345_v46 = vand.u32 4294901760, %v6027_v25  ;;  %v612_v0 = vsub.f32 %v6205_v1, %v8342_v36 }
  0x9e   : > { %586 = vmatprep.mubr.f32.mxu0 %v8704_v39  ;;  %4836 = vmatpush1.bf16.msra.mxu0 %v4835_v21  ;;  %v6252_v28 = vsub.f32 %v6008_v11, %v8711_v27  ;;  %v6257_v62 = vsub.f32 %v6010_v12, %v8713_v58  ;;  %v830_v21 = vand.u32 4294901760, %v829_v17  ;;  %v6263_v13 = vand.u32 4294901760, %v405_v2  ;;  %v406_v27 = vld [vmem:[%s5932_s24 + $0x48] sm:$0xff] }
  0x9f   : > { %4838 = vmatprep.subr.bf16.mxu0 %v4837_v44  ;;  %v842_v20 = vand.u32 4294901760, %v841_v52  ;;  %v835_v11 = vsub.f32 %v6024_v24, %v8343_v47  ;;  %v602_v12 = vand.u32 4294901760, %v601_v5  ;;  %v6270_v44 = vsub.f32 %v404_v30, %v6237_v33 }
  0xa0   : > { %8712 = vst [vmem:[#allocation50_spill] sm:$0xff] %v6252_v28  ;;  %8714 = vst [vmem:[#allocation51_spill] sm:$0xff] %v6257_v62  ;;  %v847_v17 = vsub.f32 %v6027_v25, %v8345_v46  ;;  %v8351_v58 = vand.u32 4294901760, %v6043_v40  ;;  %v8717_v36 = vand.u32 4294901760, %v6033_v29  ;;  %v6285_v18 = vand.u32 4294901760, %v406_v27  ;;  %v407_v46 = vld [vmem:[%s5932_s24 + $0x50] sm:$0xff] }
  0xa1   : > { %8715 = vst [vmem:[#allocation52_spill] sm:$0xff] %v6263_v13  ;;  %592 = vmatmul.mubr.f32.gmra.mrb[6].mxu0 %v591_v16  ;;  %8716 = vst [vmem:[#allocation53_spill] sm:$0xff] %v6270_v44  ;;  %v623_v16 = vsub.f32 %v6213_v23, %v8350_v63  ;;  %v4841_v30 = vpack.c.bf16 %v842_v20, %v830_v21  ;;  %v836_v5 = vand.u32 4294901760, %v835_v11  ;;  %v8360_v20 = vand.u32 4294901760, %v6134_v6 }
  0xa2   : > { %v6279_v52 = vsub.f32 %v6033_v29, %v8717_v36  ;;  %597 = vmatprep.mubr.f32.mxu0 %v8704_v39  ;;  %4840 = vmatpush1.bf16.msra.mxu0 %v4839_v26  ;;  %v848_v47 = vand.u32 4294901760, %v847_v17  ;;  %8718 = vst [vmem:[#allocation54_spill] sm:$0xff] %v6285_v18  ;;  %v853_v1 = vsub.f32 %v6043_v40, %v8351_v58  ;;  %v8352_v29 = vand.u32 4294901760, %v6045_v41  ;;  %v408_v58 = vld [vmem:[%s5932_s24 + $0x58] sm:$0xff] }
  0xa3   : > { %v613_v36 = vand.u32 4294901760, %v612_v0  ;;  %v6293_v60 = vsub.f32 %v405_v2, %v6263_v13  ;;  %4842 = vmatprep.subr.bf16.mxu0 %v4841_v30  ;;  %v8357_v26 = vand.u32 4294901760, %v6129_v37  ;;  %v8720_v0 = vand.u32 4294901760, %v6035_v31 }
  0xa4   : > { %v4843_v11 = vpack.c.bf16 %v848_v47, %v836_v5  ;;  %v854_v17 = vand.u32 4294901760, %v853_v1  ;;  %v865_v63 = vsub.f32 %v6045_v41, %v8352_v29  ;;  %v6308_v30 = vand.u32 4294901760, %v407_v46 }
  0xa5   : > { %8719 = vst [vmem:[#allocation55_spill] sm:$0xff] %v6293_v60  ;;  %603 = vmatmul.mubr.f32.gmra.mrb[8].mxu0 %v602_v12  ;;  %v6305_v2 = vsub.f32 %v6035_v31, %v8720_v0  ;;  %v859_v12 = vsub.f32 %v6129_v37, %v8357_v26  ;;  %v871_v1 = vsub.f32 %v6134_v6, %v8360_v20  ;;  %v624_v47 = vand.u32 4294901760, %v623_v16  ;;  %v409_v0 = vld [vmem:[%s5932_s24 + $0x60] sm:$0xff] }
  0xa6   : > { %608 = vmatprep.mubr.f32.mxu0 %v8704_v39  ;;  %8722 = vst [vmem:[#allocation57_spill] sm:$0xff] %v6308_v30  ;;  %4844 = vmatpush1.bf16.msra.mxu0 %v4843_v11  ;;  %v6317_v5 = vsub.f32 %v406_v27, %v6285_v18  ;;  %v866_v29 = vand.u32 4294901760, %v865_v63  ;;  %v8361_v31 = vand.u32 4294901760, %v6196_v4  ;;  %v6321_v13 = vand.u32 4294901760, %v408_v58 }
  0xa7   : > { %8721 = vst [vmem:[#allocation56_spill] sm:$0xff] %v6305_v2  ;;  %v860_v21 = vand.u32 4294901760, %v859_v12  ;;  %v872_v23 = vand.u32 4294901760, %v871_v1  ;;  %v8725_v26 = vand.u32 4294901760, %v6270_v44  ;;  %v8362_v63 = vand.u32 4294901760, %v6229_v43 }
  0xa8   : > { %8723 = vst [vmem:[#allocation58_spill] sm:$0xff] %v6317_v5  ;;  %8724 = vst [vmem:[#allocation59_spill] sm:$0xff] %v6321_v13  ;;  %v4845_v20 = vpack.c.bf16 %v866_v29, %v854_v17  ;;  %v877_v27 = vsub.f32 %v6196_v4, %v8361_v31  ;;  %v6332_v16 = vsub.f32 %v407_v46, %v6308_v30  ;;  %v8366_v12 = vand.u32 4294901760, %v6257_v62 }
  0xa9   : > { %614 = vmatmul.mubr.f32.gmra.mrb[10].mxu0 %v613_v36  ;;  %v634_v33 = vsub.f32 %v6270_v44, %v8725_v26  ;;  %v4847_v11 = vpack.c.bf16 %v872_v23, %v860_v21  ;;  %v8363_v36 = vand.u32 4294901760, %v6252_v28  ;;  %v8726_v26 = vand.u32 4294901760, %v6063_v53 }
  0xaa   : > { %619 = vmatprep.mubr.f32.mxu0 %v8704_v39  ;;  %4846 = vmatprep.subr.bf16.mxu0 %v4845_v20  ;;  %v878_v1 = vand.u32 4294901760, %v877_v27  ;;  %v889_v31 = vsub.f32 %v6229_v43, %v8362_v63  ;;  %v8727_v46 = vand.u32 4294901760, %v6065_v61  ;;  %v6351_v21 = vsub.f32 %v408_v58, %v6321_v13 }
  0xab   : > { %v6339_v29 = vsub.f32 %v6063_v53, %v8726_v26  ;;  %4848 = vmatpush1.bf16.msra.mxu0 %v4847_v11  ;;  %v883_v53 = vsub.f32 %v6252_v28, %v8363_v36  ;;  %v895_v20 = vsub.f32 %v6257_v62, %v8366_v12  ;;  %v635_v27 = vand.u32 4294901760, %v634_v33 }
  0xac   : > { %v6348_v23 = vsub.f32 %v6065_v61, %v8727_v46  ;;  %v8728_v26 = vand.u32 4294901760, %v6293_v60  ;;  %v890_v46 = vand.u32 4294901760, %v889_v31  ;;  %v8373_v11 = vand.u32 4294901760, %v6279_v52 }
  0xad   : > { %625 = vmatmul.mubr.f32.gmra.mrb[12].mxu0 %v624_v47  ;;  %v884_v63 = vand.u32 4294901760, %v883_v53  ;;  %v896_v17 = vand.u32 4294901760, %v895_v20  ;;  %v8371_v36 = vand.u32 4294901760, %v6305_v2  ;;  %v8729_v44 = vand.u32 4294901760, %v6317_v5 }
  0xae   : > { %v645_v61 = vsub.f32 %v6293_v60, %v8728_v26  ;;  %630 = vmatprep.mubr.f32.mxu0 %v8704_v39  ;;  %v6370_v33 = vand.u32 4294901760, %v409_v0  ;;  %v4849_v12 = vpack.c.bf16 %v890_v46, %v878_v1  ;;  %v901_v31 = vsub.f32 %v6279_v52, %v8373_v11 }
  0xaf   : > { %v656_v47 = vsub.f32 %v6317_v5, %v8729_v44  ;;  %v8377_v26 = vand.u32 4294901760, %v6351_v21  ;;  %v4851_v60 = vpack.c.bf16 %v896_v17, %v884_v63  ;;  %v913_v53 = vsub.f32 %v6305_v2, %v8371_v36  ;;  %v410_v63 = vld [vmem:[%s5932_s24 + $0x68] sm:$0xff] }
  0xb0   : > { %8730 = vst [vmem:[#allocation60_spill] sm:$0xff] %v6370_v33  ;;  %v8372_v20 = vand.u32 4294901760, %v6339_v29  ;;  %v646_v58 = vand.u32 4294901760, %v645_v61  ;;  %4850 = vmatprep.subr.bf16.mxu0 %v4849_v12  ;;  %v902_v44 = vand.u32 4294901760, %v901_v31  ;;  %v8374_v5 = vand.u32 4294901760, %v6348_v23 }
  0xb1   : > { %636 = vmatmul.mubr.f32.gmra.mrb[14].mxu0 %v635_v27  ;;  %v8731_v1 = vand.u32 4294901760, %v6332_v16  ;;  %v914_v17 = vand.u32 4294901760, %v913_v53  ;;  %v657_v27 = vand.u32 4294901760, %v656_v47  ;;  %v6390_v12 = vsub.f32 %v409_v0, %v6370_v33 }
  0xb2   : > { %641 = vmatprep.mubr.f32.mxu0 %v8704_v39  ;;  %4852 = vmatpush1.bf16.msra.mxu0 %v4851_v60  ;;  %v907_v36 = vsub.f32 %v6339_v29, %v8372_v20  ;;  %v919_v61 = vsub.f32 %v6348_v23, %v8374_v5  ;;  %v4859_v31 = vpack.c.bf16 %v5968_v49, %v5966_v48  ;;  %v6402_v47 = vand.u32 4294901760, %v410_v63  ;;  %v411_v48 = vld [vmem:[%s5932_s24 + $0x70] sm:$0xff] }
  0xb3   : > { %v667_v46 = vsub.f32 %v6332_v16, %v8731_v1  ;;  %v678_v60 = vsub.f32 %v6351_v21, %v8377_v26  ;;  %v4853_v53 = vpack.c.bf16 %v914_v17, %v902_v44  ;;  %v4861_v20 = vpack.c.bf16 %v5972_v51, %v5970_v50 }
  0xb4   : > { %v908_v1 = vand.u32 4294901760, %v907_v36  ;;  %8732 = vst [vmem:[#allocation61_spill] sm:$0xff] %v6402_v47  ;;  %v920_v0 = vand.u32 4294901760, %v919_v61  ;;  %v4863_v11 = vpack.c.bf16 %v5976_v55, %v5974_v54  ;;  %v4865_v5 = vpack.c.bf16 %v5980_v57, %v5978_v56 }
  0xb5   : > { %647 = vmatmul.mubr.f32.gmra.mrb[16].mxu0 %v646_v58  ;;  %v668_v49 = vand.u32 4294901760, %v667_v46  ;;  %4854 = vmatprep.subr.bf16.mxu0 %v4853_v53  ;;  %v4867_v36 = vpack.c.bf16 %v5995_v3, %v5985_v59  ;;  %v4869_v58 = vpack.c.bf16 %v6002_v8, %v6000_v7  ;;  %v4871_v44 = vpack.c.bf16 %v6006_v10, %v6004_v9 }
  0xb6   : > { %652 = vmatprep.mubr.f32.mxu0 %v8704_v39  ;;  %v4855_v17 = vpack.c.bf16 %v920_v0, %v908_v1  ;;  %v4857_v61 = vpack.c.bf16 %v5961_v42, %v5956_v38  ;;  %v4873_v26 = vpack.c.bf16 %v6020_v22, %v6018_v19  ;;  %v4875_v46 = vpack.c.bf16 %v6027_v25, %v6024_v24 }
  0xb7   : > { %v4877_v53 = vpack.c.bf16 %v6045_v41, %v6043_v40  ;;  %v4879_v8 = vpack.c.bf16 %v6134_v6, %v6129_v37  ;;  %v4881_v10 = vpack.c.bf16 %v6229_v43, %v6196_v4  ;;  %v4883_v1 = vpack.c.bf16 %v6257_v62, %v6252_v28  ;;  %v412_v6 = vld [vmem:[%s5932_s24 + $0x78] sm:$0xff] }
  0xb8   : > { %v8391_v0 = vand.u32 4294901760, %v6390_v12  ;;  %v6432_v22 = vsub.f32 %v410_v63, %v6402_v47  ;;  %v6434_v19 = vand.u32 4294901760, %v411_v48  ;;  %v4885_v41 = vpack.c.bf16 %v6305_v2, %v6279_v52  ;;  %4856 = vmatpush1.bf16.msra.mxu0 %v4855_v17 }
  0xb9   : > { %658 = vmatmul.mubr.f32.gmra.mrb[18].mxu0 %v657_v27  ;;  %4858 = vmatprep.subr.bf16.mxu0 %v4857_v61  ;;  %v679_v43 = vand.u32 4294901760, %v678_v60  ;;  %v6447_v28 = vand.u32 4294901760, %v412_v6 }
  0xba   : > { %8733 = vst [vmem:[#allocation62_spill] sm:$0xff] %v6434_v19  ;;  %663 = vmatprep.mubr.f32.mxu0 %v8704_v39  ;;  %v689_v27 = vsub.f32 %v6390_v12, %v8391_v0  ;;  %v8388_v62 = vand.u32 4294901760, %v6432_v22  ;;  %v6445_v63 = vsub.f32 %v411_v48, %v6434_v19  ;;  %v8758_v0 = vld [vmem:[#allocation36_spill] sm:$0xff] }
  0xbb   : > { %8734 = vst [vmem:[#allocation63_spill] sm:$0xff] %v6447_v28  ;;  %v6455_v17 = vsub.f32 %v412_v6, %v6447_v28 }
  0xbc   : > { %v690_v2 = vand.u32 4294901760, %v689_v27  ;;  %v700_v60 = vsub.f32 %v6432_v22, %v8388_v62 }
  0xbd   : > { %669 = vmatmul.mubr.f32.gmra.mrb[20].mxu0 %v668_v49  ;;  %v8390_v49 = vand.u32 4294901760, %v6445_v63 }
  0xbe   : > { %674 = vmatprep.mubr.f32.mxu0 %v8704_v39  ;;  %v701_v48 = vand.u32 4294901760, %v700_v60  ;;  %v8750_v60 = vld [vmem:[#allocation25_spill] sm:$0xff] }
  0xbf   : > { %v711_v61 = vsub.f32 %v6445_v63, %v8390_v49  ;;  %v8757_v49 = vld [vmem:[#allocation47_spill] sm:$0xff] }
  0xc1   : > { %680 = vmatmul.mubr.f32.gmra.mrb[22].mxu0 %v679_v43  ;;  %v8389_v43 = vand.u32 4294901760, %v6455_v17  ;;  %v712_v27 = vand.u32 4294901760, %v711_v61  ;;  %v8752_v61 = vld [vmem:[#allocation30_spill] sm:$0xff] }
  0xc2   : > { %685 = vmatprep.mubr.f32.mxu0 %v8704_v39 }
  0xc3   : > { %v722_v62 = vsub.f32 %v6455_v17, %v8389_v43  ;;  %v8756_v43 = vld [vmem:[#allocation34_spill] sm:$0xff] }
  0xc5   : > { %691 = vmatmul.mubr.f32.gmra.mrb[24].mxu0 %v690_v2  ;;  %v723_v6 = vand.u32 4294901760, %v722_v62  ;;  %v8735_v62 = vld [vmem:[#allocation42_spill] sm:$0xff]  ;;  %v4887_v2 = vpack.c.bf16 %v6348_v23, %v6339_v29 }
  0xc6   : > { %696 = vmatprep.mubr.f32.mxu0 %v8704_v39 }
  0xc9   : > { %702 = vmatmul.mubr.f32.gmra.mrb[26].mxu0 %v701_v48  ;;  %v8751_v48 = vld [vmem:[#allocation44_spill] sm:$0xff] }
  0xca   : > { %707 = vmatprep.mubr.f32.mxu0 %v8704_v39 }
  0xcd   : > { %713 = vmatmul.mubr.f32.gmra.mrb[28].mxu0 %v712_v27  ;;  %v8753_v27 = vld [vmem:[#allocation31_spill] sm:$0xff] }
  0xce   : > { %718 = vmatprep.mubr.f32.mxu0 %v8704_v39 }
  0xd1   : > { %724 = vmatmul.mubr.f32.gmra.mrb[30].mxu0 %v723_v6  ;;  %v8754_v6 = vld [vmem:[#allocation46_spill] sm:$0xff] }
  0xd2   : > { %954 = vmatprep.mubr.f32.mxu0 %v8704_v39 }
  0xd5   : > { %956 = vmatmul.mubr.f32.vlgmr.msra.gmra.mrb[0].mxu0 %v6037_v32 }
  0xd6   : > { %4860 = vmatpush1.bf16.msra.mxu0 %v4859_v31  ;;  %961 = vmatprep.mubr.f32.mxu0 %v8704_v39  ;;  %v8743_v31 = vld [vmem:[#allocation18_spill] sm:$0xff] }
  0xd7   : > { %4862 = vmatprep.subr.bf16.mxu0 %v4861_v20  ;;  %v8742_v20 = vld [vmem:[#allocation37_spill] sm:$0xff] }
  0xd9   : > { %963 = vmatmul.mubr.f32.gmra.mrb[2].mxu0 %v6081_v15 }
  0xda   : > { %968 = vmatprep.mubr.f32.mxu0 %v8704_v39  ;;  %4864 = vmatpush1.bf16.msra.mxu0 %v4863_v11  ;;  %v8737_v11 = vld [vmem:[#allocation15_spill] sm:$0xff] }
  0xdb   : > { %4866 = vmatprep.subr.bf16.mxu0 %v4865_v5  ;;  %v8736_v5 = vld [vmem:[#allocation49_spill] sm:$0xff] }
  0xdd   : > { %970 = vmatmul.mubr.f32.gmra.mrb[4].mxu0 %v6090_v14 }
  0xde   : > { %975 = vmatprep.mubr.f32.mxu0 %v8704_v39  ;;  %4868 = vmatpush1.bf16.msra.mxu0 %v4867_v36  ;;  %v8744_v36 = vld [vmem:[#allocation19_spill] sm:$0xff] }
  0xdf   : > { %4870 = vmatprep.subr.bf16.mxu0 %v4869_v58  ;;  %v8745_v58 = vld [vmem:[#allocation39_spill] sm:$0xff] }
  0xe1   : > { %977 = vmatmul.mubr.f32.gmra.mrb[6].mxu0 %v6147_v34 }
  0xe2   : > { %982 = vmatprep.mubr.f32.mxu0 %v8704_v39  ;;  %4872 = vmatpush1.bf16.msra.mxu0 %v4871_v44  ;;  %v8746_v44 = vld [vmem:[#allocation20_spill] sm:$0xff] }
  0xe3   : > { %4874 = vmatprep.subr.bf16.mxu0 %v4873_v26  ;;  %v8738_v26 = vld [vmem:[#allocation52_spill] sm:$0xff] }
  0xe5   : > { %984 = vmatmul.mubr.f32.gmra.mrb[8].mxu0 %v8735_v62 }
  0xe6   : > { %989 = vmatprep.mubr.f32.mxu0 %v8704_v39  ;;  %4876 = vmatpush1.bf16.msra.mxu0 %v4875_v46  ;;  %v8747_v46 = vld [vmem:[#allocation21_spill] sm:$0xff] }
  0xe7   : > { %4878 = vmatprep.subr.bf16.mxu0 %v4877_v53  ;;  %v8748_v53 = vld [vmem:[#allocation43_spill] sm:$0xff] }
  0xe9   : > { %991 = vmatmul.mubr.f32.gmra.mrb[10].mxu0 %v6187_v45 }
  0xea   : > { %996 = vmatprep.mubr.f32.mxu0 %v8704_v39  ;;  %4880 = vmatpush1.bf16.msra.mxu0 %v4879_v8  ;;  %v8739_v8 = vld [vmem:[#allocation35_spill] sm:$0xff] }
  0xeb   : > { %4882 = vmatprep.subr.bf16.mxu0 %v4881_v10  ;;  %v8740_v10 = vld [vmem:[#allocation16_spill] sm:$0xff] }
  0xed   : > { %998 = vmatmul.mubr.f32.gmra.mrb[12].mxu0 %v6190_v35  ;;  %v8773_v35 = vand.u32 4294901760, %v5974_v54 }
  0xee   : > { %1003 = vmatprep.mubr.f32.mxu0 %v8704_v39  ;;  %4884 = vmatpush1.bf16.msra.mxu0 %v4883_v1  ;;  %v8749_v1 = vld [vmem:[#allocation24_spill] sm:$0xff] }
  0xef   : > { %4886 = vmatprep.subr.bf16.mxu0 %v4885_v41  ;;  %v8741_v41 = vld [vmem:[#allocation17_spill] sm:$0xff] }
  0xf1   : > { %1005 = vmatmul.mubr.f32.gmra.mrb[14].mxu0 %v8736_v5  ;;  %v8771_v5 = vand.u32 4294901760, %v5972_v51  ;;  %v8777_v51 = vand.u32 4294901760, %v8742_v20 }
  0xf2   : > { %1010 = vmatprep.mubr.f32.mxu0 %v8704_v39  ;;  %4888 = vmatpush1.bf16.msra.mxu0 %v4887_v2  ;;  %v8755_v2 = vld [vmem:[#allocation33_spill] sm:$0xff] }
  0xf3   : > { %4890 = vmatprep.subr.bf16.mxu0 %v8737_v11 }
  0xf5   : > { %1012 = vmatmul.mubr.f32.gmra.mrb[16].mxu0 %v8738_v26  ;;  %v8765_v26 = vld [vmem:[#allocation58_spill] sm:$0xff] }
  0xf6   : > { %1017 = vmatprep.mubr.f32.mxu0 %v8704_v39 }
  0xf9   : > { %1019 = vmatmul.mubr.f32.gmra.mrb[18].mxu0 %v6285_v18  ;;  %v8764_v18 = vld [vmem:[#allocation55_spill] sm:$0xff] }
  0xfa   : > { %1024 = vmatprep.mubr.f32.mxu0 %v8704_v39 }
  0xfd   : > { %1026 = vmatmul.mubr.f32.gmra.mrb[20].mxu0 %v6308_v30  ;;  %v8763_v30 = vld [vmem:[#allocation41_spill] sm:$0xff] }
  0xfe   : > { %1031 = vmatprep.mubr.f32.mxu0 %v8704_v39 }
 0x101   : > { %1033 = vmatmul.mubr.f32.gmra.mrb[22].mxu0 %v6321_v13  ;;  %v8762_v13 = vld [vmem:[#allocation53_spill] sm:$0xff] }
 0x102   : > { %1038 = vmatprep.mubr.f32.mxu0 %v8704_v39 }
 0x105   : > { %1040 = vmatmul.mubr.f32.gmra.mrb[24].mxu0 %v6370_v33 }
 0x106   : > { %1045 = vmatprep.mubr.f32.mxu0 %v8704_v39 }
 0x109   : > { %1047 = vmatmul.mubr.f32.gmra.mrb[26].mxu0 %v6402_v47  ;;  %v8761_v47 = vand.u32 4294901760, %v5961_v42 }
 0x10a   : > { %1052 = vmatprep.mubr.f32.mxu0 %v8704_v39 }
 0x10d   : > { %1054 = vmatmul.mubr.f32.gmra.mrb[28].mxu0 %v6434_v19  ;;  %v8760_v19 = vand.u32 4294901760, %v5956_v38  ;;  %v8766_v38 = vld [vmem:[#allocation22_spill] sm:$0xff] }
 0x10e   : > { %1059 = vmatprep.mubr.f32.mxu0 %v8704_v39  ;;  %v8767_v42 = vand.u32 4294901760, %v8766_v38  ;;  %v8775_v38 = vand.u32 4294901760, %v5978_v56 }
 0x10f   : > { %v4921_v33 = vpack.c.bf16 %v8761_v47, %v8760_v19  ;;  %v8768_v19 = vld [vmem:[#allocation23_spill] sm:$0xff] }
 0x111   : > { %1061 = vmatmul.mubr.f32.gmra.mrb[30].mxu0 %v6447_v28  ;;  %v8759_v28 = vld [vmem:[#allocation38_spill] sm:$0xff] }
 0x112   : > { %1195 = vmatprep.mubr.f32.mxu0 %v8704_v39 }
 0x115   : > { %1198 = vmatmul.mubr.f32.vlgmr.msra.gmra.mrb[0].mxu0 %v8739_v8 }
 0x116   : > { %4892 = vmatpush1.bf16.msra.mxu0 %v8740_v10  ;;  %1203 = vmatprep.mubr.f32.mxu0 %v8704_v39 }
 0x117   : > { %4894 = vmatprep.subr.bf16.mxu0 %v8741_v41 }
 0x119   : > { %1206 = vmatmul.mubr.f32.gmra.mrb[2].mxu0 %v8742_v20 }
 0x11a   : > { %1211 = vmatprep.mubr.f32.mxu0 %v8704_v39  ;;  %4896 = vmatpush1.bf16.msra.mxu0 %v8743_v31 }
 0x11b   : > { %4898 = vmatprep.subr.bf16.mxu0 %v8744_v36 }
 0x11d   : > { %1214 = vmatmul.mubr.f32.gmra.mrb[4].mxu0 %v8745_v58 }
 0x11e   : > { %1219 = vmatprep.mubr.f32.mxu0 %v8704_v39  ;;  %4900 = vmatpush1.bf16.msra.mxu0 %v8746_v44 }
 0x11f   : > { %4902 = vmatprep.subr.bf16.mxu0 %v8747_v46 }
 0x121   : > { %1222 = vmatmul.mubr.f32.gmra.mrb[6].mxu0 %v8748_v53 }
 0x122   : > { %1227 = vmatprep.mubr.f32.mxu0 %v8704_v39  ;;  %4904 = vmatpush1.bf16.msra.mxu0 %v8749_v1 }
 0x123   : > { %4906 = vmatprep.subr.bf16.mxu0 %v8750_v60 }
 0x125   : > { %1230 = vmatmul.mubr.f32.gmra.mrb[8].mxu0 %v8751_v48 }
 0x126   : > { %1235 = vmatprep.mubr.f32.mxu0 %v8704_v39  ;;  %4908 = vmatpush1.bf16.msra.mxu0 %v8752_v61 }
 0x127   : > { %4910 = vmatprep.subr.bf16.mxu0 %v8753_v27 }
 0x129   : > { %1238 = vmatmul.mubr.f32.gmra.mrb[10].mxu0 %v8754_v6 }
 0x12a   : > { %1243 = vmatprep.mubr.f32.mxu0 %v8704_v39  ;;  %4912 = vmatpush1.bf16.msra.mxu0 %v8755_v2 }
 0x12b   : > { %4914 = vmatprep.subr.bf16.mxu0 %v8756_v43  ;;  %v8774_v43 = vand.u32 4294901760, %v5976_v55  ;;  %v8780_v55 = vand.u32 4294901760, %v6000_v7 }
 0x12d   : > { %1246 = vmatmul.mubr.f32.gmra.mrb[12].mxu0 %v8757_v49  ;;  %v4927_v2 = vpack.c.bf16 %v8774_v43, %v8773_v35  ;;  %v8781_v35 = vld [vmem:[#allocation26_spill] sm:$0xff]  ;;  %v8784_v43 = vand.u32 4294901760, %v6004_v9 }
 0x12e   : > { %1251 = vmatprep.mubr.f32.mxu0 %v8704_v39  ;;  %4916 = vmatpush1.bf16.msra.mxu0 %v8758_v0  ;;  %v8772_v0 = vand.u32 4294901760, %v8739_v8 }
 0x12f   : > { %4918 = vmatprep.subr.bf16.mxu0 %v8759_v28 }
 0x131   : > { %1254 = vmatmul.mubr.f32.gmra.mrb[14].mxu0 %v8762_v13 }
 0x132   : > { %1259 = vmatprep.mubr.f32.mxu0 %v8704_v39  ;;  %4920 = vmatpush1.bf16.msra.mxu0 %v8763_v30  ;;  %v8770_v30 = vand.u32 4294901760, %v5970_v50 }
 0x133   : > { %4922 = vmatprep.subr.bf16.mxu0 %v4921_v33  ;;  %v8769_v33 = vand.u32 4294901760, %v8768_v19 }
 0x134   : > { %v4925_v28 = vpack.c.bf16 %v8771_v5, %v8770_v30  ;;  %v8778_v30 = vand.u32 4294901760, %v5985_v59  ;;  %v8785_v5 = vld [vmem:[#allocation27_spill] sm:$0xff] }
 0x135   : > { %1262 = vmatmul.mubr.f32.gmra.mrb[16].mxu0 %v8764_v18  ;;  %v4923_v47 = vpack.c.bf16 %v8769_v33, %v8767_v42  ;;  %v8776_v42 = vand.u32 4294901760, %v5980_v57  ;;  %v8783_v57 = vand.u32 4294901760, %v8745_v58  ;;  %v8786_v8 = vand.u32 4294901760, %v8785_v5 }
 0x136   : > { %1267 = vmatprep.mubr.f32.mxu0 %v8704_v39  ;;  %v8791_v33 = vand.u32 4294901760, %v8748_v53  ;;  %v8792_v58 = vand.u32 4294901760, %v6024_v24  ;;  %v8798_v53 = vand.u32 4294901760, %v6129_v37  ;;  %v8809_v5 = vand.u32 4294901760, %v6279_v52 }
 0x137   : > { %v4929_v50 = vpack.c.bf16 %v8776_v42, %v8775_v38  ;;  %v4935_v59 = vpack.c.bf16 %v8786_v8, %v8784_v43  ;;  %v8794_v38 = vand.u32 4294901760, %v6043_v40  ;;  %v8795_v42 = vld [vmem:[#allocation32_spill] sm:$0xff]  ;;  %v8816_v52 = vand.u32 4294901760, %v8764_v18 }
 0x138   : > { %v8810_v8 = vld [vmem:[#allocation56_spill] sm:$0xff]  ;;  %v8820_v18 = vand.u32 4294901760, %v6390_v12 }
 0x139   : > { %1270 = vmatmul.mubr.f32.gmra.mrb[18].mxu0 %v8765_v26 }
 0x13a   : > { %1275 = vmatprep.mubr.f32.mxu0 %v8704_v39 }
 0x13d   : > { %1278 = vmatmul.mubr.f32.gmra.mrb[20].mxu0 %v6332_v16 }
 0x13e   : > { %1283 = vmatprep.mubr.f32.mxu0 %v8704_v39 }
 0x141   : > { %1286 = vmatmul.mubr.f32.gmra.mrb[22].mxu0 %v6351_v21 }
 0x142   : > { %1291 = vmatprep.mubr.f32.mxu0 %v8704_v39 }
 0x145   : > { %1294 = vmatmul.mubr.f32.gmra.mrb[24].mxu0 %v6390_v12 }
 0x146   : > { %1299 = vmatprep.mubr.f32.mxu0 %v8704_v39 }
 0x149   : > { %1302 = vmatmul.mubr.f32.gmra.mrb[26].mxu0 %v6432_v22 }
 0x14a   : > { %1307 = vmatprep.mubr.f32.mxu0 %v8704_v39 }
 0x14d   : > { %1310 = vmatmul.mubr.f32.gmra.mrb[28].mxu0 %v6445_v63 }
 0x14e   : > { %1315 = vmatprep.mubr.f32.mxu0 %v8704_v39 }
 0x151   : > { %1318 = vmatmul.mubr.f32.gmra.mrb[30].mxu0 %v6455_v17 }
 0x152   : > { %1420 = vmatprep.mubr.f32.mxu0 %v8704_v39 }
 0x155   : > { %1424 = vmatmul.mubr.f32.vlgmr.msra.gmra.mrb[0].mxu0 %v8772_v0  ;;  %v8779_v0 = vand.u32 4294901760, %v5995_v3  ;;  %v8787_v3 = vld [vmem:[#allocation28_spill] sm:$0xff] }
 0x156   : > { %4924 = vmatpush1.bf16.msra.mxu0 %v4923_v47  ;;  %1429 = vmatprep.mubr.f32.mxu0 %v8704_v39  ;;  %v8788_v20 = vand.u32 4294901760, %v8787_v3  ;;  %v8793_v47 = vand.u32 4294901760, %v6027_v25  ;;  %v8801_v25 = vand.u32 4294901760, %v6196_v4  ;;  %v8812_v3 = vand.u32 4294901760, %v8757_v49 }
 0x157   : > { %4926 = vmatprep.subr.bf16.mxu0 %v4925_v28  ;;  %v4931_v54 = vpack.c.bf16 %v8779_v0, %v8778_v30  ;;  %v8782_v28 = vand.u32 4294901760, %v8781_v35  ;;  %v8797_v30 = vand.u32 4294901760, %v8751_v48  ;;  %v8799_v0 = vld [vmem:[#allocation40_spill] sm:$0xff]  ;;  %v8805_v48 = vld [vmem:[#allocation50_spill] sm:$0xff]  ;;  %v8817_v49 = vand.u32 4294901760, %v8765_v26 }
 0x158   : > { %v4939_v9 = vpack.c.bf16 %v8793_v47, %v8792_v58  ;;  %v2112_v26 = vld [vmem:[#allocation8 + $0x88] sm:$0xff]  ;;  %v2113_v47 = vld [vmem:[#allocation8 + $0x90] sm:$0xff] }
 0x159   : > { %1433 = vmatmul.mubr.f32.gmra.mrb[2].mxu0 %v8777_v51  ;;  %v4933_v56 = vpack.c.bf16 %v8782_v28, %v8780_v55  ;;  %v8802_v55 = vld [vmem:[#allocation48_spill] sm:$0xff]  ;;  %v8804_v28 = vand.u32 4294901760, %v8754_v6  ;;  %v8813_v6 = vand.u32 4294901760, %v6339_v29  ;;  %v8818_v29 = vand.u32 4294901760, %v6332_v16 }
 0x15a   : > { %1438 = vmatprep.mubr.f32.mxu0 %v8704_v39  ;;  %4928 = vmatpush1.bf16.msra.mxu0 %v4927_v2  ;;  %v8789_v2 = vld [vmem:[#allocation29_spill] sm:$0xff]  ;;  %v8803_v35 = vand.u32 4294901760, %v8802_v55  ;;  %v8822_v16 = vand.u32 4294901760, %v6445_v63  ;;  %v2096_v58 = vld [vmem:[#allocation8 + $0x8] sm:$0xff] }
 0x15b   : > { %4930 = vmatprep.subr.bf16.mxu0 %v4929_v50  ;;  %v8790_v19 = vand.u32 4294901760, %v8789_v2  ;;  %v8796_v50 = vand.u32 4294901760, %v8795_v42  ;;  %v2182_v42 = vand.u32 4294901760, %v2113_v47  ;;  %v2100_v55 = vld [vmem:[#allocation8 + $0x28] sm:$0xff] }
 0x15c   : > { %v4945_v40 = vpack.c.bf16 %v8803_v35, %v8801_v25  ;;  %v2099_v25 = vld [vmem:[#allocation8 + $0x20] sm:$0xff] }
 0x15d   : > { %1442 = vmatmul.mubr.f32.gmra.mrb[4].mxu0 %v8783_v57  ;;  %v4937_v7 = vpack.c.bf16 %v8790_v19, %v8788_v20  ;;  %v4941_v51 = vpack.c.bf16 %v8796_v50, %v8794_v38  ;;  %v8807_v57 = vld [vmem:[#allocation51_spill] sm:$0xff]  ;;  %v8814_v20 = vand.u32 4294901760, %v6348_v23  ;;  %v8815_v19 = vand.u32 4294901760, %v8762_v13  ;;  %v2097_v50 = vld [vmem:[#allocation8 + $0x10] sm:$0xff] }
 0x15e   : > { %1447 = vmatprep.mubr.f32.mxu0 %v8704_v39  ;;  %4932 = vmatpush1.bf16.msra.mxu0 %v4931_v54  ;;  %v8800_v54 = vand.u32 4294901760, %v8799_v0  ;;  %v8808_v43 = vand.u32 4294901760, %v8807_v57  ;;  %v8819_v13 = vand.u32 4294901760, %v6351_v21  ;;  %v8821_v23 = vand.u32 4294901760, %v6432_v22 }
 0x15f   : > { %4934 = vmatprep.subr.bf16.mxu0 %v4933_v56  ;;  %v8806_v56 = vand.u32 4294901760, %v8805_v48  ;;  %v4951_v2 = vpack.c.bf16 %v8814_v20, %v8813_v6  ;;  %v8823_v21 = vand.u32 4294901760, %v6455_v17  ;;  %v2131_v38 = vand.u32 4294901760, %v2096_v58  ;;  %v2101_v20 = vld [vmem:[#allocation8 + $0x30] sm:$0xff] }
 0x160   : > { %v4943_v24 = vpack.c.bf16 %v8800_v54, %v8798_v53  ;;  %v6679_v48 = vsub.f32 %v2113_v47, %v2182_v42  ;;  %v8842_v47 = vld [vmem:[#allocation54_spill] sm:$0xff] }
 0x161   : > { %1451 = vmatmul.mubr.f32.gmra.mrb[6].mxu0 %v8791_v33  ;;  %v4947_v37 = vpack.c.bf16 %v8808_v43, %v8806_v56  ;;  %v2179_v33 = vand.u32 4294901760, %v2112_v26  ;;  %v2117_v56 = vld [vmem:[#allocation8 + $0xb0] sm:$0xff]  ;;  %v2134_v43 = vand.u32 4294901760, %v2097_v50 }
 0x162   : > { %1456 = vmatprep.mubr.f32.mxu0 %v8704_v39  ;;  %4936 = vmatpush1.bf16.msra.mxu0 %v4935_v59  ;;  %v8811_v59 = vand.u32 4294901760, %v8810_v8  ;;  %v2118_v8 = vld [vmem:[#allocation8 + $0xb8] sm:$0xff]  ;;  %v2194_v6 = vand.u32 4294901760, %v2117_v56 }
 0x163   : > { %4938 = vmatprep.subr.bf16.mxu0 %v4937_v7  ;;  %v2095_v7 = vld [vmem:[#allocation8] sm:$0xff]  ;;  %v6668_v0 = vsub.f32 %v2112_v26, %v2179_v33 }
 0x164   : > { %v4949_v4 = vpack.c.bf16 %v8811_v59, %v8809_v5  ;;  %v2128_v22 = vand.u32 4294901760, %v2095_v7 }
 0x165   : > { %1460 = vmatmul.mubr.f32.gmra.mrb[8].mxu0 %v8797_v30  ;;  %v2115_v30 = vld [vmem:[#allocation8 + $0xa0] sm:$0xff]  ;;  %8826 = vst [vmem:[#allocation35_spill] sm:$0xff] %v6668_v0 }
 0x166   : > { %1465 = vmatprep.mubr.f32.mxu0 %v8704_v39  ;;  %4940 = vmatpush1.bf16.msra.mxu0 %v4939_v9  ;;  %v2114_v9 = vld [vmem:[#allocation8 + $0x98] sm:$0xff]  ;;  %v6670_v54 = vsub.f32 %v2095_v7, %v2128_v22  ;;  %v6673_v35 = vpack.c.bf16 %v2131_v38, %v2128_v22  ;;  %v2188_v5 = vand.u32 4294901760, %v2115_v30  ;;  %v8839_v22 = vld [vmem:[#allocation49_spill] sm:$0xff] }
 0x167   : > { %4942 = vmatprep.subr.bf16.mxu0 %v4941_v51  ;;  %v2185_v63 = vand.u32 4294901760, %v2114_v9  ;;  %v2098_v51 = vld [vmem:[#allocation8 + $0x18] sm:$0xff] }
 0x168   : > { %8827 = vst [vmem:[#allocation16_spill] sm:$0xff] %v6673_v35 }
 0x169   : > { %1469 = vmatmul.mubr.f32.gmra.mrb[10].mxu0 %v8804_v28  ;;  %v6677_v28 = vpack.c.bf16 %v2185_v63, %v2182_v42  ;;  %v6683_v57 = vsub.f32 %v2114_v9, %v2185_v63  ;;  %v8843_v9 = vld [vmem:[#allocation57_spill] sm:$0xff]  ;;  %v8845_v42 = vld [vmem:[#allocation60_spill] sm:$0xff] }
 0x16a   : > { %1474 = vmatprep.mubr.f32.mxu0 %v8704_v39  ;;  %4944 = vmatpush1.bf16.msra.mxu0 %v4943_v24  ;;  %v2116_v24 = vld [vmem:[#allocation8 + $0xa8] sm:$0xff]  ;;  %v8846_v63 = vld [vmem:[#allocation61_spill] sm:$0xff] }
 0x16b   : > { %4946 = vmatprep.subr.bf16.mxu0 %v4945_v40  ;;  %v6675_v40 = vsub.f32 %v2096_v58, %v2131_v38  ;;  %8828 = vst [vmem:[#allocation17_spill] sm:$0xff] %v6677_v28  ;;  %v2191_v59 = vand.u32 4294901760, %v2116_v24  ;;  %v8838_v58 = vld [vmem:[#allocation38_spill] sm:$0xff]  ;;  %v8844_v38 = vld [vmem:[#allocation59_spill] sm:$0xff] }
 0x16d   : > { %1478 = vmatmul.mubr.f32.gmra.mrb[12].mxu0 %v8812_v3  ;;  %v2143_v3 = vand.u32 4294901760, %v2100_v55 }
 0x16e   : > { %1483 = vmatprep.mubr.f32.mxu0 %v8704_v39  ;;  %4948 = vmatpush1.bf16.msra.mxu0 %v4947_v37  ;;  %v2137_v37 = vand.u32 4294901760, %v2098_v51 }
 0x16f   : > { %4950 = vmatprep.subr.bf16.mxu0 %v4949_v4  ;;  %v2140_v4 = vand.u32 4294901760, %v2099_v25 }
 0x171   : > { %1487 = vmatmul.mubr.f32.gmra.mrb[14].mxu0 %v8815_v19  ;;  %v6692_v19 = vsub.f32 %v2098_v51, %v2137_v37  ;;  %v6714_v7 = vpack.c.bf16 %v2143_v3, %v2140_v4  ;;  %v8848_v51 = vld [vmem:[#allocation63_spill] sm:$0xff] }
 0x172   : > { %1492 = vmatprep.mubr.f32.mxu0 %v8704_v39  ;;  %4952 = vmatpush1.bf16.msra.mxu0 %v4951_v2  ;;  %v6690_v2 = vsub.f32 %v2097_v50, %v2134_v43  ;;  %v8847_v50 = vld [vmem:[#allocation62_spill] sm:$0xff] }
 0x173   : > { %4954 = vmatprep.subr.bf16.mxu0 %v8737_v11  ;;  %v2111_v11 = vld [vmem:[#allocation8 + $0x80] sm:$0xff]  ;;  %8831 = vst [vmem:[#allocation19_spill] sm:$0xff] %v6714_v7 }
 0x174   : > { %v2176_v12 = vand.u32 4294901760, %v2111_v11 }
 0x175   : > { %1496 = vmatmul.mubr.f32.gmra.mrb[16].mxu0 %v8816_v52  ;;  %v6694_v52 = vsub.f32 %v2115_v30, %v2188_v5 }
 0x176   : > { %1501 = vmatprep.mubr.f32.mxu0 %v8704_v39  ;;  %v6664_v53 = vpack.c.bf16 %v2179_v33, %v2176_v12  ;;  %v6666_v17 = vsub.f32 %v2111_v11, %v2176_v12 }
 0x178   : > { %8824 = vst [vmem:[#allocation42_spill] sm:$0xff] %v6664_v53  ;;  %8825 = vst [vmem:[#allocation15_spill] sm:$0xff] %v6666_v17  ;;  %4986 = vmatprep.subr.bf16.mxu1 %v6664_v53 }
 0x179   : > { %1505 = vmatmul.mubr.f32.gmra.mrb[18].mxu0 %v8817_v49  ;;  %4988 = vmatpush3.bf16.msra.mxu1 %v6673_v35  ;;  %v2102_v49 = vld [vmem:[#allocation8 + $0x38] sm:$0xff] }
 0x17a   : > { %1510 = vmatprep.mubr.f32.mxu0 %v8704_v39  ;;  %4990 = vmatprep.subr.bf16.mxu1 %v6677_v28  ;;  %v2149_v26 = vand.u32 4294901760, %v2102_v49 }
 0x17c   : > { %v6722_v33 = vsub.f32 %v2102_v49, %v2149_v26  ;;  %v2124_v49 = vld [vmem:[#allocation8 + $0xe8] sm:$0xff] }
 0x17d   : > { %1514 = vmatmul.mubr.f32.gmra.mrb[20].mxu0 %v8818_v29  ;;  %v6700_v29 = vsub.f32 %v2116_v24, %v2191_v59 }
 0x17e   : > { %1519 = vmatprep.mubr.f32.mxu0 %v8704_v39 }
 0x181   : > { %1523 = vmatmul.mubr.f32.gmra.mrb[22].mxu0 %v8819_v13  ;;  %v2197_v13 = vand.u32 4294901760, %v2118_v8 }
 0x182   : > { %1528 = vmatprep.mubr.f32.mxu0 %v8704_v39 }
 0x183   : > { %v6711_v11 = vsub.f32 %v2118_v8, %v2197_v13  ;;  %v2106_v8 = vld [vmem:[#allocation8 + $0x58] sm:$0xff] }
 0x185   : > { %1532 = vmatmul.mubr.f32.gmra.mrb[24].mxu0 %v8820_v18  ;;  %v6704_v18 = vsub.f32 %v2099_v25, %v2140_v4  ;;  %v2161_v4 = vand.u32 4294901760, %v2106_v8 }
 0x186   : > { %1537 = vmatprep.mubr.f32.mxu0 %v8704_v39 }
 0x189   : > { %1541 = vmatmul.mubr.f32.gmra.mrb[26].mxu0 %v8821_v23  ;;  %v6706_v23 = vsub.f32 %v2100_v55, %v2143_v3 }
 0x18a   : > { %1546 = vmatprep.mubr.f32.mxu0 %v8704_v39 }
 0x18d   : > { %1550 = vmatmul.mubr.f32.gmra.mrb[28].mxu0 %v8822_v16  ;;  %v6708_v16 = vsub.f32 %v2117_v56, %v2194_v6  ;;  %v2121_v56 = vld [vmem:[#allocation8 + $0xd0] sm:$0xff] }
 0x18e   : > { %1555 = vmatprep.mubr.f32.mxu0 %v8704_v39 }
 0x191   : > { %1559 = vmatmul.mubr.f32.gmra.mrb[30].mxu0 %v8823_v21  ;;  %v2146_v21 = vand.u32 4294901760, %v2101_v20 }
 0x192   : > { %1725 = vmatprep.mubr.f32.mxu0 %v8704_v39 }
 0x193   : > { %v6716_v12 = vsub.f32 %v2101_v20, %v2146_v21  ;;  %v2123_v20 = vld [vmem:[#allocation8 + $0xe0] sm:$0xff] }
 0x195   : > { %1727 = vmatmul.mubr.f32.vlgmr.msra.gmra.mrb[0].mxu0 %v6037_v32 }
 0x196   : > { %4956 = vmatpush1.bf16.msra.mxu0 %v8740_v10  ;;  %1732 = vmatprep.mubr.f32.mxu0 %v8704_v39  ;;  %v6688_v10 = vpack.c.bf16 %v2137_v37, %v2134_v43  ;;  %v2122_v43 = vld [vmem:[#allocation8 + $0xd8] sm:$0xff]  ;;  %v2206_v37 = vand.u32 4294901760, %v2121_v56 }
 0x197   : > { %4958 = vmatprep.subr.bf16.mxu0 %v8741_v41  ;;  %v6698_v41 = vpack.c.bf16 %v2191_v59, %v2188_v5  ;;  %v2105_v5 = vld [vmem:[#allocation8 + $0x50] sm:$0xff] }
 0x198   : > { %8829 = vst [vmem:[#allocation37_spill] sm:$0xff] %v6688_v10  ;;  %4992 = vmatpush3.bf16.msra.mxu1 %v6688_v10  ;;  %v2158_v59 = vand.u32 4294901760, %v2105_v5 }
 0x199   : > { %1734 = vmatmul.mubr.f32.gmra.mrb[2].mxu0 %v6081_v15  ;;  %8830 = vst [vmem:[#allocation18_spill] sm:$0xff] %v6698_v41  ;;  %4994 = vmatprep.subr.bf16.mxu1 %v6698_v41 }
 0x19a   : > { %1739 = vmatprep.mubr.f32.mxu0 %v8704_v39  ;;  %4960 = vmatpush1.bf16.msra.mxu0 %v8743_v31  ;;  %v6720_v31 = vpack.c.bf16 %v2197_v13, %v2194_v6  ;;  %v6806_v6 = vpack.c.bf16 %v2161_v4, %v2158_v59  ;;  %v2212_v13 = vand.u32 4294901760, %v2123_v20 }
 0x19b   : > { %4962 = vmatprep.subr.bf16.mxu0 %v8744_v36  ;;  %v6728_v36 = vpack.c.bf16 %v2149_v26, %v2146_v21  ;;  %v2215_v21 = vand.u32 4294901760, %v2124_v49  ;;  %v2107_v26 = vld [vmem:[#allocation8 + $0x60] sm:$0xff] }
 0x19c   : > { %8832 = vst [vmem:[#allocation39_spill] sm:$0xff] %v6720_v31  ;;  %4996 = vmatpush3.bf16.msra.mxu1 %v6714_v7  ;;  %8852 = vst [vmem:[#allocation25_spill] sm:$0xff] %v6806_v6 }
 0x19d   : > { %1741 = vmatmul.mubr.f32.gmra.mrb[4].mxu0 %v6090_v14  ;;  %8833 = vst [vmem:[#allocation20_spill] sm:$0xff] %v6728_v36  ;;  %4998 = vmatprep.subr.bf16.mxu1 %v6720_v31 }
 0x19e   : > { %1746 = vmatprep.mubr.f32.mxu0 %v8704_v39  ;;  %4964 = vmatpush1.bf16.msra.mxu0 %v8746_v44  ;;  %v8834_v44 = vld [vmem:[#allocation33_spill] sm:$0xff] }
 0x19f   : > { %4966 = vmatprep.subr.bf16.mxu0 %v8747_v46  ;;  %v8835_v46 = vld [vmem:[#allocation34_spill] sm:$0xff] }
 0x1a0   : > { %5000 = vmatpush3.bf16.msra.mxu1 %v6728_v36 }
 0x1a1   : > { %1748 = vmatmul.mubr.f32.gmra.mrb[6].mxu0 %v6147_v34 }
 0x1a2   : > { %1753 = vmatprep.mubr.f32.mxu0 %v8704_v39  ;;  %4968 = vmatpush1.bf16.msra.mxu0 %v8749_v1  ;;  %v8836_v1 = vld [vmem:[#allocation45_spill] sm:$0xff] }
 0x1a3   : > { %4970 = vmatprep.subr.bf16.mxu0 %v8750_v60  ;;  %v8837_v60 = vld [vmem:[#allocation36_spill] sm:$0xff] }
 0x1a5   : > { %1755 = vmatmul.mubr.f32.gmra.mrb[8].mxu0 %v8735_v62 }
 0x1a6   : > { %1760 = vmatprep.mubr.f32.mxu0 %v8704_v39  ;;  %4972 = vmatpush1.bf16.msra.mxu0 %v8752_v61  ;;  %v8840_v61 = vld [vmem:[#allocation41_spill] sm:$0xff] }
 0x1a7   : > { %4974 = vmatprep.subr.bf16.mxu0 %v8753_v27  ;;  %v8841_v27 = vld [vmem:[#allocation52_spill] sm:$0xff] }
 0x1a9   : > { %1762 = vmatmul.mubr.f32.gmra.mrb[10].mxu0 %v6187_v45 }
 0x1aa   : > { %1767 = vmatprep.mubr.f32.mxu0 %v8704_v39  ;;  %4976 = vmatpush1.bf16.msra.mxu0 %v8834_v44  ;;  %v2108_v44 = vld [vmem:[#allocation8 + $0x68] sm:$0xff] }
 0x1ab   : > { %4978 = vmatprep.subr.bf16.mxu0 %v8835_v46  ;;  %v2164_v46 = vand.u32 4294901760, %v2107_v26 }
 0x1ad   : > { %1769 = vmatmul.mubr.f32.gmra.mrb[12].mxu0 %v8836_v1 }
 0x1ae   : > { %1774 = vmatprep.mubr.f32.mxu0 %v8704_v39  ;;  %4980 = vmatpush1.bf16.msra.mxu0 %v8837_v60  ;;  %v6810_v60 = vpack.c.bf16 %v2215_v21, %v2212_v13 }
 0x1af   : > { %4982 = vmatprep.subr.bf16.mxu0 %v8838_v58 }
 0x1b0   : > { %8853 = vst [vmem:[#allocation44_spill] sm:$0xff] %v6810_v60 }
 0x1b1   : > { %1776 = vmatmul.mubr.f32.gmra.mrb[14].mxu0 %v8839_v22 }
 0x1b2   : > { %1781 = vmatprep.mubr.f32.mxu0 %v8704_v39  ;;  %4984 = vmatpush1.bf16.msra.mxu0 %v8840_v61 }
 0x1b5   : > { %1783 = vmatmul.mubr.f32.gmra.mrb[16].mxu0 %v8841_v27 }
 0x1b6   : > { %1788 = vmatprep.mubr.f32.mxu0 %v8704_v39 }
 0x1b9   : > { %1790 = vmatmul.mubr.f32.gmra.mrb[18].mxu0 %v8842_v47 }
 0x1ba   : > { %1795 = vmatprep.mubr.f32.mxu0 %v8704_v39 }
 0x1bd   : > { %1797 = vmatmul.mubr.f32.gmra.mrb[20].mxu0 %v8843_v9 }
 0x1be   : > { %1802 = vmatprep.mubr.f32.mxu0 %v8704_v39 }
 0x1c1   : > { %1804 = vmatmul.mubr.f32.gmra.mrb[22].mxu0 %v8844_v38 }
 0x1c2   : > { %1809 = vmatprep.mubr.f32.mxu0 %v8704_v39 }
 0x1c5   : > { %1811 = vmatmul.mubr.f32.gmra.mrb[24].mxu0 %v8845_v42 }
 0x1c6   : > { %1816 = vmatprep.mubr.f32.mxu0 %v8704_v39 }
 0x1c9   : > { %1818 = vmatmul.mubr.f32.gmra.mrb[26].mxu0 %v8846_v63 }
 0x1ca   : > { %1823 = vmatprep.mubr.f32.mxu0 %v8704_v39 }
 0x1cd   : > { %1825 = vmatmul.mubr.f32.gmra.mrb[28].mxu0 %v8847_v50 }
 0x1ce   : > { %1830 = vmatprep.mubr.f32.mxu0 %v8704_v39 }
 0x1d1   : > { %1832 = vmatmul.mubr.f32.gmra.mrb[30].mxu0 %v8848_v51 }
 0x1d2   : > { %1934 = vmatprep.mubr.f32.mxu0 %v8704_v39 }
 0x1d5   : > { %1936 = vmatmul.mubr.f32.vlgmr.msra.gmra.mrb[0].mxu0 %v6037_v32 }
 0x1d6   : > { %1941 = vmatprep.mubr.f32.mxu0 %v8704_v39 }
 0x1d9   : > { %1943 = vmatmul.mubr.f32.gmra.mrb[2].mxu0 %v6081_v15 }
 0x1da   : > { %1948 = vmatprep.mubr.f32.mxu0 %v8704_v39 }
 0x1dd   : > { %1950 = vmatmul.mubr.f32.gmra.mrb[4].mxu0 %v6090_v14  ;;  %v2120_v14 = vld [vmem:[#allocation8 + $0xc8] sm:$0xff] }
 0x1de   : > { %1955 = vmatprep.mubr.f32.mxu0 %v8704_v39  ;;  %v2203_v32 = vand.u32 4294901760, %v2120_v14 }
 0x1e1   : > { %1957 = vmatmul.mubr.f32.gmra.mrb[6].mxu0 %v6147_v34  ;;  %v2119_v34 = vld [vmem:[#allocation8 + $0xc0] sm:$0xff] }
 0x1e2   : > { %1962 = vmatprep.mubr.f32.mxu0 %v8704_v39  ;;  %v2200_v15 = vand.u32 4294901760, %v2119_v34 }
 0x1e4   : > { %v6798_v25 = vpack.c.bf16 %v2203_v32, %v2200_v15  ;;  %v6812_v58 = vsub.f32 %v2119_v34, %v2200_v15 }
 0x1e5   : > { %1964 = vmatmul.mubr.f32.gmra.mrb[8].mxu0 %v8735_v62  ;;  %v2104_v62 = vld [vmem:[#allocation8 + $0x48] sm:$0xff] }
 0x1e6   : > { %1969 = vmatprep.mubr.f32.mxu0 %v8704_v39  ;;  %v2155_v24 = vand.u32 4294901760, %v2104_v62  ;;  %8849 = vst [vmem:[#allocation21_spill] sm:$0xff] %v6798_v25  ;;  %5002 = vmatprep.subr.bf16.mxu1 %v6798_v25 }
 0x1e9   : > { %1971 = vmatmul.mubr.f32.gmra.mrb[10].mxu0 %v6187_v45  ;;  %v2103_v45 = vld [vmem:[#allocation8 + $0x40] sm:$0xff] }
 0x1ea   : > { %1976 = vmatprep.mubr.f32.mxu0 %v8704_v39  ;;  %v2152_v30 = vand.u32 4294901760, %v2103_v45 }
 0x1ec   : > { %v6800_v55 = vpack.c.bf16 %v2155_v24, %v2152_v30  ;;  %v6816_v61 = vsub.f32 %v2103_v45, %v2152_v30  ;;  %v6832_v45 = vsub.f32 %v2106_v8, %v2161_v4  ;;  %v6838_v30 = vsub.f32 %v2123_v20, %v2212_v13 }
 0x1ed   : > { %1978 = vmatmul.mubr.f32.gmra.mrb[12].mxu0 %v8836_v1  ;;  %v2167_v1 = vand.u32 4294901760, %v2108_v44  ;;  %v8425_v8 = vand.u32 4294901760, %v6666_v17  ;;  %v8419_v4 = vand.u32 4294901760, %v6670_v54  ;;  %v8416_v20 = vand.u32 4294901760, %v6675_v40 }
 0x1ee   : > { %1983 = vmatprep.mubr.f32.mxu0 %v8704_v39  ;;  %8850 = vst [vmem:[#allocation43_spill] sm:$0xff] %v6800_v55  ;;  %5004 = vmatpush3.bf16.msra.mxu1 %v6800_v55  ;;  %8854 = vst [vmem:[#allocation30_spill] sm:$0xff] %v6816_v61 }
 0x1ef   : > { %8860 = vst [vmem:[#allocation58_spill] sm:$0xff] %v6832_v45  ;;  %8862 = vst [vmem:[#allocation23_spill] sm:$0xff] %v6838_v30 }
 0x1f1   : > { %1985 = vmatmul.mubr.f32.gmra.mrb[14].mxu0 %v8839_v22  ;;  %v6814_v22 = vsub.f32 %v2120_v14, %v2203_v32  ;;  %v6826_v14 = vsub.f32 %v2121_v56, %v2206_v37  ;;  %v6830_v32 = vsub.f32 %v2105_v5, %v2158_v59  ;;  %v6844_v56 = vsub.f32 %v2108_v44, %v2167_v1 }
 0x1f2   : > { %1990 = vmatprep.mubr.f32.mxu0 %v8704_v39  ;;  %v8422_v59 = vand.u32 4294901760, %v6668_v0 }
 0x1f3   : > { %8857 = vst [vmem:[#allocation47_spill] sm:$0xff] %v6826_v14  ;;  %8859 = vst [vmem:[#allocation55_spill] sm:$0xff] %v6830_v32 }
 0x1f4   : > { %8865 = vst [vmem:[#allocation28_spill] sm:$0xff] %v6844_v56  ;;  %v2587_v13 = vsub.f32 %v6668_v0, %v8422_v59  ;;  %v8430_v59 = vand.u32 4294901760, %v6716_v12 }
 0x1f5   : > { %1992 = vmatmul.mubr.f32.gmra.mrb[16].mxu0 %v8841_v27  ;;  %v6818_v27 = vsub.f32 %v2104_v62, %v2155_v24  ;;  %v6840_v24 = vsub.f32 %v2124_v49, %v2215_v21  ;;  %v2580_v49 = vsub.f32 %v6666_v17, %v8425_v8 }
 0x1f6   : > { %1997 = vmatprep.mubr.f32.mxu0 %v8704_v39 }
 0x1f7   : > { %8863 = vst [vmem:[#allocation26_spill] sm:$0xff] %v6840_v24  ;;  %v2581_v21 = vand.u32 4294901760, %v2580_v49 }
 0x1f9   : > { %1999 = vmatmul.mubr.f32.gmra.mrb[18].mxu0 %v8842_v47  ;;  %v2125_v47 = vld [vmem:[#allocation8 + $0xf0] sm:$0xff] }
 0x1fa   : > { %2004 = vmatprep.mubr.f32.mxu0 %v8704_v39 }
 0x1fd   : > { %2006 = vmatmul.mubr.f32.gmra.mrb[20].mxu0 %v8843_v9  ;;  %v2126_v9 = vld [vmem:[#allocation8 + $0xf8] sm:$0xff] }
 0x1fe   : > { %2011 = vmatprep.mubr.f32.mxu0 %v8704_v39 }
 0x201   : > { %2013 = vmatmul.mubr.f32.gmra.mrb[22].mxu0 %v8844_v38  ;;  %v6821_v38 = vpack.c.bf16 %v2167_v1, %v2164_v46 }
 0x202   : > { %2018 = vmatprep.mubr.f32.mxu0 %v8704_v39 }
 0x203   : > { %8855 = vst [vmem:[#allocation31_spill] sm:$0xff] %v6821_v38 }
 0x205   : > { %2020 = vmatmul.mubr.f32.gmra.mrb[24].mxu0 %v8845_v42  ;;  %v2218_v42 = vand.u32 4294901760, %v2125_v47 }
 0x206   : > { %2025 = vmatprep.mubr.f32.mxu0 %v8704_v39 }
 0x209   : > { %2027 = vmatmul.mubr.f32.gmra.mrb[26].mxu0 %v8846_v63  ;;  %v2221_v63 = vand.u32 4294901760, %v2126_v9 }
 0x20a   : > { %2032 = vmatprep.mubr.f32.mxu0 %v8704_v39 }
 0x20b   : > { %v6824_v34 = vpack.c.bf16 %v2221_v63, %v2218_v42 }
 0x20d   : > { %2034 = vmatmul.mubr.f32.gmra.mrb[28].mxu0 %v8847_v50  ;;  %v2109_v50 = vld [vmem:[#allocation8 + $0x70] sm:$0xff]  ;;  %8856 = vst [vmem:[#allocation46_spill] sm:$0xff] %v6824_v34 }
 0x20e   : > { %2039 = vmatprep.mubr.f32.mxu0 %v8704_v39  ;;  %v2209_v39 = vand.u32 4294901760, %v2122_v43 }
 0x210   : > { %v6804_v3 = vpack.c.bf16 %v2209_v39, %v2206_v37  ;;  %v6828_v15 = vsub.f32 %v2122_v43, %v2209_v39  ;;  %v6846_v43 = vsub.f32 %v2125_v47, %v2218_v42  ;;  %v6848_v37 = vsub.f32 %v2126_v9, %v2221_v63 }
 0x211   : > { %2041 = vmatmul.mubr.f32.gmra.mrb[30].mxu0 %v8848_v51  ;;  %v2110_v51 = vld [vmem:[#allocation8 + $0x78] sm:$0xff]  ;;  %v8414_v9 = vand.u32 4294901760, %v6679_v48  ;;  %v8415_v42 = vand.u32 4294901760, %v6683_v57  ;;  %v8417_v63 = vand.u32 4294901760, %v6690_v2 }
 0x212   : > { %8851 = vst [vmem:[#allocation24_spill] sm:$0xff] %v6804_v3  ;;  %5006 = vmatprep.subr.bf16.mxu1 %v6804_v3  ;;  %v2173_v3 = vand.u32 4294901760, %v2110_v51  ;;  %8858 = vst [vmem:[#allocation53_spill] sm:$0xff] %v6828_v15 }
 0x213   : > { %5008 = vmatpush3.bf16.msra.mxu1 %v6806_v6  ;;  %v2170_v6 = vand.u32 4294901760, %v2109_v50  ;;  %8866 = vst [vmem:[#allocation29_spill] sm:$0xff] %v6846_v43  ;;  %8867 = vst [vmem:[#allocation32_spill] sm:$0xff] %v6848_v37  ;;  %v2601_v49 = vsub.f32 %v6683_v57, %v8415_v42  ;;  %v8421_v42 = vand.u32 4294901760, %v6700_v29 }
 0x214   : > { %5010 = vmatprep.subr.bf16.mxu1 %v6810_v60  ;;  %v6852_v5 = vsub.f32 %v2110_v51, %v2173_v3  ;;  %v2594_v51 = vsub.f32 %v6679_v48, %v8414_v9  ;;  %v8420_v9 = vand.u32 4294901760, %v6694_v52 }
 0x215   : > { %v6835_v62 = vpack.c.bf16 %v2173_v3, %v2170_v6  ;;  %v6850_v39 = vsub.f32 %v2109_v50, %v2170_v6  ;;  %v2468_v3 = vsub.f32 %v6670_v54, %v8419_v4  ;;  %v2475_v6 = vsub.f32 %v6675_v40, %v8416_v20 }
 0x216   : > { %8869 = vst [vmem:[#allocation48_spill] sm:$0xff] %v6852_v5  ;;  %v8418_v50 = vand.u32 4294901760, %v6692_v19  ;;  %v8423_v20 = vand.u32 4294901760, %v6704_v18 }
 0x217   : > { %5012 = vmatpush3.bf16.msra.mxu1 %v6821_v38  ;;  %8861 = vst [vmem:[#allocation22_spill] sm:$0xff] %v6835_v62  ;;  %v6842_v38 = vsub.f32 %v2107_v26, %v2164_v46  ;;  %8868 = vst [vmem:[#allocation40_spill] sm:$0xff] %v6850_v39  ;;  %v2588_v26 = vand.u32 4294901760, %v2587_v13  ;;  %v2469_v44 = vand.u32 4294901760, %v2468_v3  ;;  %v2476_v46 = vand.u32 4294901760, %v2475_v6 }
 0x218   : > { %5014 = vmatprep.subr.bf16.mxu1 %v6824_v34  ;;  %v2482_v13 = vsub.f32 %v6690_v2, %v8417_v63  ;;  %v2489_v3 = vsub.f32 %v6692_v19, %v8418_v50  ;;  %v2595_v6 = vand.u32 4294901760, %v2594_v51  ;;  %v8424_v63 = vand.u32 4294901760, %v6706_v23 }
 0x219   : > { %8864 = vst [vmem:[#allocation27_spill] sm:$0xff] %v6842_v38  ;;  %v5017_v1 = vpack.c.bf16 %v2588_v26, %v2581_v21  ;;  %v6870_v47 = vpack.c.bf16 %v2476_v46, %v2469_v44  ;;  %v2602_v21 = vand.u32 4294901760, %v2601_v49  ;;  %v2608_v50 = vsub.f32 %v6694_v52, %v8420_v9 }
 0x21a   : > { %v2483_v26 = vand.u32 4294901760, %v2482_v13  ;;  %v2490_v44 = vand.u32 4294901760, %v2489_v3  ;;  %v2615_v51 = vsub.f32 %v6700_v29, %v8421_v42  ;;  %v2496_v49 = vsub.f32 %v6704_v18, %v8423_v20 }
 0x21b   : > { %5016 = vmatpush3.bf16.msra.mxu1 %v6835_v62  ;;  %v6888_v46 = vpack.c.bf16 %v2602_v21, %v2595_v6  ;;  %v2503_v13 = vsub.f32 %v6706_v23, %v8424_v63  ;;  %v2609_v3 = vand.u32 4294901760, %v2608_v50  ;;  %v8426_v9 = vand.u32 4294901760, %v6708_v16 }
 0x21c   : > { %5018 = vmatprep.subr.bf16.mxu1 %v5017_v1  ;;  %v6890_v1 = vpack.c.bf16 %v2490_v44, %v2483_v26  ;;  %v2616_v6 = vand.u32 4294901760, %v2615_v51  ;;  %v2497_v21 = vand.u32 4294901760, %v2496_v49  ;;  %v8427_v42 = vand.u32 4294901760, %v6711_v11 }
 0x21d   : > { %v2504_v26 = vand.u32 4294901760, %v2503_v13  ;;  %v8431_v20 = vand.u32 4294901760, %v6722_v33  ;;  %v2622_v63 = vsub.f32 %v6708_v16, %v8426_v9  ;;  %v2510_v51 = vsub.f32 %v6716_v12, %v8430_v59 }
 0x21e   : > { %v6908_v44 = vpack.c.bf16 %v2616_v6, %v2609_v3  ;;  %v2629_v50 = vsub.f32 %v6711_v11, %v8427_v42  ;;  %v8432_v9 = vand.u32 4294901760, %v6812_v58  ;;  %v8437_v42 = vand.u32 4294901760, %v6814_v22 }
 0x21f   : > { %v6910_v4 = vpack.c.bf16 %v2504_v26, %v2497_v21  ;;  %v2517_v49 = vsub.f32 %v6722_v33, %v8431_v20  ;;  %v2623_v13 = vand.u32 4294901760, %v2622_v63  ;;  %v2511_v6 = vand.u32 4294901760, %v2510_v51 }
 0x220   : > { %v2630_v3 = vand.u32 4294901760, %v2629_v50  ;;  %v8438_v62 = vand.u32 4294901760, %v6816_v61  ;;  %v8439_v59 = vand.u32 4294901760, %v6818_v27  ;;  %v2636_v20 = vsub.f32 %v6812_v58, %v8432_v9 }
 0x221   : > { %v2518_v21 = vand.u32 4294901760, %v2517_v49  ;;  %v2643_v63 = vsub.f32 %v6814_v22, %v8437_v42  ;;  %v8443_v9 = vand.u32 4294901760, %v6828_v15  ;;  %v8446_v42 = vand.u32 4294901760, %v6830_v32 }
 0x222   : > { %v6928_v26 = vpack.c.bf16 %v2630_v3, %v2623_v13  ;;  %v2524_v50 = vsub.f32 %v6816_v61, %v8438_v62  ;;  %v2531_v51 = vsub.f32 %v6818_v27, %v8439_v59  ;;  %v2637_v49 = vand.u32 4294901760, %v2636_v20 }
 0x223   : > { %v6930_v8 = vpack.c.bf16 %v2518_v21, %v2511_v6  ;;  %v2644_v13 = vand.u32 4294901760, %v2643_v63  ;;  %v8440_v21 = vand.u32 4294901760, %v6826_v14  ;;  %v8447_v62 = vand.u32 4294901760, %v6832_v45 }
 0x224   : > { %v2525_v3 = vand.u32 4294901760, %v2524_v50  ;;  %v2532_v6 = vand.u32 4294901760, %v2531_v51  ;;  %v2657_v20 = vsub.f32 %v6828_v15, %v8443_v9  ;;  %v2538_v63 = vsub.f32 %v6830_v32, %v8446_v42 }
 0x225   : > { %v6950_v34 = vpack.c.bf16 %v2644_v13, %v2637_v49  ;;  %v2650_v59 = vsub.f32 %v6826_v14, %v8440_v21  ;;  %v2545_v50 = vsub.f32 %v6832_v45, %v8447_v62  ;;  %v8452_v13 = vand.u32 4294901760, %v6838_v30 }
 0x226   : > { %v6952_v60 = vpack.c.bf16 %v2532_v6, %v2525_v3  ;;  %v2658_v49 = vand.u32 4294901760, %v2657_v20  ;;  %v8455_v3 = vand.u32 4294901760, %v6840_v24  ;;  %v2539_v6 = vand.u32 4294901760, %v2538_v63 }
 0x227   : > { %v2651_v51 = vand.u32 4294901760, %v2650_v59  ;;  %v2546_v21 = vand.u32 4294901760, %v2545_v50  ;;  %v8453_v55 = vand.u32 4294901760, %v6842_v38  ;;  %v8454_v9 = vand.u32 4294901760, %v6844_v56 }
 0x228   : > { %v2664_v42 = vsub.f32 %v6838_v30, %v8452_v13  ;;  %v2671_v59 = vsub.f32 %v6840_v24, %v8455_v3 }
 0x229   : > { %v6972_v25 = vpack.c.bf16 %v2658_v49, %v2651_v51  ;;  %v6980_v20 = vpack.c.bf16 %v2546_v21, %v2539_v6  ;;  %v2552_v63 = vsub.f32 %v6842_v38, %v8453_v55  ;;  %v2559_v50 = vsub.f32 %v6844_v56, %v8454_v9 }
 0x22a   : > { %v2665_v51 = vand.u32 4294901760, %v2664_v42  ;;  %v2672_v49 = vand.u32 4294901760, %v2671_v59  ;;  %v445_v59 = vld [vmem:[%s8263_s2] sm:$0x3] }
 0x22b   : > { %v2553_v62 = vand.u32 4294901760, %v2552_v63  ;;  %v2560_v36 = vand.u32 4294901760, %v2559_v50  ;;  %v447_v63 = vlaneseq }
 0x22c   : > { %v6988_v31 = vpack.c.bf16 %v2672_v49, %v2665_v51 }
 0x22d   : > { %v6990_v13 = vpack.c.bf16 %v2560_v36, %v2553_v62  ;;  %v448_v49 = vshrl.u32 %v447_v63, 7 }
 0x22f   : > { %v449_v3 = vsub.s32 0, %v448_v49  ;;  %v453_v36 = vsub.s32 1, %v448_v49 }
 0x231   : > { %v7019_v9 = vrot.slane %v445_v59, %v449_v3  ;;  %v7021_v55 = vrot.slane %v445_v59, %v453_v36 }
 0x2a8   : > { %v1937_v50 = vpop.f32.mrb[0].mxu0 }
 0x2a9   : > { %v5177_v51 = vadd.f32 %v1937_v50, %v7019_v9  ;;  %v1939_v63 = vpop.f32.mrb[1].mxu0 }
 0x2aa   : > { %v5178_v42 = vadd.f32 %v1939_v63, %v7021_v55 }
 0x2ab   : > { %v2047_v49 = vmax.f32 %v5177_v51, 0.0 }
 0x2ac   : > { %v2048_v7 = vmax.f32 %v5178_v42, 0.0  ;;  %v1944_v41 = vpop.f32.mrb[2].mxu0 }
 0x2ad   : > { %v7029_v62 = vand.u32 4294901760, %v2047_v49  ;;  %v5179_v3 = vadd.f32 %v1944_v41, %v7019_v9  ;;  %v1946_v59 = vpop.f32.mrb[3].mxu0 }
 0x2ae   : > { %v7032_v36 = vand.u32 4294901760, %v2048_v7  ;;  %v5180_v50 = vadd.f32 %v1946_v59, %v7021_v55 }
 0x2af   : > { %8870 = vst [vmem:[#allocation50_spill] sm:$0xff] %v7029_v62  ;;  %v7036_v10 = vsub.f32 %v2047_v49, %v7029_v62  ;;  %v2049_v6 = vmax.f32 %v5179_v3, 0.0 }
 0x2b0   : > { %8871 = vst [vmem:[#allocation51_spill] sm:$0xff] %v7032_v36  ;;  %v7039_v63 = vsub.f32 %v2048_v7, %v7032_v36  ;;  %v2050_v21 = vmax.f32 %v5180_v50, 0.0  ;;  %v1951_v51 = vpop.f32.mrb[4].mxu0 }
 0x2b1   : > { %8872 = vst [vmem:[#allocation56_spill] sm:$0xff] %v7036_v10  ;;  %v7041_v42 = vand.u32 4294901760, %v2049_v6  ;;  %v5181_v28 = vadd.f32 %v1951_v51, %v7019_v9  ;;  %v1953_v35 = vpop.f32.mrb[5].mxu0  ;;  %v8480_v41 = vand.u32 4294901760, %v7036_v10 }
 0x2b2   : > { %8873 = vst [vmem:[#allocation33_spill] sm:$0xff] %v7039_v63  ;;  %v7045_v53 = vand.u32 4294901760, %v2050_v21  ;;  %v5182_v59 = vadd.f32 %v1953_v35, %v7021_v55  ;;  %v8483_v49 = vand.u32 4294901760, %v7039_v63 }
 0x2b3   : > { %8874 = vst [vmem:[#allocation34_spill] sm:$0xff] %v7041_v42  ;;  %v7050_v3 = vsub.f32 %v2049_v6, %v7041_v42  ;;  %v2051_v7 = vmax.f32 %v5181_v28, 0.0  ;;  %v2232_v50 = vsub.f32 %v7036_v10, %v8480_v41 }
 0x2b4   : > { %8875 = vst [vmem:[#allocation45_spill] sm:$0xff] %v7045_v53  ;;  %v7056_v38 = vsub.f32 %v2050_v21, %v7045_v53  ;;  %v2052_v51 = vmax.f32 %v5182_v59, 0.0  ;;  %v1958_v56 = vpop.f32.mrb[6].mxu0  ;;  %v2226_v30 = vsub.f32 %v7039_v63, %v8483_v49 }
 0x2b5   : > { %8876 = vst [vmem:[#allocation36_spill] sm:$0xff] %v7050_v3  ;;  %v7061_v35 = vand.u32 4294901760, %v2051_v7  ;;  %v5183_v24 = vadd.f32 %v1958_v56, %v7019_v9  ;;  %v1960_v6 = vpop.f32.mrb[7].mxu0  ;;  %v8490_v28 = vand.u32 4294901760, %v7050_v3  ;;  %v2233_v63 = vand.u32 4294901760, %v2232_v50 }
 0x2b6   : > { %8877 = vst [vmem:[#allocation38_spill] sm:$0xff] %v7056_v38  ;;  %v7066_v45 = vand.u32 4294901760, %v2052_v51  ;;  %v5184_v21 = vadd.f32 %v1960_v6, %v7021_v55  ;;  %v2227_v41 = vand.u32 4294901760, %v2226_v30  ;;  %v8493_v59 = vand.u32 4294901760, %v7056_v38 }
 0x2b7   : > { %8878 = vst [vmem:[#allocation49_spill] sm:$0xff] %v7061_v35  ;;  %v7071_v10 = vsub.f32 %v2051_v7, %v7061_v35  ;;  %v2053_v49 = vmax.f32 %v5183_v24, 0.0  ;;  %v2247_v56 = vsub.f32 %v7050_v3, %v8490_v28 }
 0x2b8   : > { %8879 = vst [vmem:[#allocation41_spill] sm:$0xff] %v7066_v45  ;;  %v7077_v14 = vsub.f32 %v2052_v51, %v7066_v45  ;;  %v2054_v32 = vmax.f32 %v5184_v21, 0.0  ;;  %v1965_v15 = vpop.f32.mrb[8].mxu0  ;;  %2228 = vmatprep.mubr.f32.mxu1 %v2227_v41  ;;  %v2241_v30 = vsub.f32 %v7056_v38, %v8493_v59 }
 0x2b9   : > { %8880 = vst [vmem:[#allocation52_spill] sm:$0xff] %v7071_v10  ;;  %v7083_v7 = vand.u32 4294901760, %v2053_v49  ;;  %v5185_v24 = vadd.f32 %v1965_v15, %v7019_v9  ;;  %v1967_v50 = vpop.f32.mrb[9].mxu0  ;;  %2234 = vmatmul.mubr.f32.vlgmr.msra.gmra.mrb[0].mxu1 %v2233_v63  ;;  %v8498_v28 = vand.u32 4294901760, %v7071_v10  ;;  %v2248_v15 = vand.u32 4294901760, %v2247_v56 }
 0x2ba   : > { %8881 = vst [vmem:[#allocation54_spill] sm:$0xff] %v7077_v14  ;;  %v7088_v3 = vand.u32 4294901760, %v2054_v32  ;;  %v5186_v41 = vadd.f32 %v1967_v50, %v7021_v55  ;;  %5020 = vmatpush3.bf16.msra.mxu1 %v6870_v47  ;;  %v2242_v21 = vand.u32 4294901760, %v2241_v30  ;;  %v8499_v59 = vand.u32 4294901760, %v7077_v14 }
 0x2bb   : > { %8882 = vst [vmem:[#allocation57_spill] sm:$0xff] %v7083_v7  ;;  %v7094_v6 = vsub.f32 %v2053_v49, %v7083_v7  ;;  %v2055_v38 = vmax.f32 %v5185_v24, 0.0  ;;  %v2262_v63 = vsub.f32 %v7071_v10, %v8498_v28  ;;  %5022 = vmatprep.subr.bf16.mxu1 %v6888_v46 }
 0x2bc   : > { %8883 = vst [vmem:[#allocation59_spill] sm:$0xff] %v7088_v3  ;;  %v7101_v51 = vsub.f32 %v2054_v32, %v7088_v3  ;;  %v2056_v50 = vmax.f32 %v5186_v41, 0.0  ;;  %v1972_v61 = vpop.f32.mrb[10].mxu0  ;;  %2243 = vmatprep.mubr.f32.mxu1 %v2242_v21  ;;  %v2256_v47 = vsub.f32 %v7077_v14, %v8499_v59  ;;  %v8887_v32 = vand.u32 4294901760, %v6846_v43 }
 0x2bd   : > { %8884 = vst [vmem:[#allocation60_spill] sm:$0xff] %v7094_v6  ;;  %v7107_v30 = vand.u32 4294901760, %v2055_v38  ;;  %v5187_v56 = vadd.f32 %v1972_v61, %v7019_v9  ;;  %v1974_v24 = vpop.f32.mrb[11].mxu0  ;;  %2249 = vmatmul.mubr.f32.gmra.mrb[2].mxu1 %v2248_v15  ;;  %v8504_v46 = vand.u32 4294901760, %v7094_v6  ;;  %v2263_v10 = vand.u32 4294901760, %v2262_v63 }
 0x2be   : > { %8885 = vst [vmem:[#allocation61_spill] sm:$0xff] %v7101_v51  ;;  %v7114_v41 = vsub.f32 %v6846_v43, %v8887_v32  ;;  %v7116_v21 = vand.u32 4294901760, %v2056_v50  ;;  %v5188_v28 = vadd.f32 %v1974_v24, %v7021_v55  ;;  %v2257_v59 = vand.u32 4294901760, %v2256_v47  ;;  %5024 = vmatpush3.bf16.msra.mxu1 %v6890_v1 }
 0x2bf   : > { %8886 = vst [vmem:[#allocation62_spill] sm:$0xff] %v7107_v30  ;;  %v8507_v49 = vand.u32 4294901760, %v7101_v51  ;;  %v7122_v61 = vsub.f32 %v2055_v38, %v7107_v30  ;;  %v2057_v15 = vmax.f32 %v5187_v56, 0.0  ;;  %v2277_v14 = vsub.f32 %v7094_v6, %v8504_v46  ;;  %5026 = vmatprep.subr.bf16.mxu1 %v6908_v44 }
 0x2c0   : > { %8888 = vst [vmem:[#allocation63_spill] sm:$0xff] %v7116_v21  ;;  %v7129_v32 = vsub.f32 %v2056_v50, %v7116_v21  ;;  %v2058_v24 = vmax.f32 %v5188_v28, 0.0  ;;  %v1979_v47 = vpop.f32.mrb[12].mxu0  ;;  %2258 = vmatprep.mubr.f32.mxu1 %v2257_v59  ;;  %v8891_v38 = vand.u32 4294901760, %v6848_v37  ;;  %v8893_v28 = vand.u32 4294901760, %v6850_v39 }
 0x2c1   : > { %8889 = vst [vmem:[#allocation64_spill] sm:$0xff] %v7122_v61  ;;  %v2271_v1 = vsub.f32 %v7101_v51, %v8507_v49  ;;  %v7139_v56 = vand.u32 4294901760, %v2057_v15  ;;  %v5189_v46 = vadd.f32 %v1979_v47, %v7019_v9  ;;  %v1981_v44 = vpop.f32.mrb[13].mxu0  ;;  %2264 = vmatmul.mubr.f32.gmra.mrb[4].mxu1 %v2263_v10  ;;  %v8514_v50 = vand.u32 4294901760, %v7122_v61 }
 0x2c2   : > { %8890 = vst [vmem:[#allocation65_spill] sm:$0xff] %v7129_v32  ;;  %v7137_v63 = vsub.f32 %v6848_v37, %v8891_v38  ;;  %v7146_v59 = vsub.f32 %v6850_v39, %v8893_v28  ;;  %v7148_v6 = vand.u32 4294901760, %v2058_v24  ;;  %v5190_v49 = vadd.f32 %v1981_v44, %v7021_v55  ;;  %5028 = vmatpush3.bf16.msra.mxu1 %v6910_v4 }
 0x2c3   : > { %8892 = vst [vmem:[#allocation66_spill] sm:$0xff] %v7139_v56  ;;  %v2272_v51 = vand.u32 4294901760, %v2271_v1  ;;  %v8517_v38 = vand.u32 4294901760, %v7129_v32  ;;  %v7154_v47 = vsub.f32 %v2057_v15, %v7139_v56  ;;  %v2059_v10 = vmax.f32 %v5189_v46, 0.0  ;;  %5030 = vmatprep.subr.bf16.mxu1 %v6928_v26 }
 0x2c4   : > { %8894 = vst [vmem:[#allocation67_spill] sm:$0xff] %v7148_v6  ;;  %v2278_v37 = vand.u32 4294901760, %v2277_v14  ;;  %v2292_v43 = vsub.f32 %v7122_v61, %v8514_v50  ;;  %v7161_v28 = vsub.f32 %v2058_v24, %v7148_v6  ;;  %v2060_v44 = vmax.f32 %v5190_v49, 0.0  ;;  %v1986_v1 = vpop.f32.mrb[14].mxu0 }
 0x2c5   : > { %8895 = vst [vmem:[#allocation68_spill] sm:$0xff] %v7154_v47  ;;  %2273 = vmatprep.mubr.f32.mxu1 %v2272_v51  ;;  %v2286_v4 = vsub.f32 %v7129_v32, %v8517_v38  ;;  %v8897_v15 = vand.u32 4294901760, %v6852_v5  ;;  %v7171_v46 = vand.u32 4294901760, %v2059_v10  ;;  %v5191_v50 = vadd.f32 %v1986_v1, %v7019_v9  ;;  %v1988_v26 = vpop.f32.mrb[15].mxu0 }
 0x2c6   : > { %8896 = vst [vmem:[#allocation69_spill] sm:$0xff] %v7161_v28  ;;  %2279 = vmatmul.mubr.f32.gmra.mrb[6].mxu1 %v2278_v37  ;;  %v8524_v24 = vand.u32 4294901760, %v7154_v47  ;;  %v2679_v49 = vand.u32 4294901760, %v7114_v41  ;;  %v7176_v51 = vand.u32 4294901760, %v2060_v44  ;;  %v5192_v61 = vadd.f32 %v1988_v26, %v7021_v55 }
 0x2c7   : > { %v7169_v14 = vsub.f32 %v6852_v5, %v8897_v15  ;;  %8898 = vst [vmem:[#allocation70_spill] sm:$0xff] %v7171_v46  ;;  %v2287_v38 = vand.u32 4294901760, %v2286_v4  ;;  %v8527_v32 = vand.u32 4294901760, %v7161_v28  ;;  %5032 = vmatpush3.bf16.msra.mxu1 %v6930_v8  ;;  %v7182_v15 = vsub.f32 %v2059_v10, %v7171_v46 }
 0x2c8   : > { %8899 = vst [vmem:[#allocation71_spill] sm:$0xff] %v7176_v51  ;;  %v2061_v5 = vmax.f32 %v5191_v50, 0.0  ;;  %v2293_v1 = vand.u32 4294901760, %v2292_v43  ;;  %v2307_v37 = vsub.f32 %v7154_v47, %v8524_v24  ;;  %5034 = vmatprep.subr.bf16.mxu1 %v6950_v34  ;;  %v7189_v41 = vsub.f32 %v2060_v44, %v7176_v51  ;;  %v1993_v4 = vpop.f32.mrb[16].mxu0 }
 0x2c9   : > { %8900 = vst [vmem:[#allocation72_spill] sm:$0xff] %v7182_v15  ;;  %v2062_v26 = vmax.f32 %v5192_v61, 0.0  ;;  %2288 = vmatprep.mubr.f32.mxu1 %v2287_v38  ;;  %v2301_v8 = vsub.f32 %v7161_v28, %v8527_v32  ;;  %v2686_v10 = vand.u32 4294901760, %v7137_v63  ;;  %v5193_v43 = vadd.f32 %v1993_v4, %v7019_v9  ;;  %v1995_v39 = vpop.f32.mrb[17].mxu0 }
 0x2ca   : > { %8901 = vst [vmem:[#allocation73_spill] sm:$0xff] %v7189_v41  ;;  %v7195_v50 = vand.u32 4294901760, %v2061_v5  ;;  %2294 = vmatmul.mubr.f32.gmra.mrb[8].mxu1 %v2293_v1  ;;  %v8530_v34 = vand.u32 4294901760, %v7182_v15  ;;  %v2567_v44 = vand.u32 4294901760, %v7146_v59  ;;  %v5194_v61 = vadd.f32 %v1995_v39, %v7021_v55 }
 0x2cb   : > { %v7200_v24 = vand.u32 4294901760, %v2062_v26  ;;  %v2302_v38 = vand.u32 4294901760, %v2301_v8  ;;  %v8533_v47 = vand.u32 4294901760, %v7189_v41  ;;  %5036 = vmatpush3.bf16.msra.mxu1 %v6952_v60  ;;  %v2063_v32 = vmax.f32 %v5193_v43, 0.0 }
 0x2cc   : > { %8902 = vst [vmem:[#allocation74_spill] sm:$0xff] %v7195_v50  ;;  %v7206_v63 = vsub.f32 %v2061_v5, %v7195_v50  ;;  %v2308_v4 = vand.u32 4294901760, %v2307_v37  ;;  %v2322_v1 = vsub.f32 %v7182_v15, %v8530_v34  ;;  %5038 = vmatprep.subr.bf16.mxu1 %v6972_v25  ;;  %v2064_v39 = vmax.f32 %v5194_v61, 0.0  ;;  %v2000_v8 = vpop.f32.mrb[18].mxu0 }
 0x2cd   : > { %8903 = vst [vmem:[#allocation75_spill] sm:$0xff] %v7200_v24  ;;  %v7213_v59 = vsub.f32 %v2062_v26, %v7200_v24  ;;  %2303 = vmatprep.mubr.f32.mxu1 %v2302_v38  ;;  %v2316_v60 = vsub.f32 %v7189_v41, %v8533_v47  ;;  %v2574_v5 = vand.u32 4294901760, %v7169_v14  ;;  %v7219_v43 = vand.u32 4294901760, %v2063_v32  ;;  %v2002_v28 = vpop.f32.mrb[19].mxu0 }
 0x2ce   : > { %8904 = vst [vmem:[#allocation76_spill] sm:$0xff] %v7206_v63  ;;  %v5195_v37 = vadd.f32 %v2000_v8, %v7019_v9  ;;  %2309 = vmatmul.mubr.f32.gmra.mrb[10].mxu1 %v2308_v4  ;;  %v8536_v25 = vand.u32 4294901760, %v7206_v63  ;;  %v5045_v34 = vpack.c.bf16 %v2686_v10, %v2679_v49  ;;  %v7223_v26 = vand.u32 4294901760, %v2064_v39 }
 0x2cf   : > { %8905 = vst [vmem:[#allocation77_spill] sm:$0xff] %v7213_v59  ;;  %8906 = vst [vmem:[#allocation78_spill] sm:$0xff] %v7219_v43  ;;  %v5196_v61 = vadd.f32 %v2002_v28, %v7021_v55  ;;  %v2317_v38 = vand.u32 4294901760, %v2316_v60  ;;  %v8537_v15 = vand.u32 4294901760, %v7213_v59  ;;  %5040 = vmatpush3.bf16.msra.mxu1 %v6980_v20  ;;  %v7229_v14 = vsub.f32 %v2063_v32, %v7219_v43 }
 0x2d0   : > { %8907 = vst [vmem:[#allocation79_spill] sm:$0xff] %v7223_v26  ;;  %v2065_v47 = vmax.f32 %v5195_v37, 0.0  ;;  %v2323_v41 = vand.u32 4294901760, %v2322_v1  ;;  %v2337_v4 = vsub.f32 %v7206_v63, %v8536_v25  ;;  %5042 = vmatprep.subr.bf16.mxu1 %v6988_v31  ;;  %v7236_v49 = vsub.f32 %v2064_v39, %v7223_v26  ;;  %v2007_v10 = vpop.f32.mrb[20].mxu0 }
 0x2d1   : > { %8908 = vst [vmem:[#allocation80_spill] sm:$0xff] %v7229_v14  ;;  %v2066_v28 = vmax.f32 %v5196_v61, 0.0  ;;  %2318 = vmatprep.mubr.f32.mxu1 %v2317_v38  ;;  %v2331_v20 = vsub.f32 %v7213_v59, %v8537_v15  ;;  %v5197_v1 = vadd.f32 %v2007_v10, %v7019_v9  ;;  %v2009_v8 = vpop.f32.mrb[21].mxu0  ;;  %v8540_v60 = vand.u32 4294901760, %v7229_v14 }
 0x2d2   : > { %8909 = vst [vmem:[#allocation81_spill] sm:$0xff] %v7236_v49  ;;  %v7241_v32 = vand.u32 4294901760, %v2065_v47  ;;  %2324 = vmatmul.mubr.f32.gmra.mrb[12].mxu1 %v2323_v41  ;;  %v5047_v37 = vpack.c.bf16 %v2574_v5, %v2567_v44  ;;  %v5198_v39 = vadd.f32 %v2009_v8, %v7021_v55  ;;  %v8541_v38 = vand.u32 4294901760, %v7236_v49 }
 0x2d3   : > { %v7245_v31 = vand.u32 4294901760, %v2066_v28  ;;  %v2332_v61 = vand.u32 4294901760, %v2331_v20  ;;  %5044 = vmatpush3.bf16.msra.mxu1 %v6990_v13  ;;  %v2067_v15 = vmax.f32 %v5197_v1, 0.0  ;;  %v2338_v63 = vand.u32 4294901760, %v2337_v4 }
 0x2d4   : > { %8910 = vst [vmem:[#allocation82_spill] sm:$0xff] %v7241_v32  ;;  %v7251_v25 = vsub.f32 %v2065_v47, %v7241_v32  ;;  %v2352_v41 = vsub.f32 %v7229_v14, %v8540_v60  ;;  %5046 = vmatprep.subr.bf16.mxu1 %v5045_v34  ;;  %v2068_v5 = vmax.f32 %v5198_v39, 0.0  ;;  %v2014_v10 = vpop.f32.mrb[22].mxu0  ;;  %v2346_v13 = vsub.f32 %v7236_v49, %v8541_v38 }
 0x2d5   : > { %8911 = vst [vmem:[#allocation83_spill] sm:$0xff] %v7245_v31  ;;  %v7257_v44 = vsub.f32 %v2066_v28, %v7245_v31  ;;  %2333 = vmatprep.mubr.f32.mxu1 %v2332_v61  ;;  %v7262_v20 = vand.u32 4294901760, %v2067_v15  ;;  %v5199_v47 = vadd.f32 %v2014_v10, %v7019_v9  ;;  %v2016_v4 = vpop.f32.mrb[23].mxu0 }
 0x2d6   : > { %8912 = vst [vmem:[#allocation84_spill] sm:$0xff] %v7251_v25  ;;  %2339 = vmatmul.mubr.f32.gmra.mrb[14].mxu1 %v2338_v63  ;;  %v8544_v1 = vand.u32 4294901760, %v7251_v25  ;;  %v7266_v8 = vand.u32 4294901760, %v2068_v5  ;;  %v5200_v34 = vadd.f32 %v2016_v4, %v7021_v55  ;;  %v2347_v28 = vand.u32 4294901760, %v2346_v13 }
 0x2d7   : > { %8913 = vst [vmem:[#allocation85_spill] sm:$0xff] %v7257_v44  ;;  %8914 = vst [vmem:[#allocation86_spill] sm:$0xff] %v7262_v20  ;;  %v8549_v39 = vand.u32 4294901760, %v7257_v44  ;;  %5048 = vmatpush3.bf16.msra.mxu1 %v5047_v37  ;;  %v7271_v61 = vsub.f32 %v2067_v15, %v7262_v20  ;;  %v2069_v60 = vmax.f32 %v5199_v47, 0.0  ;;  %v2353_v38 = vand.u32 4294901760, %v2352_v41 }
 0x2d8   : > { %8915 = vst [vmem:[#allocation87_spill] sm:$0xff] %v7266_v8  ;;  %v2367_v10 = vsub.f32 %v7251_v25, %v8544_v1  ;;  %v8917_v63 = vpack.c.bf16 %v6668_v0, %v6666_v17  ;;  %v7280_v14 = vsub.f32 %v2068_v5, %v7266_v8  ;;  %v2070_v13 = vmax.f32 %v5200_v34, 0.0  ;;  %v2021_v4 = vpop.f32.mrb[24].mxu0  ;;  %2348 = vmatprep.mubr.f32.mxu1 %v2347_v28 }
 0x2d9   : > { %8916 = vst [vmem:[#allocation88_spill] sm:$0xff] %v7271_v61  ;;  %v2361_v15 = vsub.f32 %v7257_v44, %v8549_v39  ;;  %v7285_v37 = vand.u32 4294901760, %v2069_v60  ;;  %v5201_v41 = vadd.f32 %v2021_v4, %v7019_v9  ;;  %v2023_v47 = vpop.f32.mrb[25].mxu0  ;;  %v8554_v1 = vand.u32 4294901760, %v7271_v61 }
 0x2da   : > { %5050 = vmatprep.subr.bf16.mxu1 %v8917_v63  ;;  %8918 = vst [vmem:[#allocation89_spill] sm:$0xff] %v7280_v14  ;;  %2354 = vmatmul.mubr.f32.gmra.mrb[16].mxu1 %v2353_v38  ;;  %v7289_v25 = vand.u32 4294901760, %v2070_v13  ;;  %v5202_v5 = vadd.f32 %v2023_v47, %v7021_v55  ;;  %v8557_v34 = vand.u32 4294901760, %v7280_v14  ;;  %v2368_v39 = vand.u32 4294901760, %v2367_v10 }
 0x2db   : > { %8919 = vst [vmem:[#allocation90_spill] sm:$0xff] %v7285_v37  ;;  %v2362_v63 = vand.u32 4294901760, %v2361_v15  ;;  %v7294_v28 = vsub.f32 %v2069_v60, %v7285_v37  ;;  %v2071_v49 = vmax.f32 %v5201_v41, 0.0  ;;  %v2382_v4 = vsub.f32 %v7271_v61, %v8554_v1 }
 0x2dc   : > { %8920 = vst [vmem:[#allocation91_spill] sm:$0xff] %v7289_v25  ;;  %v7300_v38 = vsub.f32 %v2070_v13, %v7289_v25  ;;  %v2072_v44 = vmax.f32 %v5202_v5, 0.0  ;;  %v2028_v0 = vpop.f32.mrb[26].mxu0  ;;  %v2376_v15 = vsub.f32 %v7280_v14, %v8557_v34 }
 0x2dd   : > { %8921 = vst [vmem:[#allocation92_spill] sm:$0xff] %v7294_v28  ;;  %2363 = vmatprep.mubr.f32.mxu1 %v2362_v63  ;;  %v7305_v47 = vand.u32 4294901760, %v2071_v49  ;;  %v5203_v60 = vadd.f32 %v2028_v0, %v7019_v9  ;;  %v2030_v41 = vpop.f32.mrb[27].mxu0  ;;  %v8564_v10 = vand.u32 4294901760, %v7294_v28  ;;  %v2383_v34 = vand.u32 4294901760, %v2382_v4 }
 0x2de   : > { %8922 = vst [vmem:[#allocation93_spill] sm:$0xff] %v7300_v38  ;;  %2369 = vmatmul.mubr.f32.gmra.mrb[18].mxu1 %v2368_v39  ;;  %v7309_v17 = vand.u32 4294901760, %v2072_v44  ;;  %v5204_v13 = vadd.f32 %v2030_v41, %v7021_v55  ;;  %v2377_v1 = vand.u32 4294901760, %v2376_v15  ;;  %v8567_v5 = vand.u32 4294901760, %v7300_v38 }
 0x2df   : > { %8923 = vst [vmem:[#allocation94_spill] sm:$0xff] %v7305_v47  ;;  %v7314_v63 = vsub.f32 %v2071_v49, %v7305_v47  ;;  %v2073_v61 = vmax.f32 %v5203_v60, 0.0  ;;  %v2397_v0 = vsub.f32 %v7294_v28, %v8564_v10 }
 0x2e0   : > { %8924 = vst [vmem:[#allocation95_spill] sm:$0xff] %v7309_v17  ;;  %v7320_v39 = vsub.f32 %v2072_v44, %v7309_v17  ;;  %v2074_v14 = vmax.f32 %v5204_v13, 0.0  ;;  %v2035_v59 = vpop.f32.mrb[28].mxu0  ;;  %2378 = vmatprep.mubr.f32.mxu1 %v2377_v1  ;;  %v2391_v15 = vsub.f32 %v7300_v38, %v8567_v5 }
 0x2e1   : > { %8925 = vst [vmem:[#allocation96_spill] sm:$0xff] %v7314_v63  ;;  %v7325_v41 = vand.u32 4294901760, %v2073_v61  ;;  %v5205_v49 = vadd.f32 %v2035_v59, %v7019_v9  ;;  %v2037_v60 = vpop.f32.mrb[29].mxu0  ;;  %v8574_v4 = vand.u32 4294901760, %v7314_v63  ;;  %v2398_v5 = vand.u32 4294901760, %v2397_v0 }
 0x2e2   : > { %8926 = vst [vmem:[#allocation97_spill] sm:$0xff] %v7320_v39  ;;  %2384 = vmatmul.mubr.f32.gmra.mrb[20].mxu1 %v2383_v34  ;;  %v7329_v47 = vand.u32 4294901760, %v2074_v14  ;;  %v5206_v44 = vadd.f32 %v2037_v60, %v7021_v55  ;;  %v2392_v10 = vand.u32 4294901760, %v2391_v15  ;;  %v8577_v13 = vand.u32 4294901760, %v7320_v39 }
 0x2e3   : > { %8927 = vst [vmem:[#allocation98_spill] sm:$0xff] %v7325_v41  ;;  %v7334_v1 = vsub.f32 %v2073_v61, %v7325_v41  ;;  %v2075_v28 = vmax.f32 %v5205_v49, 0.0  ;;  %v2412_v59 = vsub.f32 %v7314_v63, %v8574_v4 }
 0x2e4   : > { %8928 = vst [vmem:[#allocation99_spill] sm:$0xff] %v7329_v47  ;;  %v7340_v34 = vsub.f32 %v2074_v14, %v7329_v47  ;;  %v2076_v38 = vmax.f32 %v5206_v44, 0.0  ;;  %v2042_v17 = vpop.f32.mrb[30].mxu0  ;;  %2393 = vmatprep.mubr.f32.mxu1 %v2392_v10  ;;  %v2406_v15 = vsub.f32 %v7320_v39, %v8577_v13 }
 0x2e5   : > { %8929 = vst [vmem:[#allocation100_spill] sm:$0xff] %v7334_v1  ;;  %v7345_v60 = vand.u32 4294901760, %v2075_v28  ;;  %v5207_v61 = vadd.f32 %v2042_v17, %v7019_v9  ;;  %v2044_v49 = vpop.f32.mrb[31].mxu0  ;;  %v8578_v0 = vand.u32 4294901760, %v7334_v1  ;;  %v2413_v13 = vand.u32 4294901760, %v2412_v59 }
 0x2e6   : > { %8930 = vst [vmem:[#allocation101_spill] sm:$0xff] %v7340_v34  ;;  %2399 = vmatmul.mubr.f32.gmra.mrb[22].mxu1 %v2398_v5  ;;  %v7349_v41 = vand.u32 4294901760, %v2076_v38  ;;  %v5208_v14 = vadd.f32 %v2044_v49, %v7021_v55  ;;  %v2407_v4 = vand.u32 4294901760, %v2406_v15  ;;  %v8579_v44 = vand.u32 4294901760, %v7340_v34 }
 0x2e7   : > { %8931 = vst [vmem:[#allocation102_spill] sm:$0xff] %v7345_v60  ;;  %v7354_v10 = vsub.f32 %v2075_v28, %v7345_v60  ;;  %v2077_v63 = vmax.f32 %v5207_v61, 0.0  ;;  %v2427_v17 = vsub.f32 %v7334_v1, %v8578_v0 }
 0x2e8   : > { %8932 = vst [vmem:[#allocation103_spill] sm:$0xff] %v7349_v41  ;;  %v7360_v9 = vsub.f32 %v2076_v38, %v7349_v41  ;;  %v2078_v5 = vmax.f32 %v5208_v14, 0.0  ;;  %2408 = vmatprep.mubr.f32.mxu1 %v2407_v4  ;;  %v2421_v55 = vsub.f32 %v7340_v34, %v8579_v44 }
 0x2e9   : > { %v7365_v15 = vand.u32 4294901760, %v2077_v63  ;;  %v8582_v28 = vand.u32 4294901760, %v7354_v10  ;;  %v2428_v38 = vand.u32 4294901760, %v2427_v17 }
 0x2ea   : > { %8933 = vst [vmem:[#allocation104_spill] sm:$0xff] %v7360_v9  ;;  %2414 = vmatmul.mubr.f32.gmra.mrb[24].mxu1 %v2413_v13  ;;  %v7368_v61 = vand.u32 4294901760, %v2078_v5  ;;  %v2422_v59 = vand.u32 4294901760, %v2421_v55  ;;  %v8585_v49 = vand.u32 4294901760, %v7360_v9 }
 0x2eb   : > { %8934 = vst [vmem:[#allocation105_spill] sm:$0xff] %v7365_v15  ;;  %v7372_v0 = vsub.f32 %v2077_v63, %v7365_v15  ;;  %v2442_v4 = vsub.f32 %v7354_v10, %v8582_v28 }
 0x2ec   : > { %8935 = vst [vmem:[#allocation106_spill] sm:$0xff] %v7368_v61  ;;  %v7378_v14 = vsub.f32 %v2078_v5, %v7368_v61  ;;  %2423 = vmatprep.mubr.f32.mxu1 %v2422_v59  ;;  %v2436_v13 = vsub.f32 %v7360_v9, %v8585_v49  ;;  %v8956_v49 = vld [vmem:[#allocation29_spill] sm:$0xff] }
 0x2ed   : > { %v8583_v55 = vand.u32 4294901760, %v7372_v0  ;;  %v2443_v1 = vand.u32 4294901760, %v2442_v4  ;;  %v8941_v4 = vpack.c.bf16 %v6706_v23, %v6704_v18 }
 0x2ee   : > { %8936 = vst [vmem:[#allocation107_spill] sm:$0xff] %v7378_v14  ;;  %2429 = vmatmul.mubr.f32.gmra.mrb[26].mxu1 %v2428_v38  ;;  %v2437_v44 = vand.u32 4294901760, %v2436_v13  ;;  %v8584_v63 = vand.u32 4294901760, %v7378_v14  ;;  %v8937_v38 = vpack.c.bf16 %v6675_v40, %v6670_v54  ;;  %v8942_v13 = vpack.c.bf16 %v6711_v11, %v6708_v16 }
 0x2ef   : > { %v2457_v17 = vsub.f32 %v7372_v0, %v8583_v55  ;;  %v8954_v55 = vld [vmem:[#allocation23_spill] sm:$0xff] }
 0x2f0   : > { %2438 = vmatprep.mubr.f32.mxu1 %v2437_v44  ;;  %v2451_v5 = vsub.f32 %v7378_v14, %v8584_v63  ;;  %v8938_v44 = vpack.c.bf16 %v6683_v57, %v6679_v48 }
 0x2f1   : > { %v2458_v28 = vand.u32 4294901760, %v2457_v17  ;;  %v8943_v17 = vpack.c.bf16 %v6722_v33, %v6716_v12 }
 0x2f2   : > { %2444 = vmatmul.mubr.f32.gmra.mrb[28].mxu1 %v2443_v1  ;;  %v2452_v59 = vand.u32 4294901760, %v2451_v5  ;;  %v8939_v1 = vpack.c.bf16 %v6692_v19, %v6690_v2  ;;  %v8944_v5 = vpack.c.bf16 %v6814_v22, %v6812_v58 }
 0x2f4   : > { %2453 = vmatprep.mubr.f32.mxu1 %v2452_v59  ;;  %v8945_v59 = vld [vmem:[#allocation30_spill] sm:$0xff] }
 0x2f6   : > { %2459 = vmatmul.mubr.f32.gmra.mrb[30].mxu1 %v2458_v28  ;;  %v8940_v28 = vpack.c.bf16 %v6700_v29, %v6694_v52 }
 0x2f7   : > { %2689 = vmatprep.mubr.f32.mxu1 %v7032_v36  ;;  %v9004_v36 = vld [vmem:[#allocation85_spill] sm:$0xff] }
 0x2fa   : > { %2691 = vmatmul.mubr.f32.vlgmr.msra.gmra.mrb[32].mxu1 %v7029_v62  ;;  %v9001_v62 = vld [vmem:[#allocation81_spill] sm:$0xff] }
 0x2fb   : > { %2696 = vmatprep.mubr.f32.mxu1 %v7045_v53  ;;  %5052 = vmatpush3.bf16.msra.mxu1 %v8937_v38  ;;  %v8946_v38 = vpack.c.bf16 %v6818_v27, %v8945_v59  ;;  %v9000_v53 = vld [vmem:[#allocation76_spill] sm:$0xff] }
 0x2fc   : > { %5054 = vmatprep.subr.bf16.mxu1 %v8938_v44  ;;  %v8947_v44 = vld [vmem:[#allocation53_spill] sm:$0xff] }
 0x2fe   : > { %2698 = vmatmul.mubr.f32.gmra.mrb[34].mxu1 %v7041_v42  ;;  %v8996_v42 = vld [vmem:[#allocation15_spill] sm:$0xff] }
 0x2ff   : > { %2703 = vmatprep.mubr.f32.mxu1 %v7066_v45  ;;  %5056 = vmatpush3.bf16.msra.mxu1 %v8939_v1  ;;  %v8948_v1 = vld [vmem:[#allocation47_spill] sm:$0xff]  ;;  %v8995_v45 = vld [vmem:[#allocation46_spill] sm:$0xff] }
 0x300   : > { %5058 = vmatprep.subr.bf16.mxu1 %v8940_v28  ;;  %v8949_v28 = vpack.c.bf16 %v8947_v44, %v8948_v1 }
 0x302   : > { %2705 = vmatmul.mubr.f32.gmra.mrb[36].mxu1 %v7061_v35  ;;  %v8988_v35 = vld [vmem:[#allocation68_spill] sm:$0xff] }
 0x303   : > { %2710 = vmatprep.mubr.f32.mxu1 %v7088_v3  ;;  %5060 = vmatpush3.bf16.msra.mxu1 %v8941_v4  ;;  %v8950_v4 = vld [vmem:[#allocation58_spill] sm:$0xff]  ;;  %v8987_v3 = vld [vmem:[#allocation24_spill] sm:$0xff] }
 0x304   : > { %5062 = vmatprep.subr.bf16.mxu1 %v8942_v13  ;;  %v8951_v13 = vld [vmem:[#allocation55_spill] sm:$0xff] }
 0x306   : > { %2712 = vmatmul.mubr.f32.gmra.mrb[38].mxu1 %v7083_v7 }
 0x307   : > { %2717 = vmatprep.mubr.f32.mxu1 %v7116_v21  ;;  %5064 = vmatpush3.bf16.msra.mxu1 %v8943_v17  ;;  %v8952_v17 = vpack.c.bf16 %v8950_v4, %v8951_v13  ;;  %v8962_v21 = vld [vmem:[#allocation48_spill] sm:$0xff] }
 0x308   : > { %5066 = vmatprep.subr.bf16.mxu1 %v8944_v5  ;;  %v8953_v5 = vld [vmem:[#allocation26_spill] sm:$0xff] }
 0x309   : > { %v8955_v63 = vpack.c.bf16 %v8953_v5, %v8954_v55 }
 0x30a   : > { %2719 = vmatmul.mubr.f32.gmra.mrb[40].mxu1 %v7107_v30 }
 0x30b   : > { %2724 = vmatprep.mubr.f32.mxu1 %v7148_v6  ;;  %5068 = vmatpush3.bf16.msra.mxu1 %v8946_v38  ;;  %v8957_v6 = vld [vmem:[#allocation32_spill] sm:$0xff] }
 0x30c   : > { %5070 = vmatprep.subr.bf16.mxu1 %v8949_v28  ;;  %v5077_v30 = vpack.c.bf16 %v8957_v6, %v8956_v49  ;;  %v8958_v38 = vld [vmem:[#allocation28_spill] sm:$0xff]  ;;  %v8959_v28 = vld [vmem:[#allocation27_spill] sm:$0xff] }
 0x30e   : > { %2726 = vmatmul.mubr.f32.gmra.mrb[42].mxu1 %v7139_v56  ;;  %v8960_v56 = vpack.c.bf16 %v8958_v38, %v8959_v28 }
 0x30f   : > { %2731 = vmatprep.mubr.f32.mxu1 %v7176_v51  ;;  %5072 = vmatpush3.bf16.msra.mxu1 %v8952_v17  ;;  %v8961_v51 = vld [vmem:[#allocation40_spill] sm:$0xff]  ;;  %v8967_v17 = vld [vmem:[#allocation33_spill] sm:$0xff] }
 0x310   : > { %5074 = vmatprep.subr.bf16.mxu1 %v8955_v63  ;;  %v5079_v7 = vpack.c.bf16 %v8962_v21, %v8961_v51  ;;  %v8963_v63 = vld [vmem:[#allocation42_spill] sm:$0xff] }
 0x312   : > { %2733 = vmatmul.mubr.f32.gmra.mrb[44].mxu1 %v7171_v46  ;;  %v8986_v46 = vld [vmem:[#allocation43_spill] sm:$0xff] }
 0x313   : > { %2738 = vmatprep.mubr.f32.mxu1 %v7200_v24  ;;  %5076 = vmatpush3.bf16.msra.mxu1 %v8960_v56  ;;  %v8965_v56 = vld [vmem:[#allocation94_spill] sm:$0xff]  ;;  %v8985_v24 = vld [vmem:[#allocation69_spill] sm:$0xff] }
 0x314   : > { %5078 = vmatprep.subr.bf16.mxu1 %v5077_v30  ;;  %v8964_v30 = vld [vmem:[#allocation95_spill] sm:$0xff] }
 0x316   : > { %2740 = vmatmul.mubr.f32.gmra.mrb[46].mxu1 %v7195_v50  ;;  %v8984_v50 = vld [vmem:[#allocation64_spill] sm:$0xff] }
 0x317   : > { %2745 = vmatprep.mubr.f32.mxu1 %v7223_v26  ;;  %5080 = vmatpush3.bf16.msra.mxu1 %v5079_v7  ;;  %v8966_v7 = vld [vmem:[#allocation98_spill] sm:$0xff]  ;;  %v8983_v26 = vld [vmem:[#allocation21_spill] sm:$0xff] }
 0x318   : > { %5082 = vmatprep.subr.bf16.mxu1 %v8963_v63  ;;  %v9005_v63 = vld [vmem:[#allocation84_spill] sm:$0xff] }
 0x31a   : > { %2747 = vmatmul.mubr.f32.gmra.mrb[48].mxu1 %v7219_v43  ;;  %v8982_v43 = vld [vmem:[#allocation20_spill] sm:$0xff] }
 0x31b   : > { %2752 = vmatprep.mubr.f32.mxu1 %v7245_v31  ;;  %v8981_v31 = vld [vmem:[#allocation65_spill] sm:$0xff] }
 0x31e   : > { %2754 = vmatmul.mubr.f32.gmra.mrb[50].mxu1 %v7241_v32  ;;  %v8980_v32 = vld [vmem:[#allocation60_spill] sm:$0xff] }
 0x31f   : > { %2759 = vmatprep.mubr.f32.mxu1 %v7266_v8  ;;  %v8979_v8 = vld [vmem:[#allocation39_spill] sm:$0xff] }
 0x322   : > { %2761 = vmatmul.mubr.f32.gmra.mrb[52].mxu1 %v7262_v20  ;;  %v8978_v20 = vld [vmem:[#allocation19_spill] sm:$0xff] }
 0x323   : > { %2766 = vmatprep.mubr.f32.mxu1 %v7289_v25  ;;  %v8968_v25 = vld [vmem:[#allocation56_spill] sm:$0xff] }
 0x326   : > { %2768 = vmatmul.mubr.f32.gmra.mrb[54].mxu1 %v7285_v37  ;;  %v8969_v37 = vld [vmem:[#allocation38_spill] sm:$0xff] }
 0x327   : > { %2773 = vmatprep.mubr.f32.mxu1 %v8964_v30  ;;  %v8970_v30 = vld [vmem:[#allocation16_spill] sm:$0xff] }
 0x32a   : > { %2775 = vmatmul.mubr.f32.gmra.mrb[56].mxu1 %v8965_v56  ;;  %v8971_v56 = vld [vmem:[#allocation17_spill] sm:$0xff] }
 0x32b   : > { %2780 = vmatprep.mubr.f32.mxu1 %v7329_v47  ;;  %v8972_v47 = vld [vmem:[#allocation36_spill] sm:$0xff] }
 0x32e   : > { %2782 = vmatmul.mubr.f32.gmra.mrb[58].mxu1 %v8966_v7  ;;  %v8973_v7 = vld [vmem:[#allocation54_spill] sm:$0xff] }
 0x32f   : > { %2787 = vmatprep.mubr.f32.mxu1 %v7349_v41  ;;  %v8974_v41 = vld [vmem:[#allocation37_spill] sm:$0xff] }
 0x332   : > { %2789 = vmatmul.mubr.f32.gmra.mrb[60].mxu1 %v7345_v60  ;;  %v8975_v60 = vld [vmem:[#allocation18_spill] sm:$0xff] }
 0x333   : > { %2794 = vmatprep.mubr.f32.mxu1 %v7368_v61  ;;  %v8976_v61 = vld [vmem:[#allocation52_spill] sm:$0xff] }
 0x336   : > { %2796 = vmatmul.mubr.f32.gmra.mrb[62].mxu1 %v7365_v15  ;;  %v8977_v15 = vld [vmem:[#allocation61_spill] sm:$0xff] }
 0x337   : > { %2931 = vmatprep.mubr.f32.mxu1 %v8967_v17 }
 0x33a   : > { %2934 = vmatmul.mubr.f32.vlgmr.msra.gmra.mrb[64].mxu1 %v8968_v25 }
 0x33b   : > { %2940 = vmatprep.mubr.f32.mxu1 %v8969_v37  ;;  %5084 = vmatpush3.bf16.msra.mxu1 %v8970_v30 }
 0x33c   : > { %5086 = vmatprep.subr.bf16.mxu1 %v8971_v56  ;;  %v8998_v56 = vld [vmem:[#allocation35_spill] sm:$0xff] }
 0x33e   : > { %2943 = vmatmul.mubr.f32.gmra.mrb[66].mxu1 %v8972_v47 }
 0x33f   : > { %2949 = vmatprep.mubr.f32.mxu1 %v8973_v7  ;;  %5088 = vmatpush3.bf16.msra.mxu1 %v8974_v41  ;;  %v8992_v41 = vld [vmem:[#allocation72_spill] sm:$0xff] }
 0x340   : > { %5090 = vmatprep.subr.bf16.mxu1 %v8975_v60  ;;  %v8991_v60 = vld [vmem:[#allocation44_spill] sm:$0xff] }
 0x342   : > { %2952 = vmatmul.mubr.f32.gmra.mrb[68].mxu1 %v8976_v61 }
 0x343   : > { %2958 = vmatprep.mubr.f32.mxu1 %v8977_v15  ;;  %5092 = vmatpush3.bf16.msra.mxu1 %v8978_v20  ;;  %v8989_v20 = vld [vmem:[#allocation73_spill] sm:$0xff] }
 0x344   : > { %5094 = vmatprep.subr.bf16.mxu1 %v8979_v8  ;;  %v8990_v8 = vld [vmem:[#allocation25_spill] sm:$0xff] }
 0x346   : > { %2961 = vmatmul.mubr.f32.gmra.mrb[70].mxu1 %v8980_v32 }
 0x347   : > { %2967 = vmatprep.mubr.f32.mxu1 %v8981_v31  ;;  %5096 = vmatpush3.bf16.msra.mxu1 %v8982_v43  ;;  %v8993_v43 = vld [vmem:[#allocation77_spill] sm:$0xff] }
 0x348   : > { %5098 = vmatprep.subr.bf16.mxu1 %v8983_v26  ;;  %v8994_v26 = vld [vmem:[#allocation31_spill] sm:$0xff] }
 0x34a   : > { %2970 = vmatmul.mubr.f32.gmra.mrb[72].mxu1 %v8984_v50 }
 0x34b   : > { %2976 = vmatprep.mubr.f32.mxu1 %v8985_v24  ;;  %5100 = vmatpush3.bf16.msra.mxu1 %v8986_v46  ;;  %v8997_v46 = vand.u32 4294901760, %v8996_v42  ;;  %v9008_v42 = vld [vmem:[#allocation93_spill] sm:$0xff] }
 0x34c   : > { %5102 = vmatprep.subr.bf16.mxu1 %v8987_v3  ;;  %v8999_v3 = vand.u32 4294901760, %v8998_v56  ;;  %v9012_v56 = vand.u32 4294901760, %v8967_v17  ;;  %v9019_v17 = vand.u32 4294901760, %v6690_v2  ;;  %v9026_v2 = vand.u32 4294901760, %v6706_v23 }
 0x34d   : > { %v9033_v23 = vand.u32 4294901760, %v6812_v58  ;;  %v9040_v58 = vand.u32 4294901760, %v8947_v44 }
 0x34e   : > { %2979 = vmatmul.mubr.f32.gmra.mrb[74].mxu1 %v8988_v35  ;;  %v5113_v30 = vpack.c.bf16 %v8999_v3, %v8997_v46  ;;  %v9009_v3 = vld [vmem:[#allocation92_spill] sm:$0xff] }
 0x34f   : > { %2985 = vmatprep.mubr.f32.mxu1 %v8989_v20  ;;  %5104 = vmatpush3.bf16.msra.mxu1 %v8990_v8  ;;  %v9002_v8 = vld [vmem:[#allocation22_spill] sm:$0xff]  ;;  %v9010_v46 = vld [vmem:[#allocation96_spill] sm:$0xff] }
 0x350   : > { %5106 = vmatprep.subr.bf16.mxu1 %v8991_v60  ;;  %v9003_v60 = vld [vmem:[#allocation80_spill] sm:$0xff] }
 0x352   : > { %2988 = vmatmul.mubr.f32.gmra.mrb[76].mxu1 %v8992_v41 }
 0x353   : > { %2994 = vmatprep.mubr.f32.mxu1 %v8993_v43  ;;  %5108 = vmatpush3.bf16.msra.mxu1 %v8994_v26  ;;  %v9006_v26 = vld [vmem:[#allocation89_spill] sm:$0xff] }
 0x354   : > { %5110 = vmatprep.subr.bf16.mxu1 %v8995_v45  ;;  %v9007_v45 = vld [vmem:[#allocation88_spill] sm:$0xff] }
 0x356   : > { %2997 = vmatmul.mubr.f32.gmra.mrb[78].mxu1 %v9000_v53 }
 0x357   : > { %3003 = vmatprep.mubr.f32.mxu1 %v9001_v62  ;;  %5112 = vmatpush3.bf16.msra.mxu1 %v9002_v8  ;;  %v9013_v8 = vand.u32 4294901760, %v6670_v54 }
 0x358   : > { %5114 = vmatprep.subr.bf16.mxu1 %v5113_v30  ;;  %v9011_v30 = vld [vmem:[#allocation100_spill] sm:$0xff] }
 0x35a   : > { %3006 = vmatmul.mubr.f32.gmra.mrb[80].mxu1 %v9003_v60 }
 0x35b   : > { %3012 = vmatprep.mubr.f32.mxu1 %v9004_v36 }
 0x35e   : > { %3015 = vmatmul.mubr.f32.gmra.mrb[82].mxu1 %v9005_v63 }
 0x35f   : > { %3021 = vmatprep.mubr.f32.mxu1 %v9006_v26 }
 0x362   : > { %3024 = vmatmul.mubr.f32.gmra.mrb[84].mxu1 %v9007_v45 }
 0x363   : > { %3030 = vmatprep.mubr.f32.mxu1 %v9008_v42 }
 0x366   : > { %3033 = vmatmul.mubr.f32.gmra.mrb[86].mxu1 %v9009_v3 }
 0x367   : > { %3039 = vmatprep.mubr.f32.mxu1 %v7320_v39  ;;  %v9014_v39 = vand.u32 4294901760, %v6675_v40  ;;  %v9021_v40 = vand.u32 4294901760, %v6694_v52  ;;  %v9028_v52 = vand.u32 4294901760, %v6711_v11  ;;  %v9035_v11 = vand.u32 4294901760, %v8980_v32 }
 0x368   : > { %v9042_v32 = vand.u32 4294901760, %v8985_v24  ;;  %v9048_v24 = vand.u32 4294901760, %v8989_v20  ;;  %v9054_v20 = vand.u32 4294901760, %v8993_v43  ;;  %v9059_v43 = vld [vmem:[#allocation42_spill] sm:$0xff] }
 0x36a   : > { %3042 = vmatmul.mubr.f32.gmra.mrb[88].mxu1 %v9010_v46  ;;  %v5115_v46 = vpack.c.bf16 %v9014_v39, %v9013_v8 }
 0x36b   : > { %3048 = vmatprep.mubr.f32.mxu1 %v7340_v34  ;;  %v9015_v34 = vand.u32 4294901760, %v6679_v48  ;;  %v9022_v48 = vand.u32 4294901760, %v6700_v29  ;;  %v9029_v29 = vand.u32 4294901760, %v8976_v61  ;;  %v9036_v61 = vand.u32 4294901760, %v8981_v31 }
 0x36c   : > { %v9043_v31 = vand.u32 4294901760, %v8951_v13  ;;  %v9050_v13 = vand.u32 4294901760, %v8958_v38  ;;  %v9055_v38 = vand.u32 4294901760, %v8961_v51  ;;  %v9060_v51 = vand.u32 4294901760, %v9003_v60 }
 0x36d   : > { %v5121_v8 = vpack.c.bf16 %v9022_v48, %v9021_v40  ;;  %v9064_v60 = vand.u32 4294901760, %v9007_v45 }
 0x36e   : > { %3051 = vmatmul.mubr.f32.gmra.mrb[90].mxu1 %v9011_v30  ;;  %v9016_v30 = vand.u32 4294901760, %v6683_v57  ;;  %v9023_v57 = vand.u32 4294901760, %v8972_v47  ;;  %v9030_v47 = vand.u32 4294901760, %v8977_v15  ;;  %v9037_v15 = vand.u32 4294901760, %v8945_v59 }
 0x36f   : > { %3057 = vmatprep.mubr.f32.mxu1 %v7360_v9  ;;  %v9017_v9 = vand.u32 4294901760, %v8968_v25  ;;  %v9024_v25 = vand.u32 4294901760, %v8973_v7  ;;  %v9044_v59 = vand.u32 4294901760, %v8950_v4  ;;  %v9049_v4 = vand.u32 4294901760, %v8959_v28 }
 0x370   : > { %v5117_v3 = vpack.c.bf16 %v9016_v30, %v9015_v34  ;;  %v9056_v28 = vand.u32 4294901760, %v8962_v21 }
 0x371   : > { %v5135_v30 = vpack.c.bf16 %v9044_v59, %v9043_v31  ;;  %v5139_v40 = vpack.c.bf16 %v9050_v13, %v9049_v4  ;;  %v9074_v31 = vld [vmem:[#allocation100_spill] sm:$0xff] }
 0x372   : > { %3060 = vmatmul.mubr.f32.gmra.mrb[92].mxu1 %v7354_v10  ;;  %v9075_v59 = vand.u32 4294901760, %v9074_v31  ;;  %v9105_v31 = vld [vmem:[#allocation25_spill] sm:$0xff] }
 0x373   : > { %3066 = vmatprep.mubr.f32.mxu1 %v7378_v14  ;;  %v9018_v14 = vand.u32 4294901760, %v8969_v37  ;;  %v9025_v37 = vand.u32 4294901760, %v6704_v18  ;;  %v9032_v18 = vand.u32 4294901760, %v6722_v33  ;;  %v9039_v33 = vand.u32 4294901760, %v8948_v1 }
 0x374   : > { %v9046_v1 = vand.u32 4294901760, %v8953_v5  ;;  %v9052_v5 = vand.u32 4294901760, %v8957_v6 }
 0x375   : > { %v5123_v39 = vpack.c.bf16 %v9026_v2, %v9025_v37  ;;  %v5143_v37 = vpack.c.bf16 %v9056_v28, %v9055_v38  ;;  %v9057_v2 = vand.u32 4294901760, %v9000_v53  ;;  %v9085_v38 = vld [vmem:[#allocation16_spill] sm:$0xff]  ;;  %v9086_v28 = vld [vmem:[#allocation17_spill] sm:$0xff] }
 0x376   : > { %3069 = vmatmul.mubr.f32.gmra.mrb[94].mxu1 %v7372_v0 }
 0x377   : > { %3173 = vmatprep.mubr.f32.mxu1 %v9012_v56  ;;  %v9020_v56 = vand.u32 4294901760, %v6692_v19  ;;  %v9027_v19 = vand.u32 4294901760, %v6708_v16  ;;  %v9034_v16 = vand.u32 4294901760, %v6814_v22  ;;  %v9041_v22 = vand.u32 4294901760, %v8984_v50 }
 0x378   : > { %v9047_v50 = vand.u32 4294901760, %v8988_v35 }
 0x379   : > { %v5119_v54 = vpack.c.bf16 %v9020_v56, %v9019_v17  ;;  %v5125_v34 = vpack.c.bf16 %v9028_v52, %v9027_v19  ;;  %v5129_v7 = vpack.c.bf16 %v9034_v16, %v9033_v23 }
 0x37a   : > { %3177 = vmatmul.mubr.f32.vlgmr.msra.gmra.mrb[96].mxu1 %v9017_v9  ;;  %v9031_v9 = vand.u32 4294901760, %v6716_v12  ;;  %v9038_v12 = vand.u32 4294901760, %v6818_v27  ;;  %v9045_v27 = vand.u32 4294901760, %v8954_v55  ;;  %v9051_v55 = vand.u32 4294901760, %v8956_v49 }
 0x37b   : > { %3184 = vmatprep.mubr.f32.mxu1 %v9018_v14  ;;  %5116 = vmatpush3.bf16.msra.mxu1 %v5115_v46  ;;  %v5133_v46 = vpack.c.bf16 %v9040_v58, %v9039_v33  ;;  %v9070_v33 = vld [vmem:[#allocation96_spill] sm:$0xff] }
 0x37c   : > { %5118 = vmatprep.subr.bf16.mxu1 %v5117_v3  ;;  %v5127_v14 = vpack.c.bf16 %v9032_v18, %v9031_v9  ;;  %v5131_v3 = vpack.c.bf16 %v9038_v12, %v9037_v15  ;;  %v5137_v17 = vpack.c.bf16 %v9046_v1, %v9045_v27  ;;  %v5141_v48 = vpack.c.bf16 %v9052_v5, %v9051_v55  ;;  %v9068_v15 = vld [vmem:[#allocation97_spill] sm:$0xff]  ;;  %v9076_v27 = vld [vmem:[#allocation104_spill] sm:$0xff] }
 0x37d   : > { %v9063_v9 = vand.u32 4294901760, %v9006_v26  ;;  %v9069_v26 = vand.u32 4294901760, %v9068_v15  ;;  %v9071_v45 = vand.u32 4294901760, %v9070_v33  ;;  %v9077_v1 = vand.u32 4294901760, %v9076_v27  ;;  %v9099_v15 = vld [vmem:[#allocation62_spill] sm:$0xff]  ;;  %v9102_v33 = vld [vmem:[#allocation24_spill] sm:$0xff] }
 0x37e   : > { %3188 = vmatmul.mubr.f32.gmra.mrb[98].mxu1 %v9023_v57  ;;  %v9053_v57 = vand.u32 4294901760, %v8992_v41  ;;  %v9058_v41 = vand.u32 4294901760, %v9001_v62  ;;  %v9081_v55 = vand.u32 4294901760, %v7372_v0  ;;  %v9087_v0 = vld [vmem:[#allocation34_spill] sm:$0xff] }
 0x37f   : > { %3195 = vmatprep.mubr.f32.mxu1 %v9024_v25  ;;  %5120 = vmatpush3.bf16.msra.mxu1 %v5119_v54 }
 0x380   : > { %5122 = vmatprep.subr.bf16.mxu1 %v5121_v8 }
 0x382   : > { %3199 = vmatmul.mubr.f32.gmra.mrb[100].mxu1 %v9029_v29 }
 0x383   : > { %3206 = vmatprep.mubr.f32.mxu1 %v9030_v47  ;;  %5124 = vmatpush3.bf16.msra.mxu1 %v5123_v39  ;;  %v9062_v47 = vand.u32 4294901760, %v9005_v63 }
 0x384   : > { %5126 = vmatprep.subr.bf16.mxu1 %v5125_v34  ;;  %v9061_v34 = vand.u32 4294901760, %v9004_v36  ;;  %v9065_v36 = vand.u32 4294901760, %v9008_v42 }
 0x386   : > { %3210 = vmatmul.mubr.f32.gmra.mrb[102].mxu1 %v9035_v11  ;;  %v9066_v11 = vld [vmem:[#allocation92_spill] sm:$0xff] }
 0x387   : > { %3217 = vmatprep.mubr.f32.mxu1 %v9036_v61  ;;  %5128 = vmatpush3.bf16.msra.mxu1 %v5127_v14  ;;  %v9067_v63 = vand.u32 4294901760, %v9066_v11 }
 0x388   : > { %5130 = vmatprep.subr.bf16.mxu1 %v5129_v7 }
 0x38a   : > { %3221 = vmatmul.mubr.f32.gmra.mrb[104].mxu1 %v9041_v22 }
 0x38b   : > { %3228 = vmatprep.mubr.f32.mxu1 %v9042_v32  ;;  %5132 = vmatpush3.bf16.msra.mxu1 %v5131_v3 }
 0x38c   : > { %5134 = vmatprep.subr.bf16.mxu1 %v5133_v46  ;;  %v4345_v44 = vpop.f32.mrb[0].mxu1  ;;  %v9072_v46 = vld [vmem:[#allocation101_spill] sm:$0xff] }
 0x38d   : > { %v4346_v56 = vpop.f32.mrb[1].mxu1  ;;  %v9073_v42 = vand.u32 4294901760, %v9072_v46 }
 0x38e   : > { %3232 = vmatmul.mubr.f32.gmra.mrb[106].mxu1 %v9047_v50  ;;  %v7590_v54 = vadd.f32 %v4346_v56, %v4345_v44  ;;  %v9078_v56 = vand.u32 4294901760, %v7354_v10 }
 0x38f   : > { %3239 = vmatprep.mubr.f32.mxu1 %v9048_v24  ;;  %5136 = vmatpush3.bf16.msra.mxu1 %v5135_v30  ;;  %v9079_v24 = vld [vmem:[#allocation107_spill] sm:$0xff] }
 0x390   : > { %5138 = vmatprep.subr.bf16.mxu1 %v5137_v17  ;;  %v4348_v8 = vpop.f32.mrb[2].mxu1  ;;  %v9080_v4 = vand.u32 4294901760, %v9079_v24  ;;  %v9108_v24 = vld [vmem:[#allocation75_spill] sm:$0xff] }
 0x391   : > { %v4349_v35 = vpop.f32.mrb[3].mxu1 }
 0x392   : > { %3243 = vmatmul.mubr.f32.gmra.mrb[108].mxu1 %v9053_v57  ;;  %v7604_v25 = vadd.f32 %v4349_v35, %v4348_v8  ;;  %v9083_v57 = vld [vmem:[#allocation50_spill] sm:$0xff] }
 0x393   : > { %3250 = vmatprep.mubr.f32.mxu1 %v9054_v20  ;;  %5140 = vmatpush3.bf16.msra.mxu1 %v5139_v40  ;;  %v9084_v20 = vld [vmem:[#allocation45_spill] sm:$0xff] }
 0x394   : > { %5142 = vmatprep.subr.bf16.mxu1 %v5141_v48  ;;  %v4351_v49 = vpop.f32.mrb[4].mxu1  ;;  %v9082_v48 = vld [vmem:[#allocation51_spill] sm:$0xff] }
 0x395   : > { %v4352_v6 = vpop.f32.mrb[5].mxu1 }
 0x396   : > { %3254 = vmatmul.mubr.f32.gmra.mrb[110].mxu1 %v9057_v2  ;;  %v7614_v39 = vadd.f32 %v4352_v6, %v4351_v49  ;;  %v9088_v2 = vld [vmem:[#allocation41_spill] sm:$0xff] }
 0x397   : > { %3261 = vmatprep.mubr.f32.mxu1 %v9058_v41  ;;  %5144 = vmatpush3.bf16.msra.mxu1 %v5143_v37  ;;  %v9089_v41 = vld [vmem:[#allocation37_spill] sm:$0xff] }
 0x398   : > { %5146 = vmatprep.subr.bf16.mxu1 %v9059_v43  ;;  %v9090_v43 = vld [vmem:[#allocation18_spill] sm:$0xff] }
 0x399   : > { %v4354_v19 = vpop.f32.mrb[6].mxu1 }
 0x39a   : > { %v4355_v52 = vpop.f32.mrb[7].mxu1  ;;  %3265 = vmatmul.mubr.f32.gmra.mrb[112].mxu1 %v9060_v51  ;;  %v9091_v51 = vld [vmem:[#allocation49_spill] sm:$0xff] }
 0x39b   : > { %v7621_v21 = vadd.f32 %v4355_v52, %v4354_v19  ;;  %3272 = vmatprep.mubr.f32.mxu1 %v9061_v34 }
 0x39d   : > { %v4357_v53 = vpop.f32.mrb[8].mxu1 }
 0x39e   : > { %v4358_v29 = vpop.f32.mrb[9].mxu1  ;;  %3276 = vmatmul.mubr.f32.gmra.mrb[114].mxu1 %v9062_v47  ;;  %v9094_v47 = vld [vmem:[#allocation39_spill] sm:$0xff] }
 0x39f   : > { %v7627_v62 = vadd.f32 %v4358_v29, %v4357_v53  ;;  %3283 = vmatprep.mubr.f32.mxu1 %v9063_v9  ;;  %v9092_v53 = vld [vmem:[#allocation59_spill] sm:$0xff] }
 0x3a0   : > { %v9093_v29 = vld [vmem:[#allocation19_spill] sm:$0xff] }
 0x3a1   : > { %v4360_v18 = vpop.f32.mrb[10].mxu1 }
 0x3a2   : > { %v4361_v14 = vpop.f32.mrb[11].mxu1  ;;  %3287 = vmatmul.mubr.f32.gmra.mrb[116].mxu1 %v9064_v60 }
 0x3a3   : > { %v7633_v23 = vadd.f32 %v4361_v14, %v4360_v18  ;;  %3294 = vmatprep.mubr.f32.mxu1 %v9065_v36  ;;  %v9095_v14 = vld [vmem:[#allocation57_spill] sm:$0xff]  ;;  %v9096_v36 = vld [vmem:[#allocation63_spill] sm:$0xff] }
 0x3a5   : > { %v4363_v16 = vpop.f32.mrb[12].mxu1 }
 0x3a6   : > { %v4364_v7 = vpop.f32.mrb[13].mxu1  ;;  %3298 = vmatmul.mubr.f32.gmra.mrb[118].mxu1 %v9067_v63 }
 0x3a7   : > { %v7639_v61 = vadd.f32 %v4364_v7, %v4363_v16  ;;  %3305 = vmatprep.mubr.f32.mxu1 %v9069_v26  ;;  %v9097_v16 = vld [vmem:[#allocation20_spill] sm:$0xff]  ;;  %v9098_v7 = vld [vmem:[#allocation21_spill] sm:$0xff] }
 0x3a9   : > { %v4366_v12 = vpop.f32.mrb[14].mxu1 }
 0x3aa   : > { %v4367_v3 = vpop.f32.mrb[15].mxu1  ;;  %3309 = vmatmul.mubr.f32.gmra.mrb[120].mxu1 %v9071_v45 }
 0x3ab   : > { %v7645_v58 = vadd.f32 %v4367_v3, %v4366_v12  ;;  %3316 = vmatprep.mubr.f32.mxu1 %v9073_v42  ;;  %v9100_v12 = vld [vmem:[#allocation67_spill] sm:$0xff]  ;;  %v9103_v42 = vld [vmem:[#allocation66_spill] sm:$0xff] }
 0x3ac   : > { %v9101_v3 = vld [vmem:[#allocation43_spill] sm:$0xff] }
 0x3ad   : > { %v4369_v22 = vpop.f32.mrb[16].mxu1 }
 0x3ae   : > { %v4370_v32 = vpop.f32.mrb[17].mxu1  ;;  %3320 = vmatmul.mubr.f32.gmra.mrb[122].mxu1 %v9075_v59  ;;  %v9106_v59 = vld [vmem:[#allocation44_spill] sm:$0xff] }
 0x3af   : > { %v7651_v30 = vadd.f32 %v4370_v32, %v4369_v22  ;;  %3327 = vmatprep.mubr.f32.mxu1 %v9077_v1  ;;  %v9104_v32 = vld [vmem:[#allocation71_spill] sm:$0xff] }
 0x3b1   : > { %v4372_v17 = vpop.f32.mrb[18].mxu1 }
 0x3b2   : > { %v4373_v44 = vpop.f32.mrb[19].mxu1  ;;  %3331 = vmatmul.mubr.f32.gmra.mrb[124].mxu1 %v9078_v56 }
 0x3b3   : > { %v7657_v50 = vadd.f32 %v4373_v44, %v4372_v17  ;;  %3338 = vmatprep.mubr.f32.mxu1 %v9080_v4  ;;  %v9107_v44 = vld [vmem:[#allocation70_spill] sm:$0xff]  ;;  %v9109_v4 = vld [vmem:[#allocation31_spill] sm:$0xff] }
 0x3b5   : > { %v4375_v13 = vpop.f32.mrb[20].mxu1 }
 0x3b6   : > { %v4376_v40 = vpop.f32.mrb[21].mxu1  ;;  %3342 = vmatmul.mubr.f32.gmra.mrb[126].mxu1 %v9081_v55 }
 0x3b7   : > { %v7663_v5 = vadd.f32 %v4376_v40, %v4375_v13  ;;  %3508 = vmatprep.mubr.f32.mxu1 %v9082_v48  ;;  %v9110_v13 = vld [vmem:[#allocation46_spill] sm:$0xff] }
 0x3b9   : > { %v4378_v8 = vpop.f32.mrb[22].mxu1 }
 0x3ba   : > { %v4379_v35 = vpop.f32.mrb[23].mxu1  ;;  %3510 = vmatmul.mubr.f32.vlgmr.msra.gmra.mrb[128].mxu1 %v9083_v57 }
 0x3bb   : > { %v7667_v10 = vadd.f32 %v4379_v35, %v4378_v8  ;;  %3515 = vmatprep.mubr.f32.mxu1 %v9084_v20  ;;  %5148 = vmatpush3.bf16.msra.mxu1 %v9085_v38  ;;  %v9111_v35 = vld [vmem:[#allocation74_spill] sm:$0xff]  ;;  %v9112_v38 = vld [vmem:[#allocation79_spill] sm:$0xff] }
 0x3bc   : > { %5150 = vmatprep.subr.bf16.mxu1 %v9086_v28  ;;  %v9113_v28 = vld [vmem:[#allocation22_spill] sm:$0xff] }
 0x3bd   : > { %v4381_v37 = vpop.f32.mrb[24].mxu1 }
 0x3be   : > { %v4382_v49 = vpop.f32.mrb[25].mxu1  ;;  %3517 = vmatmul.mubr.f32.gmra.mrb[130].mxu1 %v9087_v0 }
 0x3bf   : > { %v7673_v6 = vadd.f32 %v4382_v49, %v4381_v37  ;;  %3522 = vmatprep.mubr.f32.mxu1 %v9088_v2  ;;  %5152 = vmatpush3.bf16.msra.mxu1 %v9089_v41 }
 0x3c0   : > { %5154 = vmatprep.subr.bf16.mxu1 %v9090_v43  ;;  %v9114_v43 = vld [vmem:[#allocation78_spill] sm:$0xff] }
 0x3c1   : > { %v4384_v19 = vpop.f32.mrb[26].mxu1 }
 0x3c2   : > { %v4385_v52 = vpop.f32.mrb[27].mxu1  ;;  %3524 = vmatmul.mubr.f32.gmra.mrb[132].mxu1 %v9091_v51 }
 0x3c3   : > { %v7679_v34 = vadd.f32 %v4385_v52, %v4384_v19  ;;  %3529 = vmatprep.mubr.f32.mxu1 %v9092_v53  ;;  %5156 = vmatpush3.bf16.msra.mxu1 %v9093_v29  ;;  %v9115_v52 = vld [vmem:[#allocation83_spill] sm:$0xff] }
 0x3c4   : > { %5158 = vmatprep.subr.bf16.mxu1 %v9094_v47 }
 0x3c5   : > { %v4387_v9 = vpop.f32.mrb[28].mxu1 }
 0x3c6   : > { %v4388_v18 = vpop.f32.mrb[29].mxu1  ;;  %3531 = vmatmul.mubr.f32.gmra.mrb[134].mxu1 %v9095_v14 }
 0x3c7   : > { %v7685_v60 = vadd.f32 %v4388_v18, %v4387_v9  ;;  %3536 = vmatprep.mubr.f32.mxu1 %v9096_v36  ;;  %5160 = vmatpush3.bf16.msra.mxu1 %v9097_v16  ;;  %v9116_v9 = vld [vmem:[#allocation82_spill] sm:$0xff]  ;;  %v9117_v16 = vld [vmem:[#allocation87_spill] sm:$0xff] }
 0x3c8   : > { %5162 = vmatprep.subr.bf16.mxu1 %v9098_v7 }
 0x3c9   : > { %v4390_v11 = vpop.f32.mrb[30].mxu1 }
 0x3ca   : > { %v4391_v63 = vpop.f32.mrb[31].mxu1  ;;  %3538 = vmatmul.mubr.f32.gmra.mrb[136].mxu1 %v9099_v15 }
 0x3cb   : > { %v7691_v26 = vadd.f32 %v4391_v63, %v4390_v11  ;;  %3543 = vmatprep.mubr.f32.mxu1 %v9100_v12  ;;  %5164 = vmatpush3.bf16.msra.mxu1 %v9101_v3  ;;  %v9118_v63 = vld [vmem:[#allocation86_spill] sm:$0xff] }
 0x3cc   : > { %5166 = vmatprep.subr.bf16.mxu1 %v9102_v33  ;;  %v9119_v33 = vld [vmem:[#allocation91_spill] sm:$0xff] }
 0x3cd   : > { %v4425_v45 = vpop.f32.mrb[32].mxu1 }
 0x3ce   : > { %v4426_v46 = vpop.f32.mrb[33].mxu1  ;;  %3545 = vmatmul.mubr.f32.gmra.mrb[138].mxu1 %v9103_v42 }
 0x3cf   : > { %v4427_v22 = vadd.f32 %v4426_v46, %v4425_v45  ;;  %3550 = vmatprep.mubr.f32.mxu1 %v9104_v32  ;;  %5168 = vmatpush3.bf16.msra.mxu1 %v9105_v31 }
 0x3d0   : > { %5170 = vmatprep.subr.bf16.mxu1 %v9106_v59  ;;  %v9121_v59 = vld [vmem:[#allocation95_spill] sm:$0xff] }
 0x3d1   : > { %v7701_v27 = vadd.f32 %v4427_v22, %v7590_v54  ;;  %v4428_v1 = vpop.f32.mrb[34].mxu1  ;;  %v9120_v22 = vld [vmem:[#allocation90_spill] sm:$0xff] }
 0x3d2   : > { %v4429_v17 = vpop.f32.mrb[35].mxu1  ;;  %3552 = vmatmul.mubr.f32.gmra.mrb[140].mxu1 %v9107_v44 }
 0x3d3   : > { %v4430_v56 = vadd.f32 %v4429_v17, %v4428_v1  ;;  %3557 = vmatprep.mubr.f32.mxu1 %v9108_v24  ;;  %5172 = vmatpush3.bf16.msra.mxu1 %v9109_v4 }
 0x3d4   : > { %5174 = vmatprep.subr.bf16.mxu1 %v9110_v13  ;;  %v9123_v13 = vld [vmem:[#allocation99_spill] sm:$0xff] }
 0x3d5   : > { %v7708_v40 = vadd.f32 %v4430_v56, %v7604_v25  ;;  %v4431_v55 = vpop.f32.mrb[36].mxu1  ;;  %v9122_v56 = vld [vmem:[#allocation94_spill] sm:$0xff] }
 0x3d6   : > { %v4432_v8 = vpop.f32.mrb[37].mxu1  ;;  %3559 = vmatmul.mubr.f32.gmra.mrb[142].mxu1 %v9111_v35 }
 0x3d7   : > { %v4433_v54 = vadd.f32 %v4432_v8, %v4431_v55  ;;  %3564 = vmatprep.mubr.f32.mxu1 %v9112_v38  ;;  %5176 = vmatpush3.bf16.msra.mxu1 %v9113_v28 }
 0x3d9   : > { %v7714_v37 = vadd.f32 %v4433_v54, %v7614_v39  ;;  %v4434_v49 = vpop.f32.mrb[38].mxu1  ;;  %v9124_v54 = vld [vmem:[#allocation98_spill] sm:$0xff] }
 0x3da   : > { %v4435_v41 = vpop.f32.mrb[39].mxu1  ;;  %3566 = vmatmul.mubr.f32.gmra.mrb[144].mxu1 %v9114_v43 }
 0x3db   : > { %v4436_v19 = vadd.f32 %v4435_v41, %v4434_v49  ;;  %3571 = vmatprep.mubr.f32.mxu1 %v9115_v52  ;;  %v9125_v49 = vld [vmem:[#allocation103_spill] sm:$0xff] }
 0x3dd   : > { %v7719_v25 = vadd.f32 %v4436_v19, %v7621_v21  ;;  %v4437_v29 = vpop.f32.mrb[40].mxu1 }
 0x3de   : > { %v4438_v47 = vpop.f32.mrb[41].mxu1  ;;  %3573 = vmatmul.mubr.f32.gmra.mrb[146].mxu1 %v9116_v9 }
 0x3df   : > { %v4439_v18 = vadd.f32 %v4438_v47, %v4437_v29  ;;  %3578 = vmatprep.mubr.f32.mxu1 %v9117_v16  ;;  %v9126_v29 = vld [vmem:[#allocation102_spill] sm:$0xff] }
 0x3e1   : > { %v7724_v39 = vadd.f32 %v4439_v18, %v7627_v62  ;;  %v4440_v7 = vpop.f32.mrb[42].mxu1  ;;  %v9127_v18 = vld [vmem:[#allocation106_spill] sm:$0xff] }
 0x3e2   : > { %v4441_v11 = vpop.f32.mrb[43].mxu1  ;;  %3580 = vmatmul.mubr.f32.gmra.mrb[148].mxu1 %v9118_v63 }
 0x3e3   : > { %v4442_v3 = vadd.f32 %v4441_v11, %v4440_v7  ;;  %3585 = vmatprep.mubr.f32.mxu1 %v9119_v33 }
 0x3e5   : > { %v7729_v21 = vadd.f32 %v4442_v3, %v7633_v23  ;;  %v4443_v45 = vpop.f32.mrb[44].mxu1  ;;  %v9128_v3 = vld [vmem:[#allocation105_spill] sm:$0xff] }
 0x3e6   : > { %v4444_v46 = vpop.f32.mrb[45].mxu1  ;;  %3587 = vmatmul.mubr.f32.gmra.mrb[150].mxu1 %v9120_v22 }
 0x3e7   : > { %v4445_v31 = vadd.f32 %v4444_v46, %v4443_v45  ;;  %3592 = vmatprep.mubr.f32.mxu1 %v9121_v59 }
 0x3e9   : > { %v7734_v62 = vadd.f32 %v4445_v31, %v7639_v61  ;;  %v4446_v1 = vpop.f32.mrb[46].mxu1 }
 0x3ea   : > { %v4447_v17 = vpop.f32.mrb[47].mxu1  ;;  %3594 = vmatmul.mubr.f32.gmra.mrb[152].mxu1 %v9122_v56 }
 0x3eb   : > { %v4448_v4 = vadd.f32 %v4447_v17, %v4446_v1  ;;  %3599 = vmatprep.mubr.f32.mxu1 %v9123_v13 }
 0x3ed   : > { %v7739_v23 = vadd.f32 %v4448_v4, %v7645_v58  ;;  %v4449_v55 = vpop.f32.mrb[48].mxu1 }
 0x3ee   : > { %v4450_v8 = vpop.f32.mrb[49].mxu1  ;;  %3601 = vmatmul.mubr.f32.gmra.mrb[154].mxu1 %v9124_v54 }
 0x3ef   : > { %v4451_v28 = vadd.f32 %v4450_v8, %v4449_v55  ;;  %3606 = vmatprep.mubr.f32.mxu1 %v9125_v49 }
 0x3f1   : > { %v7744_v61 = vadd.f32 %v4451_v28, %v7651_v30  ;;  %v4452_v41 = vpop.f32.mrb[50].mxu1 }
 0x3f2   : > { %v4453_v19 = vpop.f32.mrb[51].mxu1  ;;  %3608 = vmatmul.mubr.f32.gmra.mrb[156].mxu1 %v9126_v29 }
 0x3f3   : > { %v4454_v47 = vadd.f32 %v4453_v19, %v4452_v41  ;;  %3613 = vmatprep.mubr.f32.mxu1 %v9127_v18 }
 0x3f5   : > { %v7749_v58 = vadd.f32 %v4454_v47, %v7657_v50  ;;  %v4455_v7 = vpop.f32.mrb[52].mxu1 }
 0x3f6   : > { %v4456_v11 = vpop.f32.mrb[53].mxu1  ;;  %3615 = vmatmul.mubr.f32.gmra.mrb[158].mxu1 %v9128_v3 }
 0x3f7   : > { %v4457_v45 = vadd.f32 %v4456_v11, %v4455_v7  ;;  %3717 = vmatprep.mubr.f32.mxu1 %v9082_v48 }
 0x3f9   : > { %v7754_v30 = vadd.f32 %v4457_v45, %v7663_v5  ;;  %v4458_v46 = vpop.f32.mrb[54].mxu1 }
 0x3fa   : > { %v4459_v31 = vpop.f32.mrb[55].mxu1  ;;  %3719 = vmatmul.mubr.f32.vlgmr.msra.gmra.mrb[160].mxu1 %v9083_v57 }
 0x3fb   : > { %v4460_v1 = vadd.f32 %v4459_v31, %v4458_v46  ;;  %3724 = vmatprep.mubr.f32.mxu1 %v9084_v20 }
 0x3fd   : > { %v7759_v50 = vadd.f32 %v4460_v1, %v7667_v10  ;;  %v4461_v17 = vpop.f32.mrb[56].mxu1 }
 0x3fe   : > { %v4462_v4 = vpop.f32.mrb[57].mxu1  ;;  %3726 = vmatmul.mubr.f32.gmra.mrb[162].mxu1 %v9087_v0 }
 0x3ff   : > { %v4463_v55 = vadd.f32 %v4462_v4, %v4461_v17  ;;  %3731 = vmatprep.mubr.f32.mxu1 %v9088_v2 }
 0x401   : > { %v7764_v5 = vadd.f32 %v4463_v55, %v7673_v6  ;;  %v4464_v48 = vpop.f32.mrb[58].mxu1 }
 0x402   : > { %v4465_v8 = vpop.f32.mrb[59].mxu1  ;;  %3733 = vmatmul.mubr.f32.gmra.mrb[164].mxu1 %v9091_v51 }
 0x403   : > { %v4466_v57 = vadd.f32 %v4465_v8, %v4464_v48  ;;  %3738 = vmatprep.mubr.f32.mxu1 %v9092_v53 }
 0x405   : > { %v7769_v10 = vadd.f32 %v4466_v57, %v7679_v34  ;;  %v4467_v20 = vpop.f32.mrb[60].mxu1 }
 0x406   : > { %v4468_v28 = vpop.f32.mrb[61].mxu1  ;;  %3740 = vmatmul.mubr.f32.gmra.mrb[166].mxu1 %v9095_v14 }
 0x407   : > { %v4469_v0 = vadd.f32 %v4468_v28, %v4467_v20  ;;  %3745 = vmatprep.mubr.f32.mxu1 %v9096_v36 }
 0x409   : > { %v7774_v6 = vadd.f32 %v4469_v0, %v7685_v60  ;;  %v4470_v2 = vpop.f32.mrb[62].mxu1 }
 0x40a   : > { %v4471_v41 = vpop.f32.mrb[63].mxu1  ;;  %3747 = vmatmul.mubr.f32.gmra.mrb[168].mxu1 %v9099_v15 }
 0x40b   : > { %v4472_v51 = vadd.f32 %v4471_v41, %v4470_v2  ;;  %3752 = vmatprep.mubr.f32.mxu1 %v9100_v12 }
 0x40d   : > { %v7779_v34 = vadd.f32 %v4472_v51, %v7691_v26  ;;  %v4505_v53 = vpop.f32.mrb[64].mxu1 }
 0x40e   : > { %v4506_v19 = vpop.f32.mrb[65].mxu1  ;;  %3754 = vmatmul.mubr.f32.gmra.mrb[170].mxu1 %v9103_v42 }
 0x40f   : > { %v4507_v14 = vadd.f32 %v4506_v19, %v4505_v53  ;;  %3759 = vmatprep.mubr.f32.mxu1 %v9104_v32 }
 0x411   : > { %v7784_v60 = vadd.f32 %v4507_v14, %v7701_v27  ;;  %v4508_v36 = vpop.f32.mrb[66].mxu1 }
 0x412   : > { %v4509_v47 = vpop.f32.mrb[67].mxu1  ;;  %3761 = vmatmul.mubr.f32.gmra.mrb[172].mxu1 %v9107_v44 }
 0x413   : > { %v4510_v15 = vadd.f32 %v4509_v47, %v4508_v36  ;;  %3766 = vmatprep.mubr.f32.mxu1 %v9108_v24 }
 0x415   : > { %v7789_v26 = vadd.f32 %v4510_v15, %v7708_v40  ;;  %v4511_v12 = vpop.f32.mrb[68].mxu1 }
 0x416   : > { %v4512_v7 = vpop.f32.mrb[69].mxu1  ;;  %3768 = vmatmul.mubr.f32.gmra.mrb[174].mxu1 %v9111_v35 }
 0x417   : > { %v4513_v42 = vadd.f32 %v4512_v7, %v4511_v12  ;;  %3773 = vmatprep.mubr.f32.mxu1 %v9112_v38 }
 0x419   : > { %v7794_v32 = vadd.f32 %v4513_v42, %v7714_v37  ;;  %v4514_v27 = vpop.f32.mrb[70].mxu1 }
 0x41a   : > { %v4515_v11 = vpop.f32.mrb[71].mxu1  ;;  %3775 = vmatmul.mubr.f32.gmra.mrb[176].mxu1 %v9114_v43 }
 0x41b   : > { %v4516_v44 = vadd.f32 %v4515_v11, %v4514_v27  ;;  %3780 = vmatprep.mubr.f32.mxu1 %v9115_v52 }
 0x41d   : > { %v7799_v24 = vadd.f32 %v4516_v44, %v7719_v25  ;;  %v4517_v40 = vpop.f32.mrb[72].mxu1 }
 0x41e   : > { %v4518_v45 = vpop.f32.mrb[73].mxu1  ;;  %3782 = vmatmul.mubr.f32.gmra.mrb[178].mxu1 %v9116_v9 }
 0x41f   : > { %v4519_v35 = vadd.f32 %v4518_v45, %v4517_v40  ;;  %3787 = vmatprep.mubr.f32.mxu1 %v9117_v16 }
 0x421   : > { %v7804_v38 = vadd.f32 %v4519_v35, %v7724_v39  ;;  %v4520_v37 = vpop.f32.mrb[74].mxu1 }
 0x422   : > { %v4521_v46 = vpop.f32.mrb[75].mxu1  ;;  %3789 = vmatmul.mubr.f32.gmra.mrb[180].mxu1 %v9118_v63 }
 0x423   : > { %v4522_v43 = vadd.f32 %v4521_v46, %v4520_v37  ;;  %3794 = vmatprep.mubr.f32.mxu1 %v9119_v33 }
 0x425   : > { %v7809_v52 = vadd.f32 %v4522_v43, %v7729_v21  ;;  %v4523_v25 = vpop.f32.mrb[76].mxu1 }
 0x426   : > { %v4524_v31 = vpop.f32.mrb[77].mxu1  ;;  %3796 = vmatmul.mubr.f32.gmra.mrb[182].mxu1 %v9120_v22 }
 0x427   : > { %v4525_v9 = vadd.f32 %v4524_v31, %v4523_v25  ;;  %3801 = vmatprep.mubr.f32.mxu1 %v9121_v59 }
 0x429   : > { %v7814_v16 = vadd.f32 %v4525_v9, %v7734_v62  ;;  %v4526_v39 = vpop.f32.mrb[78].mxu1 }
 0x42a   : > { %v4527_v1 = vpop.f32.mrb[79].mxu1  ;;  %3803 = vmatmul.mubr.f32.gmra.mrb[184].mxu1 %v9122_v56 }
 0x42b   : > { %v4528_v63 = vadd.f32 %v4527_v1, %v4526_v39  ;;  %3808 = vmatprep.mubr.f32.mxu1 %v9123_v13 }
 0x42d   : > { %v7819_v33 = vadd.f32 %v4528_v63, %v7739_v23  ;;  %v4529_v21 = vpop.f32.mrb[80].mxu1 }
 0x42e   : > { %v4530_v17 = vpop.f32.mrb[81].mxu1  ;;  %3810 = vmatmul.mubr.f32.gmra.mrb[186].mxu1 %v9124_v54 }
 0x42f   : > { %v4531_v22 = vadd.f32 %v4530_v17, %v4529_v21  ;;  %3815 = vmatprep.mubr.f32.mxu1 %v9125_v49 }
 0x431   : > { %v7824_v59 = vadd.f32 %v4531_v22, %v7744_v61  ;;  %v4532_v62 = vpop.f32.mrb[82].mxu1 }
 0x432   : > { %v4533_v4 = vpop.f32.mrb[83].mxu1  ;;  %3817 = vmatmul.mubr.f32.gmra.mrb[188].mxu1 %v9126_v29 }
 0x433   : > { %v4534_v56 = vadd.f32 %v4533_v4, %v4532_v62  ;;  %3822 = vmatprep.mubr.f32.mxu1 %v9127_v18 }
 0x435   : > { %v7829_v13 = vadd.f32 %v4534_v56, %v7749_v58  ;;  %v4535_v23 = vpop.f32.mrb[84].mxu1 }
 0x436   : > { %v4536_v55 = vpop.f32.mrb[85].mxu1  ;;  %3824 = vmatmul.mubr.f32.gmra.mrb[190].mxu1 %v9128_v3 }
 0x437   : > { %v4537_v54 = vadd.f32 %v4536_v55, %v4535_v23 }
 0x439   : > { %v7833_v49 = vadd.f32 %v4537_v54, %v7754_v30  ;;  %v4538_v61 = vpop.f32.mrb[86].mxu1 }
 0x43a   : > { %v4539_v48 = vpop.f32.mrb[87].mxu1 }
 0x43b   : > { %v4540_v8 = vadd.f32 %v4539_v48, %v4538_v61 }
 0x43d   : > { %v7836_v57 = vadd.f32 %v4540_v8, %v7759_v50  ;;  %v4541_v29 = vpop.f32.mrb[88].mxu1 }
 0x43e   : > { %v4542_v20 = vpop.f32.mrb[89].mxu1 }
 0x43f   : > { %v4543_v18 = vadd.f32 %v4542_v20, %v4541_v29 }
 0x441   : > { %v7839_v58 = vadd.f32 %v4543_v18, %v7764_v5  ;;  %v4544_v28 = vpop.f32.mrb[90].mxu1 }
 0x442   : > { %v4545_v0 = vpop.f32.mrb[91].mxu1 }
 0x443   : > { %v4546_v2 = vadd.f32 %v4545_v0, %v4544_v28 }
 0x445   : > { %v7842_v3 = vadd.f32 %v4546_v2, %v7769_v10  ;;  %v4547_v30 = vpop.f32.mrb[92].mxu1 }
 0x446   : > { %v4548_v41 = vpop.f32.mrb[93].mxu1 }
 0x447   : > { %v4549_v51 = vadd.f32 %v4548_v41, %v4547_v30 }
 0x449   : > { %v7845_v53 = vadd.f32 %v4549_v51, %v7774_v6  ;;  %v4550_v50 = vpop.f32.mrb[94].mxu1 }
 0x44a   : > { %v4551_v19 = vpop.f32.mrb[95].mxu1 }
 0x44b   : > { %v4552_v14 = vadd.f32 %v4551_v19, %v4550_v50 }
 0x44d   : > { %v7848_v36 = vadd.f32 %v4552_v14, %v7779_v34  ;;  %v4585_v5 = vpop.f32.mrb[96].mxu1 }
 0x44e   : > { %v4586_v47 = vpop.f32.mrb[97].mxu1 }
 0x44f   : > { %v4587_v15 = vadd.f32 %v4586_v47, %v4585_v5 }
 0x451   : > { %v7851_v12 = vadd.f32 %v4587_v15, %v7784_v60  ;;  %v4588_v10 = vpop.f32.mrb[98].mxu1 }
 0x452   : > { %v4589_v7 = vpop.f32.mrb[99].mxu1 }
 0x453   : > { %v4590_v42 = vadd.f32 %v4589_v7, %v4588_v10 }
 0x455   : > { %v7854_v27 = vadd.f32 %v4590_v42, %v7789_v26  ;;  %v4591_v6 = vpop.f32.mrb[100].mxu1 }
 0x456   : > { %v4592_v11 = vpop.f32.mrb[101].mxu1 }
 0x457   : > { %v4593_v44 = vadd.f32 %v4592_v11, %v4591_v6 }
 0x459   : > { %v7857_v40 = vadd.f32 %v4593_v44, %v7794_v32  ;;  %v4594_v34 = vpop.f32.mrb[102].mxu1 }
 0x45a   : > { %v4595_v45 = vpop.f32.mrb[103].mxu1 }
 0x45b   : > { %v4596_v35 = vadd.f32 %v4595_v45, %v4594_v34 }
 0x45d   : > { %v7860_v37 = vadd.f32 %v4596_v35, %v7799_v24  ;;  %v4597_v60 = vpop.f32.mrb[104].mxu1 }
 0x45e   : > { %v4598_v46 = vpop.f32.mrb[105].mxu1 }
 0x45f   : > { %v4599_v43 = vadd.f32 %v4598_v46, %v4597_v60 }
 0x461   : > { %v7863_v25 = vadd.f32 %v4599_v43, %v7804_v38  ;;  %v4600_v26 = vpop.f32.mrb[106].mxu1 }
 0x462   : > { %v4601_v31 = vpop.f32.mrb[107].mxu1 }
 0x463   : > { %v4602_v9 = vadd.f32 %v4601_v31, %v4600_v26 }
 0x465   : > { %v7866_v39 = vadd.f32 %v4602_v9, %v7809_v52  ;;  %v4603_v32 = vpop.f32.mrb[108].mxu1 }
 0x466   : > { %v4604_v1 = vpop.f32.mrb[109].mxu1 }
 0x467   : > { %v4605_v63 = vadd.f32 %v4604_v1, %v4603_v32 }
 0x469   : > { %v7869_v21 = vadd.f32 %v4605_v63, %v7814_v16  ;;  %v4606_v24 = vpop.f32.mrb[110].mxu1 }
 0x46a   : > { %v4607_v17 = vpop.f32.mrb[111].mxu1 }
 0x46b   : > { %v4608_v22 = vadd.f32 %v4607_v17, %v4606_v24 }
 0x46d   : > { %v7872_v62 = vadd.f32 %v4608_v22, %v7819_v33  ;;  %v4609_v38 = vpop.f32.mrb[112].mxu1 }
 0x46e   : > { %v4610_v4 = vpop.f32.mrb[113].mxu1 }
 0x46f   : > { %v4611_v56 = vadd.f32 %v4610_v4, %v4609_v38 }
 0x471   : > { %v7875_v23 = vadd.f32 %v4611_v56, %v7824_v59  ;;  %v4612_v52 = vpop.f32.mrb[114].mxu1 }
 0x472   : > { %v4613_v55 = vpop.f32.mrb[115].mxu1 }
 0x473   : > { %v4614_v54 = vadd.f32 %v4613_v55, %v4612_v52 }
 0x475   : > { %v7878_v61 = vadd.f32 %v4614_v54, %v7829_v13  ;;  %v4615_v16 = vpop.f32.mrb[116].mxu1 }
 0x476   : > { %v4616_v48 = vpop.f32.mrb[117].mxu1 }
 0x477   : > { %v4617_v8 = vadd.f32 %v4616_v48, %v4615_v16 }
 0x479   : > { %v7881_v29 = vadd.f32 %v4617_v8, %v7833_v49  ;;  %v4618_v33 = vpop.f32.mrb[118].mxu1 }
 0x47a   : > { %v4619_v20 = vpop.f32.mrb[119].mxu1 }
 0x47b   : > { %v4620_v18 = vadd.f32 %v4619_v20, %v4618_v33 }
 0x47d   : > { %v7884_v28 = vadd.f32 %v4620_v18, %v7836_v57  ;;  %v4621_v59 = vpop.f32.mrb[120].mxu1 }
 0x47e   : > { %v4622_v0 = vpop.f32.mrb[121].mxu1 }
 0x47f   : > { %v4623_v2 = vadd.f32 %v4622_v0, %v4621_v59 }
 0x481   : > { %v7887_v30 = vadd.f32 %v4623_v2, %v7839_v58  ;;  %v4624_v13 = vpop.f32.mrb[122].mxu1 }
 0x482   : > { %v4625_v41 = vpop.f32.mrb[123].mxu1 }
 0x483   : > { %v4626_v51 = vadd.f32 %v4625_v41, %v4624_v13 }
 0x485   : > { %v7890_v50 = vadd.f32 %v4626_v51, %v7842_v3  ;;  %v4627_v49 = vpop.f32.mrb[124].mxu1 }
 0x486   : > { %v4628_v19 = vpop.f32.mrb[125].mxu1 }
 0x487   : > { %v4629_v14 = vadd.f32 %v4628_v19, %v4627_v49 }
 0x489   : > { %v7893_v5 = vadd.f32 %v4629_v14, %v7845_v53  ;;  %v4630_v57 = vpop.f32.mrb[126].mxu1 }
 0x48a   : > { %v4631_v47 = vpop.f32.mrb[127].mxu1 }
 0x48b   : > { %v4632_v15 = vadd.f32 %v4631_v47, %v4630_v57 }
 0x48d   : > { %v7896_v10 = vadd.f32 %v4632_v15, %v7848_v36  ;;  %v4665_v58 = vpop.f32.mrb[128].mxu1 }
 0x48e   : > { %v4666_v7 = vpop.f32.mrb[129].mxu1 }
 0x48f   : > { %v4667_v42 = vadd.f32 %v4666_v7, %v4665_v58 }
 0x491   : > { %v7899_v6 = vadd.f32 %v4667_v42, %v7851_v12  ;;  %v4668_v3 = vpop.f32.mrb[130].mxu1 }
 0x492   : > { %v4669_v11 = vpop.f32.mrb[131].mxu1 }
 0x493   : > { %v4670_v44 = vadd.f32 %v4669_v11, %v4668_v3 }
 0x495   : > { %v7902_v34 = vadd.f32 %v4670_v44, %v7854_v27  ;;  %v4671_v53 = vpop.f32.mrb[132].mxu1 }
 0x496   : > { %v4672_v45 = vpop.f32.mrb[133].mxu1 }
 0x497   : > { %v4673_v35 = vadd.f32 %v4672_v45, %v4671_v53 }
 0x499   : > { %v7905_v60 = vadd.f32 %v4673_v35, %v7857_v40  ;;  %v4674_v36 = vpop.f32.mrb[134].mxu1 }
 0x49a   : > { %v4675_v46 = vpop.f32.mrb[135].mxu1 }
 0x49b   : > { %v4676_v43 = vadd.f32 %v4675_v46, %v4674_v36 }
 0x49d   : > { %v7908_v26 = vadd.f32 %v4676_v43, %v7860_v37  ;;  %v4677_v12 = vpop.f32.mrb[136].mxu1  ;;  %v5491_v43 = vld [vmem:[%s5932_s24] sm:$0xff] }
 0x49e   : > { %v4678_v31 = vpop.f32.mrb[137].mxu1 }
 0x49f   : > { %v4679_v9 = vadd.f32 %v4678_v31, %v4677_v12 }
 0x4a1   : > { %v7911_v32 = vadd.f32 %v4679_v9, %v7863_v25  ;;  %v4680_v27 = vpop.f32.mrb[138].mxu1 }
 0x4a2   : > { %v4681_v1 = vpop.f32.mrb[139].mxu1 }
 0x4a3   : > { %v4682_v63 = vadd.f32 %v4681_v1, %v4680_v27 }
 0x4a5   : > { %v7914_v24 = vadd.f32 %v4682_v63, %v7866_v39  ;;  %v4683_v40 = vpop.f32.mrb[140].mxu1  ;;  %v5492_v63 = vld [vmem:[%s5932_s24 + $0x8] sm:$0xff] }
 0x4a6   : > { %v4684_v17 = vpop.f32.mrb[141].mxu1 }
 0x4a7   : > { %v4685_v22 = vadd.f32 %v4684_v17, %v4683_v40 }
 0x4a9   : > { %v7917_v38 = vadd.f32 %v4685_v22, %v7869_v21  ;;  %v4686_v37 = vpop.f32.mrb[142].mxu1 }
 0x4aa   : > { %v4687_v4 = vpop.f32.mrb[143].mxu1 }
 0x4ab   : > { %v4688_v56 = vadd.f32 %v4687_v4, %v4686_v37 }
 0x4ad   : > { %v7920_v52 = vadd.f32 %v4688_v56, %v7872_v62  ;;  %v4689_v25 = vpop.f32.mrb[144].mxu1  ;;  %v5493_v56 = vld [vmem:[%s5932_s24 + $0x10] sm:$0xff] }
 0x4ae   : > { %v4690_v55 = vpop.f32.mrb[145].mxu1 }
 0x4af   : > { %v4691_v54 = vadd.f32 %v4690_v55, %v4689_v25 }
 0x4b1   : > { %v7923_v16 = vadd.f32 %v4691_v54, %v7875_v23  ;;  %v4692_v39 = vpop.f32.mrb[146].mxu1 }
 0x4b2   : > { %v4693_v48 = vpop.f32.mrb[147].mxu1 }
 0x4b3   : > { %v4694_v8 = vadd.f32 %v4693_v48, %v4692_v39 }
 0x4b5   : > { %v7926_v33 = vadd.f32 %v4694_v8, %v7878_v61  ;;  %v4695_v21 = vpop.f32.mrb[148].mxu1  ;;  %v5494_v8 = vld [vmem:[%s5932_s24 + $0x18] sm:$0xff] }
 0x4b6   : > { %v4696_v20 = vpop.f32.mrb[149].mxu1 }
 0x4b7   : > { %v4697_v18 = vadd.f32 %v4696_v20, %v4695_v21 }
 0x4b9   : > { %v7929_v59 = vadd.f32 %v4697_v18, %v7881_v29  ;;  %v4698_v62 = vpop.f32.mrb[150].mxu1 }
 0x4ba   : > { %v4699_v0 = vpop.f32.mrb[151].mxu1 }
 0x4bb   : > { %v4700_v2 = vadd.f32 %v4699_v0, %v4698_v62 }
 0x4bd   : > { %v7932_v13 = vadd.f32 %v4700_v2, %v7884_v28  ;;  %v4701_v23 = vpop.f32.mrb[152].mxu1  ;;  %v5495_v2 = vld [vmem:[%s5932_s24 + $0x20] sm:$0xff] }
 0x4be   : > { %v4702_v41 = vpop.f32.mrb[153].mxu1 }
 0x4bf   : > { %v4703_v51 = vadd.f32 %v4702_v41, %v4701_v23 }
 0x4c1   : > { %v7935_v49 = vadd.f32 %v4703_v51, %v7887_v30  ;;  %v4704_v61 = vpop.f32.mrb[154].mxu1 }
 0x4c2   : > { %v4705_v19 = vpop.f32.mrb[155].mxu1 }
 0x4c3   : > { %v4706_v14 = vadd.f32 %v4705_v19, %v4704_v61 }
 0x4c5   : > { %v7938_v57 = vadd.f32 %v4706_v14, %v7890_v50  ;;  %v4707_v29 = vpop.f32.mrb[156].mxu1  ;;  %v7949_v50 = vld [vmem:[%s8265_s4] ss:$0 sm:$0xff]  ;;  %v5496_v14 = vld [vmem:[%s5932_s24 + $0x28] sm:$0xff] }
 0x4c6   : > { %v4708_v47 = vpop.f32.mrb[157].mxu1 }
 0x4c7   : > { %v4709_v15 = vadd.f32 %v4708_v47, %v4707_v29 }
 0x4c9   : > { %v7941_v58 = vadd.f32 %v4709_v15, %v7893_v5  ;;  %v4710_v28 = vpop.f32.mrb[158].mxu1 }
 0x4ca   : > { %v4711_v7 = vpop.f32.mrb[159].mxu1 }
 0x4cb   : > { %v4712_v42 = vadd.f32 %v4711_v7, %v4710_v28 }
 0x4cd   : > { %v7944_v3 = vadd.f32 %v4712_v42, %v7896_v10  ;;  %v4745_v30 = vpop.f32.mrb[160].mxu1  ;;  %v5497_v42 = vld [vmem:[%s5932_s24 + $0x30] sm:$0xff] }
 0x4ce   : > { %v4746_v11 = vpop.f32.mrb[161].mxu1 }
 0x4cf   : > { %v4747_v44 = vadd.f32 %v4746_v11, %v4745_v30 }
 0x4d1   : > { %v3721_v53 = vadd.f32 %v4747_v44, %v7899_v6  ;;  %v4748_v5 = vpop.f32.mrb[162].mxu1 }
 0x4d2   : > { %v4749_v45 = vpop.f32.mrb[163].mxu1 }
 0x4d3   : > { %v4750_v35 = vadd.f32 %v4749_v45, %v4748_v5  ;;  %v3887_v36 = vadd.f32 %v7949_v50, %v3721_v53  ;;  %v5498_v45 = vld [vmem:[%s5932_s24 + $0x38] sm:$0xff] }
 0x4d5   : > { %v3728_v46 = vadd.f32 %v4750_v35, %v7902_v34  ;;  %v4751_v10 = vpop.f32.mrb[164].mxu1  ;;  %v7955_v12 = vadd.f32 %v5491_v43, %v3887_v36 }
 0x4d6   : > { %v4752_v31 = vpop.f32.mrb[165].mxu1 }
 0x4d7   : > { %v4753_v9 = vadd.f32 %v4752_v31, %v4751_v10  ;;  %3919 = vadd.xlane.f32.xlu0 %v7955_v12  ;;  %v3888_v27 = vadd.f32 %v7949_v50, %v3728_v46  ;;  %v5499_v31 = vld [vmem:[%s5932_s24 + $0x40] sm:$0xff] }
 0x4d9   : > { %v3735_v6 = vadd.f32 %v4753_v9, %v7905_v60  ;;  %v4754_v1 = vpop.f32.mrb[166].mxu1  ;;  %v7961_v40 = vadd.f32 %v5492_v63, %v3888_v27 }
 0x4da   : > { %v4755_v17 = vpop.f32.mrb[167].mxu1 }
 0x4db   : > { %v4756_v34 = vadd.f32 %v4755_v17, %v4754_v1  ;;  %3921 = vadd.xlane.f32.xlu0 %v7961_v40  ;;  %v3889_v22 = vadd.f32 %v7949_v50, %v3735_v6  ;;  %v5500_v17 = vld [vmem:[%s5932_s24 + $0x48] sm:$0xff] }
 0x4dd   : > { %v3742_v37 = vadd.f32 %v4756_v34, %v7908_v26  ;;  %v4757_v4 = vpop.f32.mrb[168].mxu1  ;;  %v7967_v25 = vadd.f32 %v5493_v56, %v3889_v22 }
 0x4de   : > { %v4758_v55 = vpop.f32.mrb[169].mxu1 }
 0x4df   : > { %v4759_v60 = vadd.f32 %v4758_v55, %v4757_v4  ;;  %3923 = vadd.xlane.f32.xlu1 %v7967_v25  ;;  %v3890_v54 = vadd.f32 %v7949_v50, %v3742_v37  ;;  %v5501_v55 = vld [vmem:[%s5932_s24 + $0x50] sm:$0xff] }
 0x4e1   : > { %v3749_v39 = vadd.f32 %v4759_v60, %v7911_v32  ;;  %v4760_v48 = vpop.f32.mrb[170].mxu1  ;;  %v7973_v21 = vadd.f32 %v5494_v8, %v3890_v54 }
 0x4e2   : > { %v4761_v20 = vpop.f32.mrb[171].mxu1 }
 0x4e3   : > { %v4762_v26 = vadd.f32 %v4761_v20, %v4760_v48  ;;  %3925 = vadd.xlane.f32.xlu1 %v7973_v21  ;;  %v3891_v18 = vadd.f32 %v7949_v50, %v3749_v39  ;;  %v5502_v20 = vld [vmem:[%s5932_s24 + $0x58] sm:$0xff] }
 0x4e5   : > { %v3756_v62 = vadd.f32 %v4762_v26, %v7914_v24  ;;  %v4763_v0 = vpop.f32.mrb[172].mxu1  ;;  %v7979_v23 = vadd.f32 %v5495_v2, %v3891_v18 }
 0x4e6   : > { %v4764_v41 = vpop.f32.mrb[173].mxu1 }
 0x4e7   : > { %v4765_v32 = vadd.f32 %v4764_v41, %v4763_v0  ;;  %3927 = vadd.xlane.f32.xlu0 %v7979_v23  ;;  %v3892_v51 = vadd.f32 %v7949_v50, %v3756_v62  ;;  %v5503_v41 = vld [vmem:[%s5932_s24 + $0x60] sm:$0xff] }
 0x4e9   : > { %v3763_v61 = vadd.f32 %v4765_v32, %v7917_v38  ;;  %v4766_v19 = vpop.f32.mrb[174].mxu1  ;;  %v7985_v29 = vadd.f32 %v5496_v14, %v3892_v51 }
 0x4ea   : > { %v4767_v47 = vpop.f32.mrb[175].mxu1 }
 0x4eb   : > { %v4768_v24 = vadd.f32 %v4767_v47, %v4766_v19  ;;  %3929 = vadd.xlane.f32.xlu1 %v7985_v29  ;;  %v3893_v15 = vadd.f32 %v7949_v50, %v3763_v61  ;;  %v5504_v47 = vld [vmem:[%s5932_s24 + $0x68] sm:$0xff] }
 0x4ed   : > { %v3770_v28 = vadd.f32 %v4768_v24, %v7920_v52  ;;  %v4769_v7 = vpop.f32.mrb[176].mxu1  ;;  %v7991_v30 = vadd.f32 %v5497_v42, %v3893_v15  ;;  %v5505_v42 = vld [vmem:[%s5932_s24 + $0x70] sm:$0xff] }
 0x4ee   : > { %v4770_v11 = vpop.f32.mrb[177].mxu1 }
 0x4ef   : > { %v4771_v38 = vadd.f32 %v4770_v11, %v4769_v7  ;;  %3931 = vadd.xlane.f32.xlu0 %v7991_v30  ;;  %v3894_v44 = vadd.f32 %v7949_v50, %v3770_v28 }
 0x4f1   : > { %v3777_v53 = vadd.f32 %v4771_v38, %v7923_v16  ;;  %v4772_v5 = vpop.f32.mrb[178].mxu1  ;;  %v7997_v35 = vadd.f32 %v5498_v45, %v3894_v44 }
 0x4f2   : > { %v4773_v36 = vpop.f32.mrb[179].mxu1 }
 0x4f3   : > { %v4774_v52 = vadd.f32 %v4773_v36, %v4772_v5  ;;  %3933 = vadd.xlane.f32.xlu1 %v7997_v35  ;;  %v3895_v46 = vadd.f32 %v7949_v50, %v3777_v53 }
 0x4f5   : > { %v3784_v10 = vadd.f32 %v4774_v52, %v7926_v33  ;;  %v4775_v43 = vpop.f32.mrb[180].mxu1  ;;  %v8003_v9 = vadd.f32 %v5499_v31, %v3895_v46 }
 0x4f6   : > { %v4776_v27 = vpop.f32.mrb[181].mxu1 }
 0x4f7   : > { %v4777_v16 = vadd.f32 %v4776_v27, %v4775_v43  ;;  %3935 = vadd.xlane.f32.xlu0 %v8003_v9  ;;  %v3896_v6 = vadd.f32 %v7949_v50, %v3784_v10 }
 0x4f9   : > { %v3791_v1 = vadd.f32 %v4777_v16, %v7929_v59  ;;  %v4778_v63 = vpop.f32.mrb[182].mxu1  ;;  %v8009_v34 = vadd.f32 %v5500_v17, %v3896_v6 }
 0x4fa   : > { %v4779_v22 = vpop.f32.mrb[183].mxu1 }
 0x4fb   : > { %v4780_v33 = vadd.f32 %v4779_v22, %v4778_v63  ;;  %3937 = vadd.xlane.f32.xlu1 %v8009_v34  ;;  %v3897_v37 = vadd.f32 %v7949_v50, %v3791_v1 }
 0x4fd   : > { %v3798_v4 = vadd.f32 %v4780_v33, %v7932_v13  ;;  %v4781_v56 = vpop.f32.mrb[184].mxu1  ;;  %v8015_v60 = vadd.f32 %v5501_v55, %v3897_v37 }
 0x4fe   : > { %v4782_v54 = vpop.f32.mrb[185].mxu1 }
 0x4ff   : > { %v4783_v59 = vadd.f32 %v4782_v54, %v4781_v56  ;;  %3939 = vadd.xlane.f32.xlu0 %v8015_v60  ;;  %v3898_v39 = vadd.f32 %v7949_v50, %v3798_v4 }
 0x501   : > { %v3805_v48 = vadd.f32 %v4783_v59, %v7935_v49  ;;  %v4784_v8 = vpop.f32.mrb[186].mxu1  ;;  %v8021_v26 = vadd.f32 %v5502_v20, %v3898_v39 }
 0x502   : > { %v4785_v18 = vpop.f32.mrb[187].mxu1 }
 0x503   : > { %v4786_v13 = vadd.f32 %v4785_v18, %v4784_v8  ;;  %3941 = vadd.xlane.f32.xlu1 %v8021_v26  ;;  %v3899_v62 = vadd.f32 %v7949_v50, %v3805_v48 }
 0x505   : > { %v3812_v0 = vadd.f32 %v4786_v13, %v7938_v57  ;;  %v4787_v2 = vpop.f32.mrb[188].mxu1  ;;  %v8027_v32 = vadd.f32 %v5503_v41, %v3899_v62 }
 0x506   : > { %v4788_v51 = vpop.f32.mrb[189].mxu1 }
 0x507   : > { %v4789_v49 = vadd.f32 %v4788_v51, %v4787_v2  ;;  %3943 = vadd.xlane.f32.xlu0 %v8027_v32  ;;  %v3900_v61 = vadd.f32 %v7949_v50, %v3812_v0 }
 0x509   : > { %v3819_v19 = vadd.f32 %v4789_v49, %v7941_v58  ;;  %v4790_v14 = vpop.f32.mrb[190].mxu1  ;;  %v8033_v24 = vadd.f32 %v5504_v47, %v3900_v61  ;;  %v5506_v58 = vld [vmem:[%s5932_s24 + $0x78] sm:$0xff]  ;;  %s8208_s24 = scalar_lea.hbm %s8268_s7, %s4312_s15 }
 0x50a   : > { %v4791_v15 = vpop.f32.mrb[191].mxu1 }
 0x50b   : > { %v4792_v57 = vadd.f32 %v4791_v15, %v4790_v14  ;;  %3945 = vadd.xlane.f32.xlu1 %v8033_v24  ;;  %v3901_v28 = vadd.f32 %v7949_v50, %v3819_v19 }
 0x50d   : > { %v3826_v7 = vadd.f32 %v4792_v57, %v7944_v3  ;;  %v8039_v11 = vadd.f32 %v5505_v42, %v3901_v28 }
 0x50f   : > { %3947 = vadd.xlane.f32.xlu0 %v8039_v11  ;;  %v3902_v38 = vadd.f32 %v7949_v50, %v3826_v7 }
 0x511   : > { %v8044_v44 = vadd.f32 %v5506_v58, %v3902_v38 }
 0x513   : > { %3949 = vadd.xlane.f32.xlu1 %v8044_v44 }
 0x564   : > { %v3920_v53 = vpop.xlane.xlu0 %3919 }
 0x565   : > { %v3952_v5 = vmul.f32 0.0078125, %v3920_v53 }
 0x567   : > { %v8048_v45 = vsub.f32 %v7955_v12, %v3952_v5 }
 0x568   : > { %v3922_v36 = vpop.xlane.xlu0 %3921 }
 0x569   : > { %v3953_v52 = vmul.f32 0.0078125, %v3922_v36  ;;  %v3984_v3 = vmul.f32 %v8048_v45, %v8048_v45 }
 0x56b   : > { %v8053_v46 = vsub.f32 %v7961_v40, %v3953_v52  ;;  %4000 = vadd.xlane.f32.xlu0 %v3984_v3 }
 0x56c   : > { %v3924_v50 = vpop.xlane.xlu1 %3923 }
 0x56d   : > { %v3954_v10 = vmul.f32 0.0078125, %v3924_v50  ;;  %v3985_v43 = vmul.f32 %v8053_v46, %v8053_v46 }
 0x56f   : > { %v8058_v31 = vsub.f32 %v7967_v25, %v3954_v10  ;;  %4002 = vadd.xlane.f32.xlu1 %v3985_v43 }
 0x570   : > { %v3926_v12 = vpop.xlane.xlu1 %3925 }
 0x571   : > { %v3955_v27 = vmul.f32 0.0078125, %v3926_v12  ;;  %v3986_v16 = vmul.f32 %v8058_v31, %v8058_v31 }
 0x573   : > { %v8063_v6 = vsub.f32 %v7973_v21, %v3955_v27  ;;  %4004 = vadd.xlane.f32.xlu0 %v3986_v16 }
 0x574   : > { %v3928_v40 = vpop.xlane.xlu0 %3927 }
 0x575   : > { %v3956_v1 = vmul.f32 0.0078125, %v3928_v40  ;;  %v3987_v63 = vmul.f32 %v8063_v6, %v8063_v6 }
 0x577   : > { %v8068_v17 = vsub.f32 %v7979_v23, %v3956_v1  ;;  %4006 = vadd.xlane.f32.xlu1 %v3987_v63  ;;  %v8130_v1 = vld [vmem:[%s8266_s5] ss:$0 sm:$0xff] }
 0x578   : > { %v3930_v25 = vpop.xlane.xlu1 %3929 }
 0x579   : > { %v3957_v22 = vmul.f32 0.0078125, %v3930_v25  ;;  %v3988_v33 = vmul.f32 %v8068_v17, %v8068_v17 }
 0x57b   : > { %v8073_v37 = vsub.f32 %v7985_v29, %v3957_v22  ;;  %4008 = vadd.xlane.f32.xlu0 %v3988_v33  ;;  %v8136_v33 = vld [vmem:[%s8267_s6] ss:$0 sm:$0xff] }
 0x57c   : > { %v3932_v21 = vpop.xlane.xlu0 %3931 }
 0x57d   : > { %v3958_v4 = vmul.f32 0.0078125, %v3932_v21  ;;  %v3989_v56 = vmul.f32 %v8073_v37, %v8073_v37 }
 0x57f   : > { %v8078_v55 = vsub.f32 %v7991_v30, %v3958_v4  ;;  %4010 = vadd.xlane.f32.xlu1 %v3989_v56 }
 0x580   : > { %v3934_v23 = vpop.xlane.xlu1 %3933 }
 0x581   : > { %v3959_v54 = vmul.f32 0.0078125, %v3934_v23  ;;  %v3990_v59 = vmul.f32 %v8078_v55, %v8078_v55 }
 0x583   : > { %v8083_v39 = vsub.f32 %v7997_v35, %v3959_v54  ;;  %4012 = vadd.xlane.f32.xlu0 %v3990_v59 }
 0x584   : > { %v3936_v29 = vpop.xlane.xlu0 %3935 }
 0x585   : > { %v3960_v48 = vmul.f32 0.0078125, %v3936_v29  ;;  %v3991_v8 = vmul.f32 %v8083_v39, %v8083_v39 }
 0x587   : > { %v8088_v20 = vsub.f32 %v8003_v9, %v3960_v48  ;;  %4014 = vadd.xlane.f32.xlu1 %v3991_v8 }
 0x588   : > { %v3938_v30 = vpop.xlane.xlu1 %3937 }
 0x589   : > { %v3961_v18 = vmul.f32 0.0078125, %v3938_v30  ;;  %v3992_v13 = vmul.f32 %v8088_v20, %v8088_v20 }
 0x58b   : > { %v8093_v62 = vsub.f32 %v8009_v34, %v3961_v18  ;;  %4016 = vadd.xlane.f32.xlu0 %v3992_v13 }
 0x58c   : > { %v3940_v35 = vpop.xlane.xlu0 %3939 }
 0x58d   : > { %v3962_v0 = vmul.f32 0.0078125, %v3940_v35  ;;  %v3993_v2 = vmul.f32 %v8093_v62, %v8093_v62 }
 0x58f   : > { %v8098_v41 = vsub.f32 %v8015_v60, %v3962_v0  ;;  %4018 = vadd.xlane.f32.xlu1 %v3993_v2 }
 0x590   : > { %v3942_v9 = vpop.xlane.xlu1 %3941 }
 0x591   : > { %v3963_v51 = vmul.f32 0.0078125, %v3942_v9  ;;  %v3994_v49 = vmul.f32 %v8098_v41, %v8098_v41 }
 0x593   : > { %v8103_v61 = vsub.f32 %v8021_v26, %v3963_v51  ;;  %4020 = vadd.xlane.f32.xlu0 %v3994_v49 }
 0x594   : > { %v3944_v34 = vpop.xlane.xlu0 %3943 }
 0x595   : > { %v3964_v19 = vmul.f32 0.0078125, %v3944_v34  ;;  %v3995_v14 = vmul.f32 %v8103_v61, %v8103_v61 }
 0x597   : > { %v8108_v47 = vsub.f32 %v8027_v32, %v3964_v19  ;;  %4022 = vadd.xlane.f32.xlu1 %v3995_v14 }
 0x598   : > { %v3946_v60 = vpop.xlane.xlu1 %3945 }
 0x599   : > { %v3965_v15 = vmul.f32 0.0078125, %v3946_v60  ;;  %v3996_v57 = vmul.f32 %v8108_v47, %v8108_v47 }
 0x59b   : > { %v8113_v28 = vsub.f32 %v8033_v24, %v3965_v15  ;;  %4024 = vadd.xlane.f32.xlu0 %v3996_v57 }
 0x59c   : > { %v3948_v26 = vpop.xlane.xlu0 %3947 }
 0x59d   : > { %v3966_v7 = vmul.f32 0.0078125, %v3948_v26  ;;  %v3997_v42 = vmul.f32 %v8113_v28, %v8113_v28 }
 0x59f   : > { %v8118_v38 = vsub.f32 %v8039_v11, %v3966_v7  ;;  %4026 = vadd.xlane.f32.xlu1 %v3997_v42 }
 0x5a0   : > { %v3950_v32 = vpop.xlane.xlu1 %3949 }
 0x5a1   : > { %v3967_v58 = vmul.f32 0.0078125, %v3950_v32  ;;  %v3998_v53 = vmul.f32 %v8118_v38, %v8118_v38 }
 0x5a3   : > { %v8123_v5 = vsub.f32 %v8044_v44, %v3967_v58  ;;  %4028 = vadd.xlane.f32.xlu0 %v3998_v53 }
 0x5a5   : > { %v3999_v24 = vmul.f32 %v8123_v5, %v8123_v5 }
 0x5a7   : > { %4030 = vadd.xlane.f32.xlu1 %v3999_v24 }
 0x5f8   : > { %v4001_v36 = vpop.xlane.xlu0 %4000 }
 0x5f9   : > { %v4032_v52 = vmul.f32 0.0078125, %v4001_v36 }
 0x5fb   : > { %v4048_v3 = vadd.f32 1e-05, %v4032_v52 }
 0x5fc   : > { %v4003_v50 = vpop.xlane.xlu1 %4002 }
 0x5fd   : > { %5459 = vrsqrt.f32 %v4048_v3  ;;  %v4033_v11 = vmul.f32 0.0078125, %v4003_v50 }
 0x5ff   : > { %v4049_v10 = vadd.f32 1e-05, %v4033_v11 }
 0x600   : > { %v4005_v43 = vpop.xlane.xlu0 %4004 }
 0x601   : > { %5461 = vrsqrt.f32 %v4049_v10  ;;  %v4034_v12 = vmul.f32 0.0078125, %v4005_v43 }
 0x603   : > { %v4050_v27 = vadd.f32 1e-05, %v4034_v12 }
 0x604   : > { %v4007_v16 = vpop.xlane.xlu1 %4006 }
 0x605   : > { %5463 = vrsqrt.f32 %v4050_v27  ;;  %v4035_v44 = vmul.f32 0.0078125, %v4007_v16 }
 0x607   : > { %v5460_v40 = vpop.eup %5459  ;;  %v4051_v63 = vadd.f32 1e-05, %v4035_v44 }
 0x608   : > { %v4080_v25 = vmul.f32 %v5460_v40, %v8048_v45  ;;  %v4009_v22 = vpop.xlane.xlu0 %4008 }
 0x609   : > { %5465 = vrsqrt.f32 %v4051_v63  ;;  %v4036_v21 = vmul.f32 0.0078125, %v4009_v22 }
 0x60a   : > { %v4103_v4 = vmul.f32 %v8130_v1, %v4080_v25 }
 0x60b   : > { %v5462_v56 = vpop.eup %5461  ;;  %v4052_v23 = vadd.f32 1e-05, %v4036_v21 }
 0x60c   : > { %v4126_v54 = vadd.f32 %v8136_v33, %v4103_v4  ;;  %v4081_v59 = vmul.f32 %v5462_v56, %v8053_v46  ;;  %v4011_v29 = vpop.xlane.xlu1 %4010 }
 0x60d   : > { %5467 = vrsqrt.f32 %v4052_v23  ;;  %v4037_v48 = vmul.f32 0.0078125, %v4011_v29 }
 0x60e   : > { %4142 = vst [vmem:[%s8143_s30] sm:$0xff] %v4126_v54  ;;  %v4104_v45 = vmul.f32 %v8130_v1, %v4081_v59 }
 0x60f   : > { %v5464_v8 = vpop.eup %5463  ;;  %v4053_v30 = vadd.f32 1e-05, %v4037_v48 }
 0x610   : > { %v4127_v18 = vadd.f32 %v8136_v33, %v4104_v45  ;;  %v4082_v13 = vmul.f32 %v5464_v8, %v8058_v31  ;;  %v4013_v35 = vpop.xlane.xlu0 %4012 }
 0x611   : > { %5469 = vrsqrt.f32 %v4053_v30  ;;  %v4038_v46 = vmul.f32 0.0078125, %v4013_v35 }
 0x612   : > { %4143 = vst [vmem:[%s8143_s30 + $0x8] sm:$0xff] %v4127_v18  ;;  %v4105_v0 = vmul.f32 %v8130_v1, %v4082_v13 }
 0x613   : > { %v5466_v2 = vpop.eup %5465  ;;  %v4054_v9 = vadd.f32 1e-05, %v4038_v46 }
 0x614   : > { %v4128_v51 = vadd.f32 %v8136_v33, %v4105_v0  ;;  %v4083_v49 = vmul.f32 %v5466_v2, %v8063_v6  ;;  %v4015_v34 = vpop.xlane.xlu1 %4014 }
 0x615   : > { %5471 = vrsqrt.f32 %v4054_v9  ;;  %v4039_v19 = vmul.f32 0.0078125, %v4015_v34 }
 0x616   : > { %4144 = vst [vmem:[%s8143_s30 + $0x10] sm:$0xff] %v4128_v51  ;;  %v4106_v14 = vmul.f32 %v8130_v1, %v4083_v49 }
 0x617   : > { %v5468_v31 = vpop.eup %5467  ;;  %v4055_v60 = vadd.f32 1e-05, %v4039_v19 }
 0x618   : > { %v4129_v15 = vadd.f32 %v8136_v33, %v4106_v14  ;;  %v4084_v57 = vmul.f32 %v5468_v31, %v8068_v17  ;;  %v4017_v26 = vpop.xlane.xlu0 %4016 }
 0x619   : > { %5473 = vrsqrt.f32 %v4055_v60  ;;  %v4040_v7 = vmul.f32 0.0078125, %v4017_v26 }
 0x61a   : > { %4145 = vst [vmem:[%s8143_s30 + $0x18] sm:$0xff] %v4129_v15  ;;  %v4107_v42 = vmul.f32 %v8130_v1, %v4084_v57 }
 0x61b   : > { %v5470_v6 = vpop.eup %5469  ;;  %v4056_v32 = vadd.f32 1e-05, %v4040_v7 }
 0x61c   : > { %v4130_v58 = vadd.f32 %v8136_v33, %v4107_v42  ;;  %v4085_v53 = vmul.f32 %v5470_v6, %v8073_v37  ;;  %v4019_v24 = vpop.xlane.xlu1 %4018 }
 0x61d   : > { %5475 = vrsqrt.f32 %v4056_v32  ;;  %v4041_v36 = vmul.f32 0.0078125, %v4019_v24 }
 0x61e   : > { %4146 = vst [vmem:[%s8143_s30 + $0x20] sm:$0xff] %v4130_v58  ;;  %v4108_v52 = vmul.f32 %v8130_v1, %v4085_v53 }
 0x61f   : > { %v5472_v17 = vpop.eup %5471  ;;  %v4057_v3 = vadd.f32 1e-05, %v4041_v36 }
 0x620   : > { %v4131_v50 = vadd.f32 %v8136_v33, %v4108_v52  ;;  %v4086_v11 = vmul.f32 %v5472_v17, %v8078_v55  ;;  %v4021_v10 = vpop.xlane.xlu0 %4020 }
 0x621   : > { %5477 = vrsqrt.f32 %v4057_v3  ;;  %v4042_v43 = vmul.f32 0.0078125, %v4021_v10 }
 0x622   : > { %4147 = vst [vmem:[%s8143_s30 + $0x28] sm:$0xff] %v4131_v50  ;;  %v4109_v12 = vmul.f32 %v8130_v1, %v4086_v11 }
 0x623   : > { %v5474_v37 = vpop.eup %5473  ;;  %v4058_v27 = vadd.f32 1e-05, %v4042_v43 }
 0x624   : > { %v4132_v16 = vadd.f32 %v8136_v33, %v4109_v12  ;;  %v4087_v44 = vmul.f32 %v5474_v37, %v8083_v39  ;;  %v4023_v40 = vpop.xlane.xlu1 %4022 }
 0x625   : > { %5479 = vrsqrt.f32 %v4058_v27  ;;  %v4043_v63 = vmul.f32 0.0078125, %v4023_v40 }
 0x626   : > { %4148 = vst [vmem:[%s8143_s30 + $0x30] sm:$0xff] %v4132_v16  ;;  %v4110_v25 = vmul.f32 %v8130_v1, %v4087_v44 }
 0x627   : > { %v5476_v55 = vpop.eup %5475  ;;  %v4059_v22 = vadd.f32 1e-05, %v4043_v63 }
 0x628   : > { %v4133_v21 = vadd.f32 %v8136_v33, %v4110_v25  ;;  %v4088_v4 = vmul.f32 %v5476_v55, %v8088_v20  ;;  %v4025_v56 = vpop.xlane.xlu0 %4024 }
 0x629   : > { %5481 = vrsqrt.f32 %v4059_v22  ;;  %v4044_v23 = vmul.f32 0.0078125, %v4025_v56 }
 0x62a   : > { %4149 = vst [vmem:[%s8143_s30 + $0x38] sm:$0xff] %v4133_v21  ;;  %v4111_v54 = vmul.f32 %v8130_v1, %v4088_v4 }
 0x62b   : > { %v5478_v39 = vpop.eup %5477  ;;  %v4060_v59 = vadd.f32 1e-05, %v4044_v23 }
 0x62c   : > { %v4134_v29 = vadd.f32 %v8136_v33, %v4111_v54  ;;  %v4089_v48 = vmul.f32 %v5478_v39, %v8093_v62  ;;  %v4027_v45 = vpop.xlane.xlu1 %4026 }
 0x62d   : > { %5483 = vrsqrt.f32 %v4060_v59  ;;  %v4045_v8 = vmul.f32 0.0078125, %v4027_v45 }
 0x62e   : > { %4150 = vst [vmem:[%s8143_s30 + $0x40] sm:$0xff] %v4134_v29  ;;  %v4112_v30 = vmul.f32 %v8130_v1, %v4089_v48 }
 0x62f   : > { %v5480_v20 = vpop.eup %5479  ;;  %v4061_v18 = vadd.f32 1e-05, %v4045_v8 }
 0x630   : > { %v4135_v13 = vadd.f32 %v8136_v33, %v4112_v30  ;;  %v4090_v35 = vmul.f32 %v5480_v20, %v8098_v41  ;;  %v4029_v46 = vpop.xlane.xlu0 %4028 }
 0x631   : > { %5485 = vrsqrt.f32 %v4061_v18  ;;  %v4046_v0 = vmul.f32 0.0078125, %v4029_v46 }
 0x632   : > { %4151 = vst [vmem:[%s8143_s30 + $0x48] sm:$0xff] %v4135_v13  ;;  %v4113_v62 = vmul.f32 %v8130_v1, %v4090_v35 }
 0x633   : > { %v5482_v2 = vpop.eup %5481  ;;  %v4062_v9 = vadd.f32 1e-05, %v4046_v0 }
 0x634   : > { %v4136_v51 = vadd.f32 %v8136_v33, %v4113_v62  ;;  %v4091_v49 = vmul.f32 %v5482_v2, %v8103_v61  ;;  %v4031_v34 = vpop.xlane.xlu1 %4030 }
 0x635   : > { %5487 = vrsqrt.f32 %v4062_v9  ;;  %v4047_v19 = vmul.f32 0.0078125, %v4031_v34 }
 0x636   : > { %4152 = vst [vmem:[%s8143_s30 + $0x50] sm:$0xff] %v4136_v51  ;;  %v4114_v41 = vmul.f32 %v8130_v1, %v4091_v49 }
 0x637   : > { %v5484_v14 = vpop.eup %5483  ;;  %v4063_v31 = vadd.f32 1e-05, %v4047_v19 }
 0x638   : > { %v4137_v60 = vadd.f32 %v8136_v33, %v4114_v41  ;;  %v4092_v15 = vmul.f32 %v5484_v14, %v8108_v47 }
 0x639   : > { %5489 = vrsqrt.f32 %v4063_v31 }
 0x63a   : > { %4153 = vst [vmem:[%s8143_s30 + $0x58] sm:$0xff] %v4137_v60  ;;  %v4115_v61 = vmul.f32 %v8130_v1, %v4092_v15 }
 0x63b   : > { %v5486_v57 = vpop.eup %5485 }
 0x63c   : > { %v4138_v26 = vadd.f32 %v8136_v33, %v4115_v61  ;;  %v4093_v7 = vmul.f32 %v5486_v57, %v8113_v28 }
 0x63e   : > { %4154 = vst [vmem:[%s8143_s30 + $0x60] sm:$0xff] %v4138_v26  ;;  %v4116_v42 = vmul.f32 %v8130_v1, %v4093_v7 }
 0x63f   : > { %v5488_v6 = vpop.eup %5487 }
 0x640   : > { %v4139_v47 = vadd.f32 %v8136_v33, %v4116_v42  ;;  %v4094_v32 = vmul.f32 %v5488_v6, %v8118_v38 }
 0x642   : > { %4155 = vst [vmem:[%s8143_s30 + $0x68] sm:$0xff] %v4139_v47  ;;  %v4117_v58 = vmul.f32 %v8130_v1, %v4094_v32 }
 0x643   : > { %v5490_v53 = vpop.eup %5489 }
 0x644   : > { %v4140_v24 = vadd.f32 %v8136_v33, %v4117_v58  ;;  %v4095_v36 = vmul.f32 %v5490_v53, %v8123_v5 }
 0x646   : > { %4156 = vst [vmem:[%s8143_s30 + $0x70] sm:$0xff] %v4140_v24  ;;  %v4118_v28 = vmul.f32 %v8130_v1, %v4095_v36 }
 0x648   : > { %v4141_v38 = vadd.f32 %v8136_v33, %v4118_v28 }
 0x64a   : > { %4157 = vst [vmem:[%s8143_s30 + $0x78] sm:$0xff] %v4141_v38 }
 0x64b   : > { %5606 = shalt.err (!%p5603_p11)
}
 0x64c   : > { %s5607_s17 = scalar_lea.hbm %s8208_s24, 2048  ;;  %s5611_s18 = scalar_lea.hbm %s8268_s7, 4096 }
 0x64d   : > { %p5608_p0 = scmp.ne.s32.totalorder %s8208_s24, %s5607_s17  ;;  %p5612_p6 = scmp.lt.u32.totalorder %s8208_s24, %s8268_s7 }
 0x64e   : > { %p5613_p7 = scmp.lt.u32.totalorder %s5611_s18, %s5607_s17  ;;  %p5615_p8 = scmp.lt.u32.totalorder %s5607_s17, %s8208_s24 }
 0x64f   : > { %p5609_p4 = pnand %p5608_p0, %p9129_p12 }
 0x650   : > { %p5614_p2 = por %p5613_p7, %p5612_p6 }
 0x651   : > { %p5610_p13 = pneg %p5609_p4 }
 0x652   : > { %p5616_p1 = por %p5615_p8, %p5614_p2 }
 0x654   : > { %p5617_p10 = pnand %p5616_p1, %p5610_p13 }
 0x656   : > { %5620 = shalt.err (!%p5617_p10)
}
 0x657   : > { %s5690_s10 = smov 128   ;;  %s5691_s23 = smov 8  }
 0x658   : > { %5379 = dma.vmem_to_hbm [thread:$0]  (%p9129_p12), %s8210_s22, 2048, %s8208_s24, %s4159_s9, %s5690_s10, %s5690_s10, %s5691_s23  }
 0x659 PF: > { %s9130_s11 = sld [smem:[#allocation13_spill]]  ;;  %s9131_s27 = sld [smem:[#allocation14_spill]] }
 0x65a   : > { %p9133_p5 = scmp.ge.s32.totalorder %s5679_s29, 2 }
 0x65f   : > { %s4187_s13 = sand.u32 1, %s9130_s11   ;;  %p9132_p3 = scmp.ne.s32.totalorder %s9131_s27, 0 }
 0x660   : > { %s4188_s12 = scalar_lea.sflag [#allocation5], %s4187_s13 }
 0x661   : > { %p5393_p9 = pnand %p9133_p5, %p9132_p3 }
 0x663   : > { %5654 = dma.done.wait (!%p5393_p9), %s4188_s12, 2048  }
 0x664   : > { %5656 = vsyncadd (!%p5393_p9), %s4188_s12, 4294965248  ;;  %s24_s29 = sadd.s32 1, %s5679_s29   ;;  %s9134_s24 = smov %s5663_s25 }
 0x665   : > { %p21_p11 = scmp.ge.s32.totalorder %s24_s29, 4   ;;  %s9135_s25 = smov %s5667_s26 }
 0x666   : > { %s9136_s26 = smov %s5877_s8  ;;  %s9137_s27 = smov %s5675_s28 }
 0x667   : > { %s9138_s28 = smov %s9140_s20  ;;  %23 = sbr.rel (!%p21_p11) target bundleno = 7 (0x7), region = 114 }
 0x66e   :  { %4193 = vsyncpa [#allocation4], 1 }
 0x66f   :  { %4195 = vsyncpa [#allocation4 + $0x1], 1 }
 0x670   :  { %4196 = vsyncpa [#allocation7], 1 }
 0x671   :  { %4197 = vsyncpa [#allocation5], 1 }
 0x672   :  { %4199 = vsyncpa [#allocation5 + $0x1], 1 }

</bundles_post_ra>
